<compile_context>
chip_gen: v7x
topology: tpu7x:2x2x1
jax: 0.10.0
libtpu: 0.0.40
codegen_flags: <defaults>
</compile_context>

<pallas_src>
import numpy as np
import jax
import jax.numpy as jnp
from jax import lax
from jax.experimental import pallas as pl
from jax.experimental.pallas import tpu as pltpu  # noqa: F401  (TPU backend)

B = 2              # real batch size
BP = 8             # batch padded to the sublane width
N = 8              # number of nodes (== number of decode steps)
H = 32             # embedding / hidden size
TEMPERATURE = 1.0
TANH_CLIPPING = 10.0
MASK_LOGITS = True
NEG_INF = -1e9


# --------------------------------------------------------------------------
# Fused kernel: encoder + decoder projections + unrolled greedy decode + reward
# --------------------------------------------------------------------------
def _policy_kernel(locs2_ref, xs_ref, ys_ref, w_embed_ref, b_embed_ref,
                   w_key_ref, w_query_ref,
                   actions_ref, logprobs_ref, reward_ref, emb_ref):
    locs2 = locs2_ref[...]                                    # (BP*N, 2)
    xs = xs_ref[...]                                          # (BP, N)
    ys = ys_ref[...]                                          # (BP, N)

    # ---- encoder: K=2 linear projection on the VPU (MXU would be <2% used)
    w_e = w_embed_ref[...]                                    # (2, H)
    emb2 = (locs2[:, 0:1] * w_e[0:1, :]
            + locs2[:, 1:2] * w_e[1:2, :]
            + b_embed_ref[...])                               # (BP*N, H)
    emb_ref[...] = emb2                                       # init_embeds out

    # ---- decoder projections, once, on the MXU
    keys2 = jnp.dot(emb2, w_key_ref[...], preferred_element_type=jnp.float32)
    embq2 = jnp.dot(emb2, w_query_ref[...], preferred_element_type=jnp.float32)
    keys3 = keys2.reshape(BP, N, H)                           # (BP, N, H)
    embq3 = embq2.reshape(BP, N, H)                           # (BP, N, H)

    # pairwise pointer scores (prev node i -> candidate j), once on the MXU;
    # removes every per-step H-reduction from the decode loop.
    pair_scores = jnp.einsum("bih,bjh->bij", embq3, keys3,
                             preferred_element_type=jnp.float32)  # (BP, N, N)

    # graph-context query term reuses the pair scores:
    # mean(emb) @ Wq . key_j == mean_i (embq_i . key_j)
    base_scores = jnp.sum(pair_scores, axis=1) * (1.0 / N)    # (BP, N)

    scale = 1.0 / float(np.sqrt(H))
    inv_temp = 1.0 / TEMPERATURE
    iota = lax.broadcasted_iota(jnp.int32, (BP, N), 1)

    depot_x = xs[:, 0:1]                                      # (BP, 1)
    depot_y = ys[:, 0:1]                                      # (BP, 1)

    # decode state, carried in values (vregs) across the unrolled loop
    visited = jnp.zeros((BP, N), jnp.float32)
    prev_contrib = jnp.zeros((BP, N), jnp.float32)  # pair_scores row of prev node
    prev_x = depot_x
    prev_y = depot_y
    tourlen = jnp.zeros((BP, 1), jnp.float32)
    actions_acc = jnp.zeros((BP, N), jnp.int32)
    logp_acc = jnp.zeros((BP, N), jnp.float32)

    # fully unrolled decode loop: one basic block, zero per-step grid overhead
    for step in range(N):
        logits = (base_scores + prev_contrib) * scale
        if TANH_CLIPPING > 0:
            logits = TANH_CLIPPING * jnp.tanh(logits)
        if MASK_LOGITS:
            logits = jnp.where(visited > 0.5, NEG_INF, logits)
        logits = logits * inv_temp

        # single cross-lane max reused for the softmax shift AND the argmax
        maxv = jnp.max(logits, axis=-1, keepdims=True)
        z = logits - maxv
        lse = jnp.log(jnp.sum(jnp.exp(z), axis=-1, keepdims=True))
        logp = z - lse                                        # (BP, N)

        # greedy action (ties -> lowest index)
        action = jnp.min(jnp.where(logits >= maxv, iota, jnp.int32(N)),
                         axis=-1, keepdims=True)              # (BP, 1) int32
        onehot = (iota == action).astype(jnp.float32)         # (BP, N)
        chosen_logp = jnp.sum(onehot * logp, axis=-1, keepdims=True)  # (BP, 1)

        # scatter into column `step` (static step -> constant mask, pure VPU)
        step_mask = (iota == step)
        actions_acc = actions_acc + action * step_mask.astype(jnp.int32)
        logp_acc = logp_acc + chosen_logp * step_mask.astype(jnp.float32)

        # "env.step" analogue: mark visited, advance current node / tour length
        visited = jnp.maximum(visited, onehot)
        prev_contrib = jnp.sum(onehot[:, :, None] * pair_scores, axis=1)  # (BP,N)
        new_x = jnp.sum(onehot * xs, axis=-1, keepdims=True)              # (BP,1)
        new_y = jnp.sum(onehot * ys, axis=-1, keepdims=True)              # (BP,1)
        seg = jnp.sqrt((new_x - prev_x) ** 2 + (new_y - prev_y) ** 2)
        tourlen = tourlen + seg
        prev_x, prev_y = new_x, new_y

    # close the tour back to the depot (get_reward semantics)
    closing = jnp.sqrt((prev_x - depot_x) ** 2 + (prev_y - depot_y) ** 2)
    reward_ref[...] = -(tourlen + closing)

    # single whole-block stores (no per-step lane-sparse masked stores)
    actions_ref[...] = actions_acc
    logprobs_ref[...] = logp_acc


# --------------------------------------------------------------------------
# ConstructivePolicy.forward equivalent
# --------------------------------------------------------------------------
@jax.jit
def constructive_policy_forward(locs, params):
    # pad batch to the sublane width; padded rows are valid dummy instances
    locs_p = jnp.pad(locs, ((0, BP - B), (0, 0), (0, 0)))
    locs2 = locs_p.reshape(BP * N, 2)
    xs = locs_p[:, :, 0]                                   # (BP, N)
    ys = locs_p[:, :, 1]                                   # (BP, N)

    actions_p, logprobs_p, reward_p, emb2 = pl.pallas_call(
        _policy_kernel,
        out_shape=(
            jax.ShapeDtypeStruct((BP, N), jnp.int32),        # actions
            jax.ShapeDtypeStruct((BP, N), jnp.float32),      # per-step logprobs
            jax.ShapeDtypeStruct((BP, 1), jnp.float32),      # reward
            jax.ShapeDtypeStruct((BP * N, H), jnp.float32),  # init embeddings
        ),
    )(locs2, xs, ys, params["w_embed"], params["b_embed"],
      params["w_key"], params["w_query"])

    init_embeds = emb2.reshape(BP, N, H)[:B]
    actions = actions_p[:B]
    logprobs = logprobs_p[:B]

    return {
        "reward": reward_p[:B, 0],                     # (B,) = -tour_length
        "log_likelihood": jnp.sum(logprobs, axis=-1),  # (B,) summed log-probs
        "actions": actions,                            # (B, N)
        "hidden": init_embeds,
        "init_embeds": init_embeds,
    }


if __name__ == "__main__":
    key = jax.random.PRNGKey(0)
    k_locs, k_we, k_wk, k_wq = jax.random.split(key, 4)

    locs = jax.random.uniform(k_locs, (B, N, 2), dtype=jnp.float32)
    params = {
        "w_embed": jax.random.normal(k_we, (2, H), jnp.float32) * 0.5,
        "b_embed": jnp.zeros((1, H), jnp.float32),
        "w_key": jax.random.normal(k_wk, (H, H), jnp.float32) * (1.0 / np.sqrt(H)),
        "w_query": jax.random.normal(k_wq, (H, H), jnp.float32) * (1.0 / np.sqrt(H)),
    }

    out = jax.block_until_ready(constructive_policy_forward(locs, params))

    # Light validation: actions form a permutation; reward == -closed tour
    # length; log-likelihood is a finite, non-positive sum of log-probs.
    acts = np.asarray(out["actions"])
    locs_np = np.asarray(locs)
    for b in range(B):
        assert len(set(acts[b].tolist())) == N, "actions are not a permutation"
        ordered = np.concatenate([locs_np[b, :1], locs_np[b, acts[b]]], axis=0)
        diffs = np.diff(np.concatenate([ordered, ordered[:1]], axis=0), axis=0)
        ref_reward = -np.sqrt((diffs ** 2).sum(-1)).sum()
        assert abs(ref_reward - float(out["reward"][b])) < 1e-3, (
            ref_reward, float(out["reward"][b]))
    ll = np.asarray(out["log_likelihood"])
    assert np.all(np.isfinite(ll)) and np.all(ll <= 1e-4), ll

    print("KERNEL_OK")
</pallas_src>

<mosaic_0001>
module attributes {stable_mosaic.version = 11 : i64} {
  func.func @_policy_kernel(%arg0: memref<64x2xf32, #tpu.memory_space<vmem>>, %arg1: memref<8x8xf32, #tpu.memory_space<vmem>>, %arg2: memref<8x8xf32, #tpu.memory_space<vmem>>, %arg3: memref<2x32xf32, #tpu.memory_space<vmem>>, %arg4: memref<1x32xf32, #tpu.memory_space<vmem>>, %arg5: memref<32x32xf32, #tpu.memory_space<vmem>>, %arg6: memref<32x32xf32, #tpu.memory_space<vmem>>, %arg7: memref<8x8xi32, #tpu.memory_space<vmem>>, %arg8: memref<8x8xf32, #tpu.memory_space<vmem>>, %arg9: memref<8x1xf32, #tpu.memory_space<vmem>>, %arg10: memref<64x32xf32, #tpu.memory_space<vmem>>) attributes {dimension_semantics = [], scalar_prefetch = 0 : i64, scratch_operands = 0 : i64, tpu.core_type = #tpu.core_type<tc>} {
    %c0 = arith.constant 0 : index
    %c0_0 = arith.constant 0 : index
    %0 = vector.load %arg0[%c0, %c0_0] : memref<64x2xf32, #tpu.memory_space<vmem>>, vector<64x2xf32>
    %c0_1 = arith.constant 0 : index
    %c0_2 = arith.constant 0 : index
    %1 = vector.load %arg1[%c0_1, %c0_2] : memref<8x8xf32, #tpu.memory_space<vmem>>, vector<8x8xf32>
    %c0_3 = arith.constant 0 : index
    %c0_4 = arith.constant 0 : index
    %2 = vector.load %arg2[%c0_3, %c0_4] : memref<8x8xf32, #tpu.memory_space<vmem>>, vector<8x8xf32>
    %c0_5 = arith.constant 0 : index
    %c0_6 = arith.constant 0 : index
    %3 = vector.load %arg3[%c0_5, %c0_6] : memref<2x32xf32, #tpu.memory_space<vmem>>, vector<2x32xf32>
    %4 = vector.extract_strided_slice %0 {offsets = [0, 0], sizes = [64, 1], strides = [1, 1]} : vector<64x2xf32> to vector<64x1xf32>
    %5 = vector.extract_strided_slice %3 {offsets = [0, 0], sizes = [1, 32], strides = [1, 1]} : vector<2x32xf32> to vector<1x32xf32>
    %6 = vector.broadcast %4 : vector<64x1xf32> to vector<64x32xf32>
    %7 = vector.broadcast %5 : vector<1x32xf32> to vector<64x32xf32>
    %8 = arith.mulf %6, %7 : vector<64x32xf32>
    %9 = vector.extract_strided_slice %0 {offsets = [0, 1], sizes = [64, 1], strides = [1, 1]} : vector<64x2xf32> to vector<64x1xf32>
    %10 = vector.extract_strided_slice %3 {offsets = [1, 0], sizes = [1, 32], strides = [1, 1]} : vector<2x32xf32> to vector<1x32xf32>
    %11 = vector.broadcast %9 : vector<64x1xf32> to vector<64x32xf32>
    %12 = vector.broadcast %10 : vector<1x32xf32> to vector<64x32xf32>
    %13 = arith.mulf %11, %12 : vector<64x32xf32>
    %14 = arith.addf %8, %13 : vector<64x32xf32>
    %c0_7 = arith.constant 0 : index
    %c0_8 = arith.constant 0 : index
    %15 = vector.load %arg4[%c0_7, %c0_8] : memref<1x32xf32, #tpu.memory_space<vmem>>, vector<1x32xf32>
    %16 = vector.broadcast %15 : vector<1x32xf32> to vector<64x32xf32>
    %17 = arith.addf %14, %16 : vector<64x32xf32>
    %c0_9 = arith.constant 0 : index
    %c0_10 = arith.constant 0 : index
    %18 = vector.load %arg10[%c0_9, %c0_10] : memref<64x32xf32, #tpu.memory_space<vmem>>, vector<64x32xf32>
    tpu.vector_store %arg10[%c0_9, %c0_10], %17 {strides = array<i32>} : memref<64x32xf32, #tpu.memory_space<vmem>>, vector<64x32xf32>,
    %c0_11 = arith.constant 0 : index
    %c0_12 = arith.constant 0 : index
    %19 = vector.load %arg5[%c0_11, %c0_12] : memref<32x32xf32, #tpu.memory_space<vmem>>, vector<32x32xf32>
    %cst = arith.constant dense<0.000000e+00> : vector<64x32xf32>
    %20 = tpu.matmul %17, %19, %cst {dimension_numbers = #tpu.dot_dimension_numbers<[1], [0], [0], [1], [0, 0, 1, 1], [], []>} : vector<64x32xf32>, vector<32x32xf32>, vector<64x32xf32> -> vector<64x32xf32>
    %c0_13 = arith.constant 0 : index
    %c0_14 = arith.constant 0 : index
    %21 = vector.load %arg6[%c0_13, %c0_14] : memref<32x32xf32, #tpu.memory_space<vmem>>, vector<32x32xf32>
    %cst_15 = arith.constant dense<0.000000e+00> : vector<64x32xf32>
    %22 = tpu.matmul %17, %21, %cst_15 {dimension_numbers = #tpu.dot_dimension_numbers<[1], [0], [0], [1], [0, 0, 1, 1], [], []>} : vector<64x32xf32>, vector<32x32xf32>, vector<64x32xf32> -> vector<64x32xf32>
    %23 = vector.shape_cast %20 : vector<64x32xf32> to vector<8x8x32xf32>
    %24 = vector.shape_cast %22 : vector<64x32xf32> to vector<8x8x32xf32>
    "tpu.trace_start"() <{level = 10 : i32, message = "bih,bjh->bij"}> : () -> ()
    %cst_16 = arith.constant dense<0.000000e+00> : vector<8x8x8xf32>
    %25 = tpu.matmul %24, %23, %cst_16 {dimension_numbers = #tpu.dot_dimension_numbers<[2], [2], [1], [1], [0, 0, 0, 1, 1, 1], [0], [0]>} : vector<8x8x32xf32>, vector<8x8x32xf32>, vector<8x8x8xf32> -> vector<8x8x8xf32>
    "tpu.trace_stop"() : () -> ()
    %cst_17 = arith.constant dense<0.000000e+00> : vector<8x8xf32>
    %26 = vector.multi_reduction <add>, %25, %cst_17 [1] : vector<8x8x8xf32> to vector<8x8xf32>
    %cst_18 = arith.constant 1.250000e-01 : f32
    %27 = vector.broadcast %cst_18 : f32 to vector<8x8xf32>
    %28 = arith.mulf %26, %27 : vector<8x8xf32>
    %29 = tpu.iota {dimensions = array<i32: 1>} : vector<8x8xi32>
    %30 = vector.extract_strided_slice %1 {offsets = [0, 0], sizes = [8, 1], strides = [1, 1]} : vector<8x8xf32> to vector<8x1xf32>
    %31 = vector.extract_strided_slice %2 {offsets = [0, 0], sizes = [8, 1], strides = [1, 1]} : vector<8x8xf32> to vector<8x1xf32>
    %cst_19 = arith.constant 0.000000e+00 : f32
    %32 = vector.broadcast %cst_19 : f32 to vector<8x8xf32>
    %cst_20 = arith.constant 0.000000e+00 : f32
    %33 = vector.broadcast %cst_20 : f32 to vector<8x8xf32>
    %cst_21 = arith.constant 0.000000e+00 : f32
    %34 = vector.broadcast %cst_21 : f32 to vector<8x1xf32>
    %c0_i32 = arith.constant 0 : i32
    %35 = vector.broadcast %c0_i32 : i32 to vector<8x8xi32>
    %cst_22 = arith.constant 0.000000e+00 : f32
    %36 = vector.broadcast %cst_22 : f32 to vector<8x8xf32>
    %37 = arith.addf %28, %33 : vector<8x8xf32>
    %cst_23 = arith.constant 0.176776692 : f32
    %38 = vector.broadcast %cst_23 : f32 to vector<8x8xf32>
    %39 = arith.mulf %37, %38 : vector<8x8xf32>
    %40 = math.tanh %39 : vector<8x8xf32>
    %cst_24 = arith.constant 1.000000e+01 : f32
    %41 = vector.broadcast %cst_24 : f32 to vector<8x8xf32>
    %42 = arith.mulf %41, %40 : vector<8x8xf32>
    %cst_25 = arith.constant 5.000000e-01 : f32
    %43 = vector.broadcast %cst_25 : f32 to vector<8x8xf32>
    %44 = arith.cmpf ogt, %32, %43 : vector<8x8xf32>
    %cst_26 = arith.constant -1.000000e+09 : f32
    %45 = vector.broadcast %cst_26 : f32 to vector<8x8xf32>
    %46 = arith.select %44, %45, %42 : vector<8x8xi1>, vector<8x8xf32>
    %cst_27 = arith.constant 1.000000e+00 : f32
    %47 = vector.broadcast %cst_27 : f32 to vector<8x8xf32>
    %48 = arith.mulf %46, %47 : vector<8x8xf32>
    %cst_28 = arith.constant dense<0xFF800000> : vector<8xf32>
    %49 = vector.multi_reduction <maximumf>, %48, %cst_28 [1] : vector<8x8xf32> to vector<8xf32>
    %50 = vector.shape_cast %49 : vector<8xf32> to vector<8x1xf32>
    %51 = vector.broadcast %50 : vector<8x1xf32> to vector<8x8xf32>
    %52 = arith.subf %48, %51 : vector<8x8xf32>
    %53 = math.exp %52 : vector<8x8xf32>
    %cst_29 = arith.constant dense<0.000000e+00> : vector<8xf32>
    %54 = vector.multi_reduction <add>, %53, %cst_29 [1] : vector<8x8xf32> to vector<8xf32>
    %55 = vector.shape_cast %54 : vector<8xf32> to vector<8x1xf32>
    %56 = math.log %55 : vector<8x1xf32>
    %57 = vector.broadcast %56 : vector<8x1xf32> to vector<8x8xf32>
    %58 = arith.subf %52, %57 : vector<8x8xf32>
    %59 = vector.broadcast %50 : vector<8x1xf32> to vector<8x8xf32>
    %60 = arith.cmpf oge, %48, %59 : vector<8x8xf32>
    %c8_i32 = arith.constant 8 : i32
    %61 = vector.broadcast %c8_i32 : i32 to vector<8x8xi32>
    %62 = arith.select %60, %29, %61 : vector<8x8xi1>, vector<8x8xi32>
    %cst_30 = arith.constant dense<2147483647> : vector<8xi32>
    %63 = vector.multi_reduction <minsi>, %62, %cst_30 [1] : vector<8x8xi32> to vector<8xi32>
    %64 = vector.shape_cast %63 : vector<8xi32> to vector<8x1xi32>
    %65 = vector.broadcast %64 : vector<8x1xi32> to vector<8x8xi32>
    %66 = arith.cmpi eq, %29, %65 : vector<8x8xi32>
    %67 = arith.extui %66 : vector<8x8xi1> to vector<8x8xi32>
    %68 = arith.sitofp %67 : vector<8x8xi32> to vector<8x8xf32>
    %69 = arith.mulf %68, %58 : vector<8x8xf32>
    %cst_31 = arith.constant dense<0.000000e+00> : vector<8xf32>
    %70 = vector.multi_reduction <add>, %69, %cst_31 [1] : vector<8x8xf32> to vector<8xf32>
    %71 = vector.shape_cast %70 : vector<8xf32> to vector<8x1xf32>
    %c0_i32_32 = arith.constant 0 : i32
    %72 = vector.broadcast %c0_i32_32 : i32 to vector<8x8xi32>
    %73 = arith.cmpi eq, %29, %72 : vector<8x8xi32>
    %74 = arith.extui %73 : vector<8x8xi1> to vector<8x8xi32>
    %75 = vector.broadcast %64 : vector<8x1xi32> to vector<8x8xi32>
    %76 = arith.muli %75, %74 : vector<8x8xi32>
    %77 = arith.addi %35, %76 : vector<8x8xi32>
    %78 = arith.extui %73 : vector<8x8xi1> to vector<8x8xi32>
    %79 = arith.sitofp %78 : vector<8x8xi32> to vector<8x8xf32>
    %80 = vector.broadcast %71 : vector<8x1xf32> to vector<8x8xf32>
    %81 = arith.mulf %80, %79 : vector<8x8xf32>
    %82 = arith.addf %36, %81 : vector<8x8xf32>
    %83 = arith.maximumf %32, %68 : vector<8x8xf32>
    %84 = vector.shape_cast %68 : vector<8x8xf32> to vector<8x8x1xf32>
    %85 = vector.broadcast %84 : vector<8x8x1xf32> to vector<8x8x8xf32>
    %86 = arith.mulf %85, %25 : vector<8x8x8xf32>
    %cst_33 = arith.constant dense<0.000000e+00> : vector<8x8xf32>
    %87 = vector.multi_reduction <add>, %86, %cst_33 [1] : vector<8x8x8xf32> to vector<8x8xf32>
    %88 = arith.mulf %68, %1 : vector<8x8xf32>
    %cst_34 = arith.constant dense<0.000000e+00> : vector<8xf32>
    %89 = vector.multi_reduction <add>, %88, %cst_34 [1] : vector<8x8xf32> to vector<8xf32>
    %90 = vector.shape_cast %89 : vector<8xf32> to vector<8x1xf32>
    %91 = arith.mulf %68, %2 : vector<8x8xf32>
    %cst_35 = arith.constant dense<0.000000e+00> : vector<8xf32>
    %92 = vector.multi_reduction <add>, %91, %cst_35 [1] : vector<8x8xf32> to vector<8xf32>
    %93 = vector.shape_cast %92 : vector<8xf32> to vector<8x1xf32>
    %94 = arith.subf %90, %30 : vector<8x1xf32>
    %95 = arith.mulf %94, %94 : vector<8x1xf32>
    %96 = arith.subf %93, %31 : vector<8x1xf32>
    %97 = arith.mulf %96, %96 : vector<8x1xf32>
    %98 = arith.addf %95, %97 : vector<8x1xf32>
    %99 = math.sqrt %98 : vector<8x1xf32>
    %100 = arith.addf %34, %99 : vector<8x1xf32>
    %101 = arith.addf %28, %87 : vector<8x8xf32>
    %cst_36 = arith.constant 0.176776692 : f32
    %102 = vector.broadcast %cst_36 : f32 to vector<8x8xf32>
    %103 = arith.mulf %101, %102 : vector<8x8xf32>
    %104 = math.tanh %103 : vector<8x8xf32>
    %cst_37 = arith.constant 1.000000e+01 : f32
    %105 = vector.broadcast %cst_37 : f32 to vector<8x8xf32>
    %106 = arith.mulf %105, %104 : vector<8x8xf32>
    %cst_38 = arith.constant 5.000000e-01 : f32
    %107 = vector.broadcast %cst_38 : f32 to vector<8x8xf32>
    %108 = arith.cmpf ogt, %83, %107 : vector<8x8xf32>
    %cst_39 = arith.constant -1.000000e+09 : f32
    %109 = vector.broadcast %cst_39 : f32 to vector<8x8xf32>
    %110 = arith.select %108, %109, %106 : vector<8x8xi1>, vector<8x8xf32>
    %cst_40 = arith.constant 1.000000e+00 : f32
    %111 = vector.broadcast %cst_40 : f32 to vector<8x8xf32>
    %112 = arith.mulf %110, %111 : vector<8x8xf32>
    %cst_41 = arith.constant dense<0xFF800000> : vector<8xf32>
    %113 = vector.multi_reduction <maximumf>, %112, %cst_41 [1] : vector<8x8xf32> to vector<8xf32>
    %114 = vector.shape_cast %113 : vector<8xf32> to vector<8x1xf32>
    %115 = vector.broadcast %114 : vector<8x1xf32> to vector<8x8xf32>
    %116 = arith.subf %112, %115 : vector<8x8xf32>
    %117 = math.exp %116 : vector<8x8xf32>
    %cst_42 = arith.constant dense<0.000000e+00> : vector<8xf32>
    %118 = vector.multi_reduction <add>, %117, %cst_42 [1] : vector<8x8xf32> to vector<8xf32>
    %119 = vector.shape_cast %118 : vector<8xf32> to vector<8x1xf32>
    %120 = math.log %119 : vector<8x1xf32>
    %121 = vector.broadcast %120 : vector<8x1xf32> to vector<8x8xf32>
    %122 = arith.subf %116, %121 : vector<8x8xf32>
    %123 = vector.broadcast %114 : vector<8x1xf32> to vector<8x8xf32>
    %124 = arith.cmpf oge, %112, %123 : vector<8x8xf32>
    %c8_i32_43 = arith.constant 8 : i32
    %125 = vector.broadcast %c8_i32_43 : i32 to vector<8x8xi32>
    %126 = arith.select %124, %29, %125 : vector<8x8xi1>, vector<8x8xi32>
    %cst_44 = arith.constant dense<2147483647> : vector<8xi32>
    %127 = vector.multi_reduction <minsi>, %126, %cst_44 [1] : vector<8x8xi32> to vector<8xi32>
    %128 = vector.shape_cast %127 : vector<8xi32> to vector<8x1xi32>
    %129 = vector.broadcast %128 : vector<8x1xi32> to vector<8x8xi32>
    %130 = arith.cmpi eq, %29, %129 : vector<8x8xi32>
    %131 = arith.extui %130 : vector<8x8xi1> to vector<8x8xi32>
    %132 = arith.sitofp %131 : vector<8x8xi32> to vector<8x8xf32>
    %133 = arith.mulf %132, %122 : vector<8x8xf32>
    %cst_45 = arith.constant dense<0.000000e+00> : vector<8xf32>
    %134 = vector.multi_reduction <add>, %133, %cst_45 [1] : vector<8x8xf32> to vector<8xf32>
    %135 = vector.shape_cast %134 : vector<8xf32> to vector<8x1xf32>
    %c1_i32 = arith.constant 1 : i32
    %136 = vector.broadcast %c1_i32 : i32 to vector<8x8xi32>
    %137 = arith.cmpi eq, %29, %136 : vector<8x8xi32>
    %138 = arith.extui %137 : vector<8x8xi1> to vector<8x8xi32>
    %139 = vector.broadcast %128 : vector<8x1xi32> to vector<8x8xi32>
    %140 = arith.muli %139, %138 : vector<8x8xi32>
    %141 = arith.addi %77, %140 : vector<8x8xi32>
    %142 = arith.extui %137 : vector<8x8xi1> to vector<8x8xi32>
    %143 = arith.sitofp %142 : vector<8x8xi32> to vector<8x8xf32>
    %144 = vector.broadcast %135 : vector<8x1xf32> to vector<8x8xf32>
    %145 = arith.mulf %144, %143 : vector<8x8xf32>
    %146 = arith.addf %82, %145 : vector<8x8xf32>
    %147 = arith.maximumf %83, %132 : vector<8x8xf32>
    %148 = vector.shape_cast %132 : vector<8x8xf32> to vector<8x8x1xf32>
    %149 = vector.broadcast %148 : vector<8x8x1xf32> to vector<8x8x8xf32>
    %150 = arith.mulf %149, %25 : vector<8x8x8xf32>
    %cst_46 = arith.constant dense<0.000000e+00> : vector<8x8xf32>
    %151 = vector.multi_reduction <add>, %150, %cst_46 [1] : vector<8x8x8xf32> to vector<8x8xf32>
    %152 = arith.mulf %132, %1 : vector<8x8xf32>
    %cst_47 = arith.constant dense<0.000000e+00> : vector<8xf32>
    %153 = vector.multi_reduction <add>, %152, %cst_47 [1] : vector<8x8xf32> to vector<8xf32>
    %154 = vector.shape_cast %153 : vector<8xf32> to vector<8x1xf32>
    %155 = arith.mulf %132, %2 : vector<8x8xf32>
    %cst_48 = arith.constant dense<0.000000e+00> : vector<8xf32>
    %156 = vector.multi_reduction <add>, %155, %cst_48 [1] : vector<8x8xf32> to vector<8xf32>
    %157 = vector.shape_cast %156 : vector<8xf32> to vector<8x1xf32>
    %158 = arith.subf %154, %90 : vector<8x1xf32>
    %159 = arith.mulf %158, %158 : vector<8x1xf32>
    %160 = arith.subf %157, %93 : vector<8x1xf32>
    %161 = arith.mulf %160, %160 : vector<8x1xf32>
    %162 = arith.addf %159, %161 : vector<8x1xf32>
    %163 = math.sqrt %162 : vector<8x1xf32>
    %164 = arith.addf %100, %163 : vector<8x1xf32>
    %165 = arith.addf %28, %151 : vector<8x8xf32>
    %cst_49 = arith.constant 0.176776692 : f32
    %166 = vector.broadcast %cst_49 : f32 to vector<8x8xf32>
    %167 = arith.mulf %165, %166 : vector<8x8xf32>
    %168 = math.tanh %167 : vector<8x8xf32>
    %cst_50 = arith.constant 1.000000e+01 : f32
    %169 = vector.broadcast %cst_50 : f32 to vector<8x8xf32>
    %170 = arith.mulf %169, %168 : vector<8x8xf32>
    %cst_51 = arith.constant 5.000000e-01 : f32
    %171 = vector.broadcast %cst_51 : f32 to vector<8x8xf32>
    %172 = arith.cmpf ogt, %147, %171 : vector<8x8xf32>
    %cst_52 = arith.constant -1.000000e+09 : f32
    %173 = vector.broadcast %cst_52 : f32 to vector<8x8xf32>
    %174 = arith.select %172, %173, %170 : vector<8x8xi1>, vector<8x8xf32>
    %cst_53 = arith.constant 1.000000e+00 : f32
    %175 = vector.broadcast %cst_53 : f32 to vector<8x8xf32>
    %176 = arith.mulf %174, %175 : vector<8x8xf32>
    %cst_54 = arith.constant dense<0xFF800000> : vector<8xf32>
    %177 = vector.multi_reduction <maximumf>, %176, %cst_54 [1] : vector<8x8xf32> to vector<8xf32>
    %178 = vector.shape_cast %177 : vector<8xf32> to vector<8x1xf32>
    %179 = vector.broadcast %178 : vector<8x1xf32> to vector<8x8xf32>
    %180 = arith.subf %176, %179 : vector<8x8xf32>
    %181 = math.exp %180 : vector<8x8xf32>
    %cst_55 = arith.constant dense<0.000000e+00> : vector<8xf32>
    %182 = vector.multi_reduction <add>, %181, %cst_55 [1] : vector<8x8xf32> to vector<8xf32>
    %183 = vector.shape_cast %182 : vector<8xf32> to vector<8x1xf32>
    %184 = math.log %183 : vector<8x1xf32>
    %185 = vector.broadcast %184 : vector<8x1xf32> to vector<8x8xf32>
    %186 = arith.subf %180, %185 : vector<8x8xf32>
    %187 = vector.broadcast %178 : vector<8x1xf32> to vector<8x8xf32>
    %188 = arith.cmpf oge, %176, %187 : vector<8x8xf32>
    %c8_i32_56 = arith.constant 8 : i32
    %189 = vector.broadcast %c8_i32_56 : i32 to vector<8x8xi32>
    %190 = arith.select %188, %29, %189 : vector<8x8xi1>, vector<8x8xi32>
    %cst_57 = arith.constant dense<2147483647> : vector<8xi32>
    %191 = vector.multi_reduction <minsi>, %190, %cst_57 [1] : vector<8x8xi32> to vector<8xi32>
    %192 = vector.shape_cast %191 : vector<8xi32> to vector<8x1xi32>
    %193 = vector.broadcast %192 : vector<8x1xi32> to vector<8x8xi32>
    %194 = arith.cmpi eq, %29, %193 : vector<8x8xi32>
    %195 = arith.extui %194 : vector<8x8xi1> to vector<8x8xi32>
    %196 = arith.sitofp %195 : vector<8x8xi32> to vector<8x8xf32>
    %197 = arith.mulf %196, %186 : vector<8x8xf32>
    %cst_58 = arith.constant dense<0.000000e+00> : vector<8xf32>
    %198 = vector.multi_reduction <add>, %197, %cst_58 [1] : vector<8x8xf32> to vector<8xf32>
    %199 = vector.shape_cast %198 : vector<8xf32> to vector<8x1xf32>
    %c2_i32 = arith.constant 2 : i32
    %200 = vector.broadcast %c2_i32 : i32 to vector<8x8xi32>
    %201 = arith.cmpi eq, %29, %200 : vector<8x8xi32>
    %202 = arith.extui %201 : vector<8x8xi1> to vector<8x8xi32>
    %203 = vector.broadcast %192 : vector<8x1xi32> to vector<8x8xi32>
    %204 = arith.muli %203, %202 : vector<8x8xi32>
    %205 = arith.addi %141, %204 : vector<8x8xi32>
    %206 = arith.extui %201 : vector<8x8xi1> to vector<8x8xi32>
    %207 = arith.sitofp %206 : vector<8x8xi32> to vector<8x8xf32>
    %208 = vector.broadcast %199 : vector<8x1xf32> to vector<8x8xf32>
    %209 = arith.mulf %208, %207 : vector<8x8xf32>
    %210 = arith.addf %146, %209 : vector<8x8xf32>
    %211 = arith.maximumf %147, %196 : vector<8x8xf32>
    %212 = vector.shape_cast %196 : vector<8x8xf32> to vector<8x8x1xf32>
    %213 = vector.broadcast %212 : vector<8x8x1xf32> to vector<8x8x8xf32>
    %214 = arith.mulf %213, %25 : vector<8x8x8xf32>
    %cst_59 = arith.constant dense<0.000000e+00> : vector<8x8xf32>
    %215 = vector.multi_reduction <add>, %214, %cst_59 [1] : vector<8x8x8xf32> to vector<8x8xf32>
    %216 = arith.mulf %196, %1 : vector<8x8xf32>
    %cst_60 = arith.constant dense<0.000000e+00> : vector<8xf32>
    %217 = vector.multi_reduction <add>, %216, %cst_60 [1] : vector<8x8xf32> to vector<8xf32>
    %218 = vector.shape_cast %217 : vector<8xf32> to vector<8x1xf32>
    %219 = arith.mulf %196, %2 : vector<8x8xf32>
    %cst_61 = arith.constant dense<0.000000e+00> : vector<8xf32>
    %220 = vector.multi_reduction <add>, %219, %cst_61 [1] : vector<8x8xf32> to vector<8xf32>
    %221 = vector.shape_cast %220 : vector<8xf32> to vector<8x1xf32>
    %222 = arith.subf %218, %154 : vector<8x1xf32>
    %223 = arith.mulf %222, %222 : vector<8x1xf32>
    %224 = arith.subf %221, %157 : vector<8x1xf32>
    %225 = arith.mulf %224, %224 : vector<8x1xf32>
    %226 = arith.addf %223, %225 : vector<8x1xf32>
    %227 = math.sqrt %226 : vector<8x1xf32>
    %228 = arith.addf %164, %227 : vector<8x1xf32>
    %229 = arith.addf %28, %215 : vector<8x8xf32>
    %cst_62 = arith.constant 0.176776692 : f32
    %230 = vector.broadcast %cst_62 : f32 to vector<8x8xf32>
    %231 = arith.mulf %229, %230 : vector<8x8xf32>
    %232 = math.tanh %231 : vector<8x8xf32>
    %cst_63 = arith.constant 1.000000e+01 : f32
    %233 = vector.broadcast %cst_63 : f32 to vector<8x8xf32>
    %234 = arith.mulf %233, %232 : vector<8x8xf32>
    %cst_64 = arith.constant 5.000000e-01 : f32
    %235 = vector.broadcast %cst_64 : f32 to vector<8x8xf32>
    %236 = arith.cmpf ogt, %211, %235 : vector<8x8xf32>
    %cst_65 = arith.constant -1.000000e+09 : f32
    %237 = vector.broadcast %cst_65 : f32 to vector<8x8xf32>
    %238 = arith.select %236, %237, %234 : vector<8x8xi1>, vector<8x8xf32>
    %cst_66 = arith.constant 1.000000e+00 : f32
    %239 = vector.broadcast %cst_66 : f32 to vector<8x8xf32>
    %240 = arith.mulf %238, %239 : vector<8x8xf32>
    %cst_67 = arith.constant dense<0xFF800000> : vector<8xf32>
    %241 = vector.multi_reduction <maximumf>, %240, %cst_67 [1] : vector<8x8xf32> to vector<8xf32>
    %242 = vector.shape_cast %241 : vector<8xf32> to vector<8x1xf32>
    %243 = vector.broadcast %242 : vector<8x1xf32> to vector<8x8xf32>
    %244 = arith.subf %240, %243 : vector<8x8xf32>
    %245 = math.exp %244 : vector<8x8xf32>
    %cst_68 = arith.constant dense<0.000000e+00> : vector<8xf32>
    %246 = vector.multi_reduction <add>, %245, %cst_68 [1] : vector<8x8xf32> to vector<8xf32>
    %247 = vector.shape_cast %246 : vector<8xf32> to vector<8x1xf32>
    %248 = math.log %247 : vector<8x1xf32>
    %249 = vector.broadcast %248 : vector<8x1xf32> to vector<8x8xf32>
    %250 = arith.subf %244, %249 : vector<8x8xf32>
    %251 = vector.broadcast %242 : vector<8x1xf32> to vector<8x8xf32>
    %252 = arith.cmpf oge, %240, %251 : vector<8x8xf32>
    %c8_i32_69 = arith.constant 8 : i32
    %253 = vector.broadcast %c8_i32_69 : i32 to vector<8x8xi32>
    %254 = arith.select %252, %29, %253 : vector<8x8xi1>, vector<8x8xi32>
    %cst_70 = arith.constant dense<2147483647> : vector<8xi32>
    %255 = vector.multi_reduction <minsi>, %254, %cst_70 [1] : vector<8x8xi32> to vector<8xi32>
    %256 = vector.shape_cast %255 : vector<8xi32> to vector<8x1xi32>
    %257 = vector.broadcast %256 : vector<8x1xi32> to vector<8x8xi32>
    %258 = arith.cmpi eq, %29, %257 : vector<8x8xi32>
    %259 = arith.extui %258 : vector<8x8xi1> to vector<8x8xi32>
    %260 = arith.sitofp %259 : vector<8x8xi32> to vector<8x8xf32>
    %261 = arith.mulf %260, %250 : vector<8x8xf32>
    %cst_71 = arith.constant dense<0.000000e+00> : vector<8xf32>
    %262 = vector.multi_reduction <add>, %261, %cst_71 [1] : vector<8x8xf32> to vector<8xf32>
    %263 = vector.shape_cast %262 : vector<8xf32> to vector<8x1xf32>
    %c3_i32 = arith.constant 3 : i32
    %264 = vector.broadcast %c3_i32 : i32 to vector<8x8xi32>
    %265 = arith.cmpi eq, %29, %264 : vector<8x8xi32>
    %266 = arith.extui %265 : vector<8x8xi1> to vector<8x8xi32>
    %267 = vector.broadcast %256 : vector<8x1xi32> to vector<8x8xi32>
    %268 = arith.muli %267, %266 : vector<8x8xi32>
    %269 = arith.addi %205, %268 : vector<8x8xi32>
    %270 = arith.extui %265 : vector<8x8xi1> to vector<8x8xi32>
    %271 = arith.sitofp %270 : vector<8x8xi32> to vector<8x8xf32>
    %272 = vector.broadcast %263 : vector<8x1xf32> to vector<8x8xf32>
    %273 = arith.mulf %272, %271 : vector<8x8xf32>
    %274 = arith.addf %210, %273 : vector<8x8xf32>
    %275 = arith.maximumf %211, %260 : vector<8x8xf32>
    %276 = vector.shape_cast %260 : vector<8x8xf32> to vector<8x8x1xf32>
    %277 = vector.broadcast %276 : vector<8x8x1xf32> to vector<8x8x8xf32>
    %278 = arith.mulf %277, %25 : vector<8x8x8xf32>
    %cst_72 = arith.constant dense<0.000000e+00> : vector<8x8xf32>
    %279 = vector.multi_reduction <add>, %278, %cst_72 [1] : vector<8x8x8xf32> to vector<8x8xf32>
    %280 = arith.mulf %260, %1 : vector<8x8xf32>
    %cst_73 = arith.constant dense<0.000000e+00> : vector<8xf32>
    %281 = vector.multi_reduction <add>, %280, %cst_73 [1] : vector<8x8xf32> to vector<8xf32>
    %282 = vector.shape_cast %281 : vector<8xf32> to vector<8x1xf32>
    %283 = arith.mulf %260, %2 : vector<8x8xf32>
    %cst_74 = arith.constant dense<0.000000e+00> : vector<8xf32>
    %284 = vector.multi_reduction <add>, %283, %cst_74 [1] : vector<8x8xf32> to vector<8xf32>
    %285 = vector.shape_cast %284 : vector<8xf32> to vector<8x1xf32>
    %286 = arith.subf %282, %218 : vector<8x1xf32>
    %287 = arith.mulf %286, %286 : vector<8x1xf32>
    %288 = arith.subf %285, %221 : vector<8x1xf32>
    %289 = arith.mulf %288, %288 : vector<8x1xf32>
    %290 = arith.addf %287, %289 : vector<8x1xf32>
    %291 = math.sqrt %290 : vector<8x1xf32>
    %292 = arith.addf %228, %291 : vector<8x1xf32>
    %293 = arith.addf %28, %279 : vector<8x8xf32>
    %cst_75 = arith.constant 0.176776692 : f32
    %294 = vector.broadcast %cst_75 : f32 to vector<8x8xf32>
    %295 = arith.mulf %293, %294 : vector<8x8xf32>
    %296 = math.tanh %295 : vector<8x8xf32>
    %cst_76 = arith.constant 1.000000e+01 : f32
    %297 = vector.broadcast %cst_76 : f32 to vector<8x8xf32>
    %298 = arith.mulf %297, %296 : vector<8x8xf32>
    %cst_77 = arith.constant 5.000000e-01 : f32
    %299 = vector.broadcast %cst_77 : f32 to vector<8x8xf32>
    %300 = arith.cmpf ogt, %275, %299 : vector<8x8xf32>
    %cst_78 = arith.constant -1.000000e+09 : f32
    %301 = vector.broadcast %cst_78 : f32 to vector<8x8xf32>
    %302 = arith.select %300, %301, %298 : vector<8x8xi1>, vector<8x8xf32>
    %cst_79 = arith.constant 1.000000e+00 : f32
    %303 = vector.broadcast %cst_79 : f32 to vector<8x8xf32>
    %304 = arith.mulf %302, %303 : vector<8x8xf32>
    %cst_80 = arith.constant dense<0xFF800000> : vector<8xf32>
    %305 = vector.multi_reduction <maximumf>, %304, %cst_80 [1] : vector<8x8xf32> to vector<8xf32>
    %306 = vector.shape_cast %305 : vector<8xf32> to vector<8x1xf32>
    %307 = vector.broadcast %306 : vector<8x1xf32> to vector<8x8xf32>
    %308 = arith.subf %304, %307 : vector<8x8xf32>
    %309 = math.exp %308 : vector<8x8xf32>
    %cst_81 = arith.constant dense<0.000000e+00> : vector<8xf32>
    %310 = vector.multi_reduction <add>, %309, %cst_81 [1] : vector<8x8xf32> to vector<8xf32>
    %311 = vector.shape_cast %310 : vector<8xf32> to vector<8x1xf32>
    %312 = math.log %311 : vector<8x1xf32>
    %313 = vector.broadcast %312 : vector<8x1xf32> to vector<8x8xf32>
    %314 = arith.subf %308, %313 : vector<8x8xf32>
    %315 = vector.broadcast %306 : vector<8x1xf32> to vector<8x8xf32>
    %316 = arith.cmpf oge, %304, %315 : vector<8x8xf32>
    %c8_i32_82 = arith.constant 8 : i32
    %317 = vector.broadcast %c8_i32_82 : i32 to vector<8x8xi32>
    %318 = arith.select %316, %29, %317 : vector<8x8xi1>, vector<8x8xi32>
    %cst_83 = arith.constant dense<2147483647> : vector<8xi32>
    %319 = vector.multi_reduction <minsi>, %318, %cst_83 [1] : vector<8x8xi32> to vector<8xi32>
    %320 = vector.shape_cast %319 : vector<8xi32> to vector<8x1xi32>
    %321 = vector.broadcast %320 : vector<8x1xi32> to vector<8x8xi32>
    %322 = arith.cmpi eq, %29, %321 : vector<8x8xi32>
    %323 = arith.extui %322 : vector<8x8xi1> to vector<8x8xi32>
    %324 = arith.sitofp %323 : vector<8x8xi32> to vector<8x8xf32>
    %325 = arith.mulf %324, %314 : vector<8x8xf32>
    %cst_84 = arith.constant dense<0.000000e+00> : vector<8xf32>
    %326 = vector.multi_reduction <add>, %325, %cst_84 [1] : vector<8x8xf32> to vector<8xf32>
    %327 = vector.shape_cast %326 : vector<8xf32> to vector<8x1xf32>
    %c4_i32 = arith.constant 4 : i32
    %328 = vector.broadcast %c4_i32 : i32 to vector<8x8xi32>
    %329 = arith.cmpi eq, %29, %328 : vector<8x8xi32>
    %330 = arith.extui %329 : vector<8x8xi1> to vector<8x8xi32>
    %331 = vector.broadcast %320 : vector<8x1xi32> to vector<8x8xi32>
    %332 = arith.muli %331, %330 : vector<8x8xi32>
    %333 = arith.addi %269, %332 : vector<8x8xi32>
    %334 = arith.extui %329 : vector<8x8xi1> to vector<8x8xi32>
    %335 = arith.sitofp %334 : vector<8x8xi32> to vector<8x8xf32>
    %336 = vector.broadcast %327 : vector<8x1xf32> to vector<8x8xf32>
    %337 = arith.mulf %336, %335 : vector<8x8xf32>
    %338 = arith.addf %274, %337 : vector<8x8xf32>
    %339 = arith.maximumf %275, %324 : vector<8x8xf32>
    %340 = vector.shape_cast %324 : vector<8x8xf32> to vector<8x8x1xf32>
    %341 = vector.broadcast %340 : vector<8x8x1xf32> to vector<8x8x8xf32>
    %342 = arith.mulf %341, %25 : vector<8x8x8xf32>
    %cst_85 = arith.constant dense<0.000000e+00> : vector<8x8xf32>
    %343 = vector.multi_reduction <add>, %342, %cst_85 [1] : vector<8x8x8xf32> to vector<8x8xf32>
    %344 = arith.mulf %324, %1 : vector<8x8xf32>
    %cst_86 = arith.constant dense<0.000000e+00> : vector<8xf32>
    %345 = vector.multi_reduction <add>, %344, %cst_86 [1] : vector<8x8xf32> to vector<8xf32>
    %346 = vector.shape_cast %345 : vector<8xf32> to vector<8x1xf32>
    %347 = arith.mulf %324, %2 : vector<8x8xf32>
    %cst_87 = arith.constant dense<0.000000e+00> : vector<8xf32>
    %348 = vector.multi_reduction <add>, %347, %cst_87 [1] : vector<8x8xf32> to vector<8xf32>
    %349 = vector.shape_cast %348 : vector<8xf32> to vector<8x1xf32>
    %350 = arith.subf %346, %282 : vector<8x1xf32>
    %351 = arith.mulf %350, %350 : vector<8x1xf32>
    %352 = arith.subf %349, %285 : vector<8x1xf32>
    %353 = arith.mulf %352, %352 : vector<8x1xf32>
    %354 = arith.addf %351, %353 : vector<8x1xf32>
    %355 = math.sqrt %354 : vector<8x1xf32>
    %356 = arith.addf %292, %355 : vector<8x1xf32>
    %357 = arith.addf %28, %343 : vector<8x8xf32>
    %cst_88 = arith.constant 0.176776692 : f32
    %358 = vector.broadcast %cst_88 : f32 to vector<8x8xf32>
    %359 = arith.mulf %357, %358 : vector<8x8xf32>
    %360 = math.tanh %359 : vector<8x8xf32>
    %cst_89 = arith.constant 1.000000e+01 : f32
    %361 = vector.broadcast %cst_89 : f32 to vector<8x8xf32>
    %362 = arith.mulf %361, %360 : vector<8x8xf32>
    %cst_90 = arith.constant 5.000000e-01 : f32
    %363 = vector.broadcast %cst_90 : f32 to vector<8x8xf32>
    %364 = arith.cmpf ogt, %339, %363 : vector<8x8xf32>
    %cst_91 = arith.constant -1.000000e+09 : f32
    %365 = vector.broadcast %cst_91 : f32 to vector<8x8xf32>
    %366 = arith.select %364, %365, %362 : vector<8x8xi1>, vector<8x8xf32>
    %cst_92 = arith.constant 1.000000e+00 : f32
    %367 = vector.broadcast %cst_92 : f32 to vector<8x8xf32>
    %368 = arith.mulf %366, %367 : vector<8x8xf32>
    %cst_93 = arith.constant dense<0xFF800000> : vector<8xf32>
    %369 = vector.multi_reduction <maximumf>, %368, %cst_93 [1] : vector<8x8xf32> to vector<8xf32>
    %370 = vector.shape_cast %369 : vector<8xf32> to vector<8x1xf32>
    %371 = vector.broadcast %370 : vector<8x1xf32> to vector<8x8xf32>
    %372 = arith.subf %368, %371 : vector<8x8xf32>
    %373 = math.exp %372 : vector<8x8xf32>
    %cst_94 = arith.constant dense<0.000000e+00> : vector<8xf32>
    %374 = vector.multi_reduction <add>, %373, %cst_94 [1] : vector<8x8xf32> to vector<8xf32>
    %375 = vector.shape_cast %374 : vector<8xf32> to vector<8x1xf32>
    %376 = math.log %375 : vector<8x1xf32>
    %377 = vector.broadcast %376 : vector<8x1xf32> to vector<8x8xf32>
    %378 = arith.subf %372, %377 : vector<8x8xf32>
    %379 = vector.broadcast %370 : vector<8x1xf32> to vector<8x8xf32>
    %380 = arith.cmpf oge, %368, %379 : vector<8x8xf32>
    %c8_i32_95 = arith.constant 8 : i32
    %381 = vector.broadcast %c8_i32_95 : i32 to vector<8x8xi32>
    %382 = arith.select %380, %29, %381 : vector<8x8xi1>, vector<8x8xi32>
    %cst_96 = arith.constant dense<2147483647> : vector<8xi32>
    %383 = vector.multi_reduction <minsi>, %382, %cst_96 [1] : vector<8x8xi32> to vector<8xi32>
    %384 = vector.shape_cast %383 : vector<8xi32> to vector<8x1xi32>
    %385 = vector.broadcast %384 : vector<8x1xi32> to vector<8x8xi32>
    %386 = arith.cmpi eq, %29, %385 : vector<8x8xi32>
    %387 = arith.extui %386 : vector<8x8xi1> to vector<8x8xi32>
    %388 = arith.sitofp %387 : vector<8x8xi32> to vector<8x8xf32>
    %389 = arith.mulf %388, %378 : vector<8x8xf32>
    %cst_97 = arith.constant dense<0.000000e+00> : vector<8xf32>
    %390 = vector.multi_reduction <add>, %389, %cst_97 [1] : vector<8x8xf32> to vector<8xf32>
    %391 = vector.shape_cast %390 : vector<8xf32> to vector<8x1xf32>
    %c5_i32 = arith.constant 5 : i32
    %392 = vector.broadcast %c5_i32 : i32 to vector<8x8xi32>
    %393 = arith.cmpi eq, %29, %392 : vector<8x8xi32>
    %394 = arith.extui %393 : vector<8x8xi1> to vector<8x8xi32>
    %395 = vector.broadcast %384 : vector<8x1xi32> to vector<8x8xi32>
    %396 = arith.muli %395, %394 : vector<8x8xi32>
    %397 = arith.addi %333, %396 : vector<8x8xi32>
    %398 = arith.extui %393 : vector<8x8xi1> to vector<8x8xi32>
    %399 = arith.sitofp %398 : vector<8x8xi32> to vector<8x8xf32>
    %400 = vector.broadcast %391 : vector<8x1xf32> to vector<8x8xf32>
    %401 = arith.mulf %400, %399 : vector<8x8xf32>
    %402 = arith.addf %338, %401 : vector<8x8xf32>
    %403 = arith.maximumf %339, %388 : vector<8x8xf32>
    %404 = vector.shape_cast %388 : vector<8x8xf32> to vector<8x8x1xf32>
    %405 = vector.broadcast %404 : vector<8x8x1xf32> to vector<8x8x8xf32>
    %406 = arith.mulf %405, %25 : vector<8x8x8xf32>
    %cst_98 = arith.constant dense<0.000000e+00> : vector<8x8xf32>
    %407 = vector.multi_reduction <add>, %406, %cst_98 [1] : vector<8x8x8xf32> to vector<8x8xf32>
    %408 = arith.mulf %388, %1 : vector<8x8xf32>
    %cst_99 = arith.constant dense<0.000000e+00> : vector<8xf32>
    %409 = vector.multi_reduction <add>, %408, %cst_99 [1] : vector<8x8xf32> to vector<8xf32>
    %410 = vector.shape_cast %409 : vector<8xf32> to vector<8x1xf32>
    %411 = arith.mulf %388, %2 : vector<8x8xf32>
    %cst_100 = arith.constant dense<0.000000e+00> : vector<8xf32>
    %412 = vector.multi_reduction <add>, %411, %cst_100 [1] : vector<8x8xf32> to vector<8xf32>
    %413 = vector.shape_cast %412 : vector<8xf32> to vector<8x1xf32>
    %414 = arith.subf %410, %346 : vector<8x1xf32>
    %415 = arith.mulf %414, %414 : vector<8x1xf32>
    %416 = arith.subf %413, %349 : vector<8x1xf32>
    %417 = arith.mulf %416, %416 : vector<8x1xf32>
    %418 = arith.addf %415, %417 : vector<8x1xf32>
    %419 = math.sqrt %418 : vector<8x1xf32>
    %420 = arith.addf %356, %419 : vector<8x1xf32>
    %421 = arith.addf %28, %407 : vector<8x8xf32>
    %cst_101 = arith.constant 0.176776692 : f32
    %422 = vector.broadcast %cst_101 : f32 to vector<8x8xf32>
    %423 = arith.mulf %421, %422 : vector<8x8xf32>
    %424 = math.tanh %423 : vector<8x8xf32>
    %cst_102 = arith.constant 1.000000e+01 : f32
    %425 = vector.broadcast %cst_102 : f32 to vector<8x8xf32>
    %426 = arith.mulf %425, %424 : vector<8x8xf32>
    %cst_103 = arith.constant 5.000000e-01 : f32
    %427 = vector.broadcast %cst_103 : f32 to vector<8x8xf32>
    %428 = arith.cmpf ogt, %403, %427 : vector<8x8xf32>
    %cst_104 = arith.constant -1.000000e+09 : f32
    %429 = vector.broadcast %cst_104 : f32 to vector<8x8xf32>
    %430 = arith.select %428, %429, %426 : vector<8x8xi1>, vector<8x8xf32>
    %cst_105 = arith.constant 1.000000e+00 : f32
    %431 = vector.broadcast %cst_105 : f32 to vector<8x8xf32>
    %432 = arith.mulf %430, %431 : vector<8x8xf32>
    %cst_106 = arith.constant dense<0xFF800000> : vector<8xf32>
    %433 = vector.multi_reduction <maximumf>, %432, %cst_106 [1] : vector<8x8xf32> to vector<8xf32>
    %434 = vector.shape_cast %433 : vector<8xf32> to vector<8x1xf32>
    %435 = vector.broadcast %434 : vector<8x1xf32> to vector<8x8xf32>
    %436 = arith.subf %432, %435 : vector<8x8xf32>
    %437 = math.exp %436 : vector<8x8xf32>
    %cst_107 = arith.constant dense<0.000000e+00> : vector<8xf32>
    %438 = vector.multi_reduction <add>, %437, %cst_107 [1] : vector<8x8xf32> to vector<8xf32>
    %439 = vector.shape_cast %438 : vector<8xf32> to vector<8x1xf32>
    %440 = math.log %439 : vector<8x1xf32>
    %441 = vector.broadcast %440 : vector<8x1xf32> to vector<8x8xf32>
    %442 = arith.subf %436, %441 : vector<8x8xf32>
    %443 = vector.broadcast %434 : vector<8x1xf32> to vector<8x8xf32>
    %444 = arith.cmpf oge, %432, %443 : vector<8x8xf32>
    %c8_i32_108 = arith.constant 8 : i32
    %445 = vector.broadcast %c8_i32_108 : i32 to vector<8x8xi32>
    %446 = arith.select %444, %29, %445 : vector<8x8xi1>, vector<8x8xi32>
    %cst_109 = arith.constant dense<2147483647> : vector<8xi32>
    %447 = vector.multi_reduction <minsi>, %446, %cst_109 [1] : vector<8x8xi32> to vector<8xi32>
    %448 = vector.shape_cast %447 : vector<8xi32> to vector<8x1xi32>
    %449 = vector.broadcast %448 : vector<8x1xi32> to vector<8x8xi32>
    %450 = arith.cmpi eq, %29, %449 : vector<8x8xi32>
    %451 = arith.extui %450 : vector<8x8xi1> to vector<8x8xi32>
    %452 = arith.sitofp %451 : vector<8x8xi32> to vector<8x8xf32>
    %453 = arith.mulf %452, %442 : vector<8x8xf32>
    %cst_110 = arith.constant dense<0.000000e+00> : vector<8xf32>
    %454 = vector.multi_reduction <add>, %453, %cst_110 [1] : vector<8x8xf32> to vector<8xf32>
    %455 = vector.shape_cast %454 : vector<8xf32> to vector<8x1xf32>
    %c6_i32 = arith.constant 6 : i32
    %456 = vector.broadcast %c6_i32 : i32 to vector<8x8xi32>
    %457 = arith.cmpi eq, %29, %456 : vector<8x8xi32>
    %458 = arith.extui %457 : vector<8x8xi1> to vector<8x8xi32>
    %459 = vector.broadcast %448 : vector<8x1xi32> to vector<8x8xi32>
    %460 = arith.muli %459, %458 : vector<8x8xi32>
    %461 = arith.addi %397, %460 : vector<8x8xi32>
    %462 = arith.extui %457 : vector<8x8xi1> to vector<8x8xi32>
    %463 = arith.sitofp %462 : vector<8x8xi32> to vector<8x8xf32>
    %464 = vector.broadcast %455 : vector<8x1xf32> to vector<8x8xf32>
    %465 = arith.mulf %464, %463 : vector<8x8xf32>
    %466 = arith.addf %402, %465 : vector<8x8xf32>
    %467 = arith.maximumf %403, %452 : vector<8x8xf32>
    %468 = vector.shape_cast %452 : vector<8x8xf32> to vector<8x8x1xf32>
    %469 = vector.broadcast %468 : vector<8x8x1xf32> to vector<8x8x8xf32>
    %470 = arith.mulf %469, %25 : vector<8x8x8xf32>
    %cst_111 = arith.constant dense<0.000000e+00> : vector<8x8xf32>
    %471 = vector.multi_reduction <add>, %470, %cst_111 [1] : vector<8x8x8xf32> to vector<8x8xf32>
    %472 = arith.mulf %452, %1 : vector<8x8xf32>
    %cst_112 = arith.constant dense<0.000000e+00> : vector<8xf32>
    %473 = vector.multi_reduction <add>, %472, %cst_112 [1] : vector<8x8xf32> to vector<8xf32>
    %474 = vector.shape_cast %473 : vector<8xf32> to vector<8x1xf32>
    %475 = arith.mulf %452, %2 : vector<8x8xf32>
    %cst_113 = arith.constant dense<0.000000e+00> : vector<8xf32>
    %476 = vector.multi_reduction <add>, %475, %cst_113 [1] : vector<8x8xf32> to vector<8xf32>
    %477 = vector.shape_cast %476 : vector<8xf32> to vector<8x1xf32>
    %478 = arith.subf %474, %410 : vector<8x1xf32>
    %479 = arith.mulf %478, %478 : vector<8x1xf32>
    %480 = arith.subf %477, %413 : vector<8x1xf32>
    %481 = arith.mulf %480, %480 : vector<8x1xf32>
    %482 = arith.addf %479, %481 : vector<8x1xf32>
    %483 = math.sqrt %482 : vector<8x1xf32>
    %484 = arith.addf %420, %483 : vector<8x1xf32>
    %485 = arith.addf %28, %471 : vector<8x8xf32>
    %cst_114 = arith.constant 0.176776692 : f32
    %486 = vector.broadcast %cst_114 : f32 to vector<8x8xf32>
    %487 = arith.mulf %485, %486 : vector<8x8xf32>
    %488 = math.tanh %487 : vector<8x8xf32>
    %cst_115 = arith.constant 1.000000e+01 : f32
    %489 = vector.broadcast %cst_115 : f32 to vector<8x8xf32>
    %490 = arith.mulf %489, %488 : vector<8x8xf32>
    %cst_116 = arith.constant 5.000000e-01 : f32
    %491 = vector.broadcast %cst_116 : f32 to vector<8x8xf32>
    %492 = arith.cmpf ogt, %467, %491 : vector<8x8xf32>
    %cst_117 = arith.constant -1.000000e+09 : f32
    %493 = vector.broadcast %cst_117 : f32 to vector<8x8xf32>
    %494 = arith.select %492, %493, %490 : vector<8x8xi1>, vector<8x8xf32>
    %cst_118 = arith.constant 1.000000e+00 : f32
    %495 = vector.broadcast %cst_118 : f32 to vector<8x8xf32>
    %496 = arith.mulf %494, %495 : vector<8x8xf32>
    %cst_119 = arith.constant dense<0xFF800000> : vector<8xf32>
    %497 = vector.multi_reduction <maximumf>, %496, %cst_119 [1] : vector<8x8xf32> to vector<8xf32>
    %498 = vector.shape_cast %497 : vector<8xf32> to vector<8x1xf32>
    %499 = vector.broadcast %498 : vector<8x1xf32> to vector<8x8xf32>
    %500 = arith.subf %496, %499 : vector<8x8xf32>
    %501 = math.exp %500 : vector<8x8xf32>
    %cst_120 = arith.constant dense<0.000000e+00> : vector<8xf32>
    %502 = vector.multi_reduction <add>, %501, %cst_120 [1] : vector<8x8xf32> to vector<8xf32>
    %503 = vector.shape_cast %502 : vector<8xf32> to vector<8x1xf32>
    %504 = math.log %503 : vector<8x1xf32>
    %505 = vector.broadcast %504 : vector<8x1xf32> to vector<8x8xf32>
    %506 = arith.subf %500, %505 : vector<8x8xf32>
    %507 = vector.broadcast %498 : vector<8x1xf32> to vector<8x8xf32>
    %508 = arith.cmpf oge, %496, %507 : vector<8x8xf32>
    %c8_i32_121 = arith.constant 8 : i32
    %509 = vector.broadcast %c8_i32_121 : i32 to vector<8x8xi32>
    %510 = arith.select %508, %29, %509 : vector<8x8xi1>, vector<8x8xi32>
    %cst_122 = arith.constant dense<2147483647> : vector<8xi32>
    %511 = vector.multi_reduction <minsi>, %510, %cst_122 [1] : vector<8x8xi32> to vector<8xi32>
    %512 = vector.shape_cast %511 : vector<8xi32> to vector<8x1xi32>
    %513 = vector.broadcast %512 : vector<8x1xi32> to vector<8x8xi32>
    %514 = arith.cmpi eq, %29, %513 : vector<8x8xi32>
    %515 = arith.extui %514 : vector<8x8xi1> to vector<8x8xi32>
    %516 = arith.sitofp %515 : vector<8x8xi32> to vector<8x8xf32>
    %517 = arith.mulf %516, %506 : vector<8x8xf32>
    %cst_123 = arith.constant dense<0.000000e+00> : vector<8xf32>
    %518 = vector.multi_reduction <add>, %517, %cst_123 [1] : vector<8x8xf32> to vector<8xf32>
    %519 = vector.shape_cast %518 : vector<8xf32> to vector<8x1xf32>
    %c7_i32 = arith.constant 7 : i32
    %520 = vector.broadcast %c7_i32 : i32 to vector<8x8xi32>
    %521 = arith.cmpi eq, %29, %520 : vector<8x8xi32>
    %522 = arith.extui %521 : vector<8x8xi1> to vector<8x8xi32>
    %523 = vector.broadcast %512 : vector<8x1xi32> to vector<8x8xi32>
    %524 = arith.muli %523, %522 : vector<8x8xi32>
    %525 = arith.addi %461, %524 : vector<8x8xi32>
    %526 = arith.extui %521 : vector<8x8xi1> to vector<8x8xi32>
    %527 = arith.sitofp %526 : vector<8x8xi32> to vector<8x8xf32>
    %528 = vector.broadcast %519 : vector<8x1xf32> to vector<8x8xf32>
    %529 = arith.mulf %528, %527 : vector<8x8xf32>
    %530 = arith.addf %466, %529 : vector<8x8xf32>
    %531 = arith.mulf %516, %1 : vector<8x8xf32>
    %cst_124 = arith.constant dense<0.000000e+00> : vector<8xf32>
    %532 = vector.multi_reduction <add>, %531, %cst_124 [1] : vector<8x8xf32> to vector<8xf32>
    %533 = vector.shape_cast %532 : vector<8xf32> to vector<8x1xf32>
    %534 = arith.mulf %516, %2 : vector<8x8xf32>
    %cst_125 = arith.constant dense<0.000000e+00> : vector<8xf32>
    %535 = vector.multi_reduction <add>, %534, %cst_125 [1] : vector<8x8xf32> to vector<8xf32>
    %536 = vector.shape_cast %535 : vector<8xf32> to vector<8x1xf32>
    %537 = arith.subf %533, %474 : vector<8x1xf32>
    %538 = arith.mulf %537, %537 : vector<8x1xf32>
    %539 = arith.subf %536, %477 : vector<8x1xf32>
    %540 = arith.mulf %539, %539 : vector<8x1xf32>
    %541 = arith.addf %538, %540 : vector<8x1xf32>
    %542 = math.sqrt %541 : vector<8x1xf32>
    %543 = arith.addf %484, %542 : vector<8x1xf32>
    %544 = arith.subf %533, %30 : vector<8x1xf32>
    %545 = arith.mulf %544, %544 : vector<8x1xf32>
    %546 = arith.subf %536, %31 : vector<8x1xf32>
    %547 = arith.mulf %546, %546 : vector<8x1xf32>
    %548 = arith.addf %545, %547 : vector<8x1xf32>
    %549 = math.sqrt %548 : vector<8x1xf32>
    %550 = arith.addf %543, %549 : vector<8x1xf32>
    %cst_126 = arith.constant 0.000000e+00 : f32
    %551 = vector.broadcast %cst_126 : f32 to vector<8x1xf32>
    %552 = arith.subf %551, %550 : vector<8x1xf32>
    %c0_127 = arith.constant 0 : index
    %c0_128 = arith.constant 0 : index
    %553 = vector.load %arg9[%c0_127, %c0_128] : memref<8x1xf32, #tpu.memory_space<vmem>>, vector<8x1xf32>
    tpu.vector_store %arg9[%c0_127, %c0_128], %552 {strides = array<i32>} : memref<8x1xf32, #tpu.memory_space<vmem>>, vector<8x1xf32>,
    %c0_129 = arith.constant 0 : index
    %c0_130 = arith.constant 0 : index
    %554 = vector.load %arg7[%c0_129, %c0_130] : memref<8x8xi32, #tpu.memory_space<vmem>>, vector<8x8xi32>
    tpu.vector_store %arg7[%c0_129, %c0_130], %525 {strides = array<i32>} : memref<8x8xi32, #tpu.memory_space<vmem>>, vector<8x8xi32>,
    %c0_131 = arith.constant 0 : index
    %c0_132 = arith.constant 0 : index
    %555 = vector.load %arg8[%c0_131, %c0_132] : memref<8x8xf32, #tpu.memory_space<vmem>>, vector<8x8xf32>
    tpu.vector_store %arg8[%c0_131, %c0_132], %530 {strides = array<i32>} : memref<8x8xf32, #tpu.memory_space<vmem>>, vector<8x8xf32>,
    return
  }
}

</mosaic_0001>

<bundles_post_ra>
// kernel: constructive_policy_forward.1
= control target key start
LH: loop header
LB: loop body
LE: loop exit
PB: predicated region body
PF: predicated region fallthrough
CT: control target
= control target key end

     0   :  { %v4687_v0 = vmov 0   ;;  %v3413_v8 = vmov 1   ;;  %v81_v22 = vlaneseq  ;;  %vm160_vm0 = vcmask 261120   ;;  %s4667_s0 = inlined_call_operand.vmem [shape: f32[64,2], index: 0, kind: input, shape index: {}]   ;;  %s4668_s5 = inlined_call_operand.vmem [shape: f32[32,32], index: 5, kind: input, shape index: {}]   ;;  %s4669_s6 = inlined_call_operand.vmem [shape: f32[32,32], index: 6, kind: input, shape index: {}]   ;;  %s4670_s3 = inlined_call_operand.vmem [shape: f32[2,32], index: 3, kind: input, shape index: {}]   ;;  %s4671_s4 = inlined_call_operand.vmem [shape: f32[1,32], index: 4, kind: input, shape index: {}]   ;;  %s4672_s10 = inlined_call_operand.vmem [shape: f32[64,32], index: 10, kind: output, shape index: {3}]   ;;  %s4673_s2 = inlined_call_operand.vmem [shape: f32[8,8], index: 2, kind: input, shape index: {}]   ;;  %s4674_s1 = inlined_call_operand.vmem [shape: f32[8,8], index: 1, kind: input, shape index: {}]   ;;  %s4675_s7 = inlined_call_operand.vmem [shape: s32[8,8], index: 7, kind: output, shape index: {0}]   ;;  %s4676_s9 = inlined_call_operand.vmem [shape: f32[8,1], index: 9, kind: output, shape index: {2}]   ;;  %s4677_s8 = inlined_call_operand.vmem [shape: f32[8,8], index: 8, kind: output, shape index: {1}]  }
   0x1   :  { %3217 = vset.pattern.permute.xlu1 %v4687_v0  ;;  %3215 = vset.pattern.permute.xlu0 %v4687_v0  ;;  %v31_v1 = vld [vmem:[%s4667_s0 + $0x8] sm:$0xff]  ;;  %v30_v2 = vld [vmem:[%s4667_s0] sm:$0xff]  ;;  %v171_v10 = vld [vmem:[%s4668_s5 + $0x10] sm:$0xff]  ;;  %vm3415_vm1 = vmmov 0   ;;  %vm1019_vm2 = vcmask 64512   ;;  %vm1135_vm3 = vcmask 1041409  }
   0x2   :  { %48 = vperm.xlu1 %3217, %v31_v1   ;;  %43 = vperm.xlu0 %3215, %v30_v2   ;;  %v169_v3 = vld [vmem:[%s4668_s5] sm:$0xff]  ;;  %v170_v4 = vld [vmem:[%s4668_s5 + $0x8] sm:$0xff]  ;;  %v172_v11 = vld [vmem:[%s4668_s5 + $0x18] sm:$0xff]  ;;  %v3523_v23 = vshrl.u32 %v81_v22, 7  ;;  %vm1137_vm4 = vcmask 1042434   ;;  %vm1139_vm5 = vcmask 1043459  }
   0x3   :  { %v302_v5 = vld [vmem:[%s4669_s6] sm:$0xff]  ;;  %v3195_v6 = vpack.c.bf16 %v170_v4, %v169_v3  ;;  %v303_v7 = vld [vmem:[%s4669_s6 + $0x8] sm:$0xff]  ;;  %v304_v12 = vld [vmem:[%s4669_s6 + $0x10] sm:$0xff]  ;;  %v3199_v14 = vpack.c.bf16 %v172_v11, %v171_v10  ;;  %vm1141_vm6 = vcmask 1044484   ;;  %vm1143_vm7 = vcmask 1045509  }
   0x4   :  { %v3203_v9 = vpack.c.bf16 %v303_v7, %v302_v5  ;;  %v32_v13 = vld [vmem:[%s4667_s0 + $0x10] sm:$0xff]  ;;  %v305_v15 = vld [vmem:[%s4669_s6 + $0x18] sm:$0xff]  ;;  %v34_v18 = vld [vmem:[%s4667_s0 + $0x20] sm:$0xff]  ;;  %v3526_v24 = vsub.s32 0, %v3523_v23  ;;  %v3529_v25 = vsub.s32 1, %v3523_v23  ;;  %vm1145_vm8 = vcmask 1046534  }
   0x5   :  { %3196 = vmatprep.subr.bf16.mxu0 %v3195_v6  ;;  %v3207_v16 = vpack.c.bf16 %v305_v15, %v304_v12  ;;  %v33_v17 = vld [vmem:[%s4667_s0 + $0x18] sm:$0xff]  ;;  %v35_v19 = vld [vmem:[%s4667_s0 + $0x28] sm:$0xff]  ;;  %v36_v20 = vld [vmem:[%s4667_s0 + $0x30] sm:$0xff]  ;;  %v4685_v15 = vmov 0.0   ;;  %vm1147_vm9 = vcmask 1047559  }
   0x6   :  { %3218 = vset.pattern.permute.xlu1 %v3413_v8  ;;  %3216 = vset.pattern.permute.xlu0 %v3413_v8  ;;  %v37_v21 = vld [vmem:[%s4667_s0 + $0x38] sm:$0xff]  ;;  %v40_v26 = vld [vmem:[%s4670_s3] sm:$0x3] }
   0x7   :  { %98 = vperm.xlu1 %3218, %v31_v1   ;;  %94 = vperm.xlu0 %3216, %v30_v2   ;;  %v3535_v29 = vrot.slane %v40_v26, %v3526_v24  ;;  %v3538_v30 = vrot.slane %v40_v26, %v3529_v25  ;;  %v3547_v37 = vld [vmem:[%s4671_s4] ss:$0 sm:$0xff] }
   0x8   :  { %3204 = vmatprep.subr.bf16.mxu1 %v3203_v9  ;;  %3198 = vmatpush3.bf16.msra.mxu0 %v3195_v6 }
   0x9   :  { %3206 = vmatpush3.bf16.msra.mxu1 %v3203_v9  ;;  %3200 = vmatprep.subr.bf16.mxu0 %v3199_v14 }
   0xa   :  { %3208 = vmatprep.subr.bf16.mxu1 %v3207_v16 }
   0xb   :  { %3219 = vset.pattern.permute.xlu1 %v4687_v0  ;;  %102 = vperm.xlu0 %3216, %v32_v13  }
   0xc   :  { %53 = vperm.xlu1 %3219, %v32_v13   ;;  %3202 = vmatpush3.bf16.msra.mxu0 %v3199_v14 }
   0xd   :  { %3210 = vmatpush3.bf16.msra.mxu1 %v3207_v16  ;;  %3155 = vmatprep.subr.mxu0 %v4685_v15 }
   0xe   :  { %3160 = vmatprep.subr.mxu1 %v4685_v15 }
   0xf   :  { %106 = vperm.xlu0 %3216, %v33_v17  }
  0x10   :  { %58 = vperm.xlu1 %3219, %v33_v17  }
  0x13   :  { %110 = vperm.xlu0 %3216, %v34_v18  }
  0x14   :  { %63 = vperm.xlu1 %3219, %v34_v18  }
  0x17   :  { %114 = vperm.xlu0 %3216, %v35_v19  }
  0x18   :  { %68 = vperm.xlu1 %3219, %v35_v19  }
  0x1b   :  { %118 = vperm.xlu0 %3216, %v36_v20  }
  0x1c   :  { %73 = vperm.xlu1 %3219, %v36_v20  }
  0x1f   :  { %122 = vperm.xlu0 %3216, %v37_v21  }
  0x20   :  { %78 = vperm.xlu1 %3219, %v37_v21  }
  0x81   :  { %v49_v27 = vpop.permute.xlu1 %48  ;;  %v44_v28 = vpop.permute.xlu0 %43 }
  0x82   :  { %v86_v33 = vmul.f32 %v3535_v29, %v49_v27  ;;  %v85_v34 = vmul.f32 %v3535_v29, %v44_v28 }
  0x86   :  { %v99_v31 = vpop.permute.xlu1 %98  ;;  %v95_v32 = vpop.permute.xlu0 %94 }
  0x87   :  { %v130_v35 = vmul.f32 %v3538_v30, %v99_v31  ;;  %v129_v36 = vmul.f32 %v3538_v30, %v95_v32 }
  0x89   :  { %v138_v38 = vadd.f32 %v130_v35, %v86_v33  ;;  %v137_v39 = vadd.f32 %v129_v36, %v85_v34 }
  0x8a   :  { %v103_v40 = vpop.permute.xlu0 %102 }
  0x8b   :  { %v153_v41 = vadd.f32 %v3547_v37, %v138_v38  ;;  %v131_v42 = vmul.f32 %v3538_v30, %v103_v40  ;;  %v54_v43 = vpop.permute.xlu1 %53  ;;  %v152_v44 = vadd.f32 %v3547_v37, %v137_v39 }
  0x8c   :  { %v87_v45 = vmul.f32 %v3535_v29, %v54_v43 }
  0x8d   :  { %162 = vst.msk [vmem:[%s4672_s10 + $0x8] sm:$0xff] %vm160_vm0, %v153_v41  ;;  %161 = vst.msk [vmem:[%s4672_s10] sm:$0xff] %vm160_vm0, %v152_v44  ;;  %3123 = vmatprep.mubr.msk.f32.mxu0 %vm160_vm0, %v152_v44  ;;  %3143 = vmatprep.mubr.msk.f32.mxu1 %vm160_vm0, %v152_v44 }
  0x8e   :  { %v139_v46 = vadd.f32 %v131_v42, %v87_v45  ;;  %3124 = vmatmul.mubr.msk.f32.vlgmr.msra.gmra.mrb[0].mxu0 %vm160_vm0, %v153_v41  ;;  %3144 = vmatmul.mubr.msk.f32.vlgmr.msra.gmra.mrb[0].mxu1 %vm160_vm0, %v153_v41  ;;  %v107_v47 = vpop.permute.xlu0 %106 }
  0x8f   :  { %v132_v48 = vmul.f32 %v3538_v30, %v107_v47  ;;  %v59_v49 = vpop.permute.xlu1 %58 }
  0x90   :  { %v154_v50 = vadd.f32 %v3547_v37, %v139_v46  ;;  %v88_v51 = vmul.f32 %v3535_v29, %v59_v49 }
  0x92   :  { %163 = vst.msk [vmem:[%s4672_s10 + $0x10] sm:$0xff] %vm160_vm0, %v154_v50  ;;  %v140_v52 = vadd.f32 %v132_v48, %v88_v51  ;;  %3126 = vmatprep.mubr.msk.f32.mxu0 %vm160_vm0, %v154_v50  ;;  %3146 = vmatprep.mubr.msk.f32.mxu1 %vm160_vm0, %v154_v50  ;;  %v111_v53 = vpop.permute.xlu0 %110 }
  0x93   :  { %v133_v54 = vmul.f32 %v3538_v30, %v111_v53  ;;  %v64_v55 = vpop.permute.xlu1 %63 }
  0x94   :  { %v155_v56 = vadd.f32 %v3547_v37, %v140_v52  ;;  %v89_v57 = vmul.f32 %v3535_v29, %v64_v55 }
  0x96   :  { %164 = vst.msk [vmem:[%s4672_s10 + $0x18] sm:$0xff] %vm160_vm0, %v155_v56  ;;  %v141_v58 = vadd.f32 %v133_v54, %v89_v57  ;;  %3127 = vmatmul.mubr.msk.f32.gmra.mrb[2].mxu0 %vm160_vm0, %v155_v56  ;;  %3147 = vmatmul.mubr.msk.f32.gmra.mrb[2].mxu1 %vm160_vm0, %v155_v56  ;;  %v115_v59 = vpop.permute.xlu0 %114 }
  0x97   :  { %v134_v60 = vmul.f32 %v3538_v30, %v115_v59  ;;  %v69_v61 = vpop.permute.xlu1 %68 }
  0x98   :  { %v156_v62 = vadd.f32 %v3547_v37, %v141_v58  ;;  %v90_v63 = vmul.f32 %v3535_v29, %v69_v61 }
  0x9a   :  { %165 = vst.msk [vmem:[%s4672_s10 + $0x20] sm:$0xff] %vm160_vm0, %v156_v62  ;;  %v142_v1 = vadd.f32 %v134_v60, %v90_v63  ;;  %3129 = vmatprep.mubr.msk.f32.mxu0 %vm160_vm0, %v156_v62  ;;  %3149 = vmatprep.mubr.msk.f32.mxu1 %vm160_vm0, %v156_v62  ;;  %v119_v2 = vpop.permute.xlu0 %118 }
  0x9b   :  { %v135_v3 = vmul.f32 %v3538_v30, %v119_v2  ;;  %v74_v4 = vpop.permute.xlu1 %73 }
  0x9c   :  { %v157_v5 = vadd.f32 %v3547_v37, %v142_v1  ;;  %v91_v6 = vmul.f32 %v3535_v29, %v74_v4 }
  0x9e   :  { %166 = vst.msk [vmem:[%s4672_s10 + $0x28] sm:$0xff] %vm160_vm0, %v157_v5  ;;  %v143_v7 = vadd.f32 %v135_v3, %v91_v6  ;;  %3130 = vmatmul.mubr.msk.f32.gmra.mrb[4].mxu0 %vm160_vm0, %v157_v5  ;;  %3150 = vmatmul.mubr.msk.f32.gmra.mrb[4].mxu1 %vm160_vm0, %v157_v5  ;;  %v123_v8 = vpop.permute.xlu0 %122 }
  0x9f   :  { %v136_v9 = vmul.f32 %v3538_v30, %v123_v8  ;;  %v79_v10 = vpop.permute.xlu1 %78 }
  0xa0   :  { %v158_v11 = vadd.f32 %v3547_v37, %v143_v7  ;;  %v92_v12 = vmul.f32 %v3535_v29, %v79_v10 }
  0xa2   :  { %167 = vst.msk [vmem:[%s4672_s10 + $0x30] sm:$0xff] %vm160_vm0, %v158_v11  ;;  %v144_v13 = vadd.f32 %v136_v9, %v92_v12  ;;  %3132 = vmatprep.mubr.msk.f32.mxu0 %vm160_vm0, %v158_v11  ;;  %3152 = vmatprep.mubr.msk.f32.mxu1 %vm160_vm0, %v158_v11 }
  0xa4   :  { %v159_v14 = vadd.f32 %v3547_v37, %v144_v13 }
  0xa6   :  { %168 = vst.msk [vmem:[%s4672_s10 + $0x38] sm:$0xff] %vm160_vm0, %v159_v14  ;;  %3133 = vmatmul.mubr.msk.f32.gmra.mrb[6].mxu0 %vm160_vm0, %v159_v14  ;;  %3153 = vmatmul.mubr.msk.f32.gmra.mrb[6].mxu1 %vm160_vm0, %v159_v14 }
  0xa7   :  { %3162 = vmatprep.mubr.msk.f32.mxu1 %vm3415_vm1, %v4685_v15  ;;  %3157 = vmatprep.mubr.msk.f32.mxu0 %vm3415_vm1, %v4685_v15 }
 0x161   :  { %v3125_v16 = vpop.f32.mrb[0].mxu0  ;;  %v3145_v17 = vpop.f32.mrb[0].mxu1 }
 0x162   :  { %v263_v18 = vpop.f32.mrb[1].mxu0  ;;  %v372_v19 = vpop.f32.mrb[1].mxu1  ;;  %3161 = vmatpush3.xpose.msk.msra.mxu1 %vm160_vm0, %v3125_v16 }
 0x163   :  { %3156 = vmatpush3.xpose.msk.msra.mxu0 %vm160_vm0, %v263_v18  ;;  %3170 = vmatprep.subr.mxu1 %v4685_v15 }
 0x164   :  { %3165 = vmatprep.subr.mxu0 %v4685_v15 }
 0x165   :  { %3163 = vmatmul.mubr.msk.f32.vlgmr.msra.gmra.mrb[8].mxu1 %vm160_vm0, %v3145_v17 }
 0x166   :  { %3158 = vmatmul.mubr.msk.f32.vlgmr.msra.gmra.mrb[8].mxu0 %vm160_vm0, %v372_v19  ;;  %3172 = vmatprep.mubr.msk.f32.mxu1 %vm3415_vm1, %v4685_v15 }
 0x167   :  { %3167 = vmatprep.mubr.msk.f32.mxu0 %vm3415_vm1, %v4685_v15 }
 0x169   :  { %v3128_v20 = vpop.f32.mrb[2].mxu0  ;;  %v3148_v21 = vpop.f32.mrb[2].mxu1 }
 0x16a   :  { %v273_v26 = vpop.f32.mrb[3].mxu0  ;;  %v382_v27 = vpop.f32.mrb[3].mxu1  ;;  %3171 = vmatpush3.xpose.msk.msra.mxu1 %vm160_vm0, %v3128_v20 }
 0x16b   :  { %3166 = vmatpush3.xpose.msk.msra.mxu0 %vm160_vm0, %v273_v26  ;;  %3180 = vmatprep.subr.mxu1 %v4685_v15 }
 0x16c   :  { %3175 = vmatprep.subr.mxu0 %v4685_v15 }
 0x16d   :  { %3173 = vmatmul.mubr.msk.f32.vlgmr.msra.gmra.mrb[10].mxu1 %vm160_vm0, %v3148_v21 }
 0x16e   :  { %3168 = vmatmul.mubr.msk.f32.vlgmr.msra.gmra.mrb[10].mxu0 %vm160_vm0, %v382_v27  ;;  %3182 = vmatprep.mubr.msk.f32.mxu1 %vm3415_vm1, %v4685_v15 }
 0x16f   :  { %3177 = vmatprep.mubr.msk.f32.mxu0 %vm3415_vm1, %v4685_v15 }
 0x171   :  { %v3131_v28 = vpop.f32.mrb[4].mxu0  ;;  %v3151_v29 = vpop.f32.mrb[4].mxu1 }
 0x172   :  { %v283_v30 = vpop.f32.mrb[5].mxu0  ;;  %v392_v31 = vpop.f32.mrb[5].mxu1  ;;  %3181 = vmatpush3.xpose.msk.msra.mxu1 %vm160_vm0, %v3131_v28 }
 0x173   :  { %3176 = vmatpush3.xpose.msk.msra.mxu0 %vm160_vm0, %v283_v30  ;;  %3190 = vmatprep.subr.mxu1 %v4685_v15 }
 0x174   :  { %3185 = vmatprep.subr.mxu0 %v4685_v15 }
 0x175   :  { %3183 = vmatmul.mubr.msk.f32.vlgmr.msra.gmra.mrb[12].mxu1 %vm160_vm0, %v3151_v29 }
 0x176   :  { %3178 = vmatmul.mubr.msk.f32.vlgmr.msra.gmra.mrb[12].mxu0 %vm160_vm0, %v392_v31  ;;  %3192 = vmatprep.mubr.msk.f32.mxu1 %vm3415_vm1, %v4685_v15 }
 0x177   :  { %3187 = vmatprep.mubr.msk.f32.mxu0 %vm3415_vm1, %v4685_v15 }
 0x179   :  { %v3134_v32 = vpop.f32.mrb[6].mxu0  ;;  %v3154_v33 = vpop.f32.mrb[6].mxu1 }
 0x17a   :  { %v293_v34 = vpop.f32.mrb[7].mxu0  ;;  %v402_v35 = vpop.f32.mrb[7].mxu1  ;;  %3191 = vmatpush3.xpose.msk.msra.mxu1 %vm160_vm0, %v3134_v32 }
 0x17b   :  { %3186 = vmatpush3.xpose.msk.msra.mxu0 %vm160_vm0, %v293_v34 }
 0x17d   :  { %3193 = vmatmul.mubr.msk.f32.vlgmr.msra.gmra.mrb[14].mxu1 %vm160_vm0, %v3154_v33 }
 0x17e   :  { %3188 = vmatmul.mubr.msk.f32.vlgmr.msra.gmra.mrb[14].mxu0 %vm160_vm0, %v402_v35 }
 0x238   :  { %v3657_v36 = vpop.f32.mrb[8].mxu1 }
 0x239   :  { %v1027_v37 = vsel %vm1019_vm2, %v3657_v36, 0.0  ;;  %v3661_v38 = vpop.f32.mrb[8].mxu0  ;;  %v3164_v39 = vpop.f32.mrb[9].mxu1 }
 0x23a   :  { %v1028_v40 = vrot.slane %v1027_v37, 4  ;;  %v1020_v41 = vsel %vm1019_vm2, %v3661_v38, 0.0  ;;  %v3159_v42 = vpop.f32.mrb[9].mxu0 }
 0x23b   :  { %v1021_v43 = vrot.slane %v1020_v41, 4 }
 0x23c   :  { %v1029_v44 = vadd.f32 %v1028_v40, %v1027_v37 }
 0x23d   :  { %v1022_v45 = vadd.f32 %v1021_v43, %v1020_v41 }
 0x23e   :  { %v1030_v46 = vrot.slane %v1029_v44, 2 }
 0x23f   :  { %v1023_v47 = vrot.slane %v1022_v45, 2 }
 0x240   :  { %v3665_v48 = vpop.f32.mrb[10].mxu1  ;;  %v1031_v49 = vadd.f32 %v1030_v46, %v1029_v44 }
 0x241   :  { %v1041_v50 = vsel %vm1019_vm2, %v3665_v48, 0.0  ;;  %v3669_v51 = vpop.f32.mrb[10].mxu0  ;;  %v3174_v52 = vpop.f32.mrb[11].mxu1  ;;  %v1024_v53 = vadd.f32 %v1023_v47, %v1022_v45 }
 0x242   :  { %v1042_v54 = vrot.slane %v1041_v50, 4  ;;  %v1034_v55 = vsel %vm1019_vm2, %v3669_v51, 0.0  ;;  %v3169_v56 = vpop.f32.mrb[11].mxu0  ;;  %v1032_v59 = vrot.slane %v1031_v49, 1 }
 0x243   :  { %v1035_v57 = vrot.slane %v1034_v55, 4  ;;  %v1025_v61 = vrot.slane %v1024_v53, 1 }
 0x244   :  { %v1043_v58 = vadd.f32 %v1042_v54, %v1041_v50  ;;  %v1033_v3 = vadd.f32 %v1032_v59, %v1031_v49 }
 0x245   :  { %v1036_v60 = vadd.f32 %v1035_v57, %v1034_v55  ;;  %v1026_v8 = vadd.f32 %v1025_v61, %v1024_v53 }
 0x246   :  { %v1044_v62 = vrot.slane %v1043_v58, 2  ;;  %v3681_v17 = vmul.f32 0.125, %v1033_v3 }
 0x247   :  { %v1037_v63 = vrot.slane %v1036_v60, 2  ;;  %v3683_v20 = vmul.f32 0.125, %v1026_v8 }
 0x248   :  { %v1045_v1 = vadd.f32 %v1044_v62, %v1043_v58  ;;  %v3673_v2 = vpop.f32.mrb[12].mxu1  ;;  %v1095_v35 = vmul.f32 0.17677669, %v3681_v17 }
 0x249   :  { %v1038_v4 = vadd.f32 %v1037_v63, %v1036_v60  ;;  %v1055_v5 = vsel %vm1019_vm2, %v3673_v2, 0.0  ;;  %v3677_v6 = vpop.f32.mrb[12].mxu0  ;;  %v3184_v7 = vpop.f32.mrb[13].mxu1  ;;  %v1094_v42 = vmul.f32 0.17677669, %v3683_v20 }
 0x24a   :  { %v1056_v9 = vrot.slane %v1055_v5, 4  ;;  %v1048_v10 = vsel %vm1019_vm2, %v3677_v6, 0.0  ;;  %v3179_v11 = vpop.f32.mrb[13].mxu0  ;;  %v1046_v14 = vrot.slane %v1045_v1, 1  ;;  %3220 = vtanh.f32 %v1095_v35 }
 0x24b   :  { %v1039_v12 = vrot.slane %v1038_v4, 1  ;;  %v1049_v13 = vrot.slane %v1048_v10, 4  ;;  %3222 = vtanh.f32 %v1094_v42 }
 0x24c   :  { %v1057_v16 = vadd.f32 %v1056_v9, %v1055_v5  ;;  %v1047_v28 = vadd.f32 %v1046_v14, %v1045_v1 }
 0x24d   :  { %v1040_v18 = vadd.f32 %v1039_v12, %v1038_v4  ;;  %v1050_v19 = vadd.f32 %v1049_v13, %v1048_v10 }
 0x24e   :  { %v1058_v21 = vrot.slane %v1057_v16, 2  ;;  %v3698_v46 = vmul.f32 0.125, %v1047_v28 }
 0x24f   :  { %v3685_v26 = vmul.f32 0.125, %v1040_v18  ;;  %v1051_v27 = vrot.slane %v1050_v19, 2 }
 0x250   :  { %v1059_v29 = vadd.f32 %v1058_v21, %v1057_v16  ;;  %v3687_v30 = vpop.f32.mrb[14].mxu1  ;;  %v1097_v58 = vmul.f32 0.17677669, %v3698_v46 }
 0x251   :  { %v1052_v31 = vadd.f32 %v1051_v27, %v1050_v19  ;;  %v1069_v32 = vsel %vm1019_vm2, %v3687_v30, 0.0  ;;  %v3691_v33 = vpop.f32.mrb[14].mxu0  ;;  %v3194_v34 = vpop.f32.mrb[15].mxu1  ;;  %v1096_v45 = vmul.f32 0.17677669, %v3685_v26 }
 0x252   :  { %v1060_v37 = vrot.slane %v1059_v29, 1  ;;  %v1070_v39 = vrot.slane %v1069_v32, 4  ;;  %v1062_v40 = vsel %vm1019_vm2, %v3691_v33, 0.0  ;;  %v3189_v41 = vpop.f32.mrb[15].mxu0 }
 0x253   :  { %v1053_v43 = vrot.slane %v1052_v31, 1  ;;  %v1063_v44 = vrot.slane %v1062_v40, 4  ;;  %3224 = vtanh.f32 %v1096_v45 }
 0x254   :  { %v1061_v47 = vadd.f32 %v1060_v37, %v1059_v29  ;;  %v1071_v49 = vadd.f32 %v1070_v39, %v1069_v32  ;;  %v3221_v5 = vpop.eup %3220 }
 0x255   :  { %v1054_v50 = vadd.f32 %v1053_v43, %v1052_v31  ;;  %v1064_v52 = vadd.f32 %v1063_v44, %v1062_v40  ;;  %v3223_v8 = vpop.eup %3222  ;;  %v3715_v13 = vmul.f32 10.0, %v3221_v5 }
 0x256   :  { %v1072_v53 = vrot.slane %v1071_v49, 2  ;;  %v3702_v56 = vmul.f32 0.125, %v1061_v47  ;;  %v3713_v12 = vmul.f32 10.0, %v3223_v8 }
 0x257   :  { %v3700_v54 = vmul.f32 0.125, %v1054_v50  ;;  %v1065_v55 = vrot.slane %v1064_v52, 2 }
 0x258   :  { %v1073_v57 = vadd.f32 %v1072_v53, %v1071_v49  ;;  %v1099_v1 = vmul.f32 0.17677669, %v3702_v56  ;;  %v1136_v19 = vsel %vm1135_vm3, %v3715_v13, %v3713_v12 }
 0x259   :  { %v1066_v59 = vadd.f32 %v1065_v55, %v1064_v52  ;;  %v1098_v60 = vmul.f32 0.17677669, %v3700_v54 }
 0x25a   :  { %v1074_v61 = vrot.slane %v1073_v57, 1 }
 0x25b   :  { %v1067_v62 = vrot.slane %v1066_v59, 1  ;;  %3226 = vtanh.f32 %v1098_v60 }
 0x25c   :  { %v1075_v63 = vadd.f32 %v1074_v61, %v1073_v57  ;;  %3228 = vtanh.f32 %v1097_v58  ;;  %v3754_v57 = vand.u32 127, %v81_v22 }
 0x25d   :  { %v1068_v3 = vadd.f32 %v1067_v62, %v1066_v59  ;;  %3230 = vtanh.f32 %v1099_v1  ;;  %v3225_v10 = vpop.eup %3224 }
 0x25e   :  { %v3707_v4 = vmul.f32 0.125, %v1075_v63  ;;  %v3717_v14 = vmul.f32 10.0, %v3225_v10 }
 0x25f   :  { %v3709_v7 = vmul.f32 0.125, %v1068_v3 }
 0x260   :  { %v1101_v9 = vmul.f32 0.17677669, %v3707_v4  ;;  %v1138_v27 = vsel %vm1137_vm4, %v3717_v14, %v1136_v19 }
 0x261   :  { %v1100_v11 = vmul.f32 0.17677669, %v3709_v7 }
 0x262   :  { %3232 = vtanh.f32 %v1101_v9 }
 0x263   :  { %3234 = vtanh.f32 %v1100_v11 }
 0x265   :  { %v3227_v16 = vpop.eup %3226 }
 0x266   :  { %v3229_v18 = vpop.eup %3228  ;;  %v3722_v21 = vmul.f32 10.0, %v3227_v16 }
 0x267   :  { %v3726_v28 = vmul.f32 10.0, %v3229_v18  ;;  %v3231_v29 = vpop.eup %3230 }
 0x268   :  { %4716 = vst [vmem:[#allocation2_spill] sm:$0xff] %v3722_v21  ;;  %v3732_v37 = vmul.f32 10.0, %v3231_v29 }
 0x269   :  { %4717 = vst [vmem:[#allocation3_spill] sm:$0xff] %v3726_v28  ;;  %v1140_v31 = vsel %vm1139_vm5, %v3726_v28, %v1138_v27 }
 0x26a   :  { %v1142_v34 = vsel %vm1141_vm6, %v3722_v21, %v1140_v31  ;;  %4718 = vst [vmem:[#allocation4_spill] sm:$0xff] %v3732_v37 }
 0x26b   :  { %v1144_v41 = vsel %vm1143_vm7, %v3732_v37, %v1142_v34 }
 0x26c   :  { %v3233_v32 = vpop.eup %3232 }
 0x26d   :  { %v3235_v35 = vpop.eup %3234  ;;  %v3736_v40 = vmul.f32 10.0, %v3233_v32 }
 0x26e   :  { %v3734_v39 = vmul.f32 10.0, %v3235_v35 }
 0x26f   :  { %4720 = vst [vmem:[#allocation6_spill] sm:$0xff] %v3736_v40 }
 0x270   :  { %4719 = vst [vmem:[#allocation5_spill] sm:$0xff] %v3734_v39  ;;  %v1146_v42 = vsel %vm1145_vm8, %v3734_v39, %v1144_v41 }
 0x271   :  { %v1148_v43 = vsel %vm1147_vm9, %v3736_v40, %v1146_v42 }
 0x272   :  { %v1150_v44 = vsel %vm1019_vm2, %v1148_v43, -inf }
 0x273   :  { %1151 = vmax.xlane.f32.xlu1 %v1150_v44 }
 0x300   :  { %v3745_v45 = vpop.xlane.xlu1 %1151 }
 0x301   :  { %v4684_v47 = vrot.slane %v3745_v45, 1  ;;  %v4683_v49 = vrot.slane %v3745_v45, 2  ;;  %v4682_v50 = vrot.slane %v3745_v45, 3  ;;  %v4681_v52 = vrot.slane %v3745_v45, 4 }
 0x302   :  { %v4680_v53 = vrot.slane %v3745_v45, 5  ;;  %v4679_v55 = vrot.slane %v3745_v45, 6  ;;  %v4678_v58 = vrot.slane %v3745_v45, 7  ;;  %vm1245_vm14 = vcmp.ge.f32.partialorder %v3713_v12, %v3745_v45 }
 0x303   :  { %vm1246_vm10 = vcmp.ge.f32.partialorder %v3715_v13, %v4684_v47  ;;  %vm1247_vm11 = vcmp.ge.f32.partialorder %v3717_v14, %v4683_v49  ;;  %vm3766_vm12 = vcmp.ge.f32.partialorder %v3726_v28, %v4682_v50  ;;  %vm3773_vm13 = vcmp.ge.f32.partialorder %v3722_v21, %v4681_v52 }
 0x304   :  { %vm3782_vm15 = vcmp.ge.f32.partialorder %v3732_v37, %v4680_v53  ;;  %v1254_v61 = vsel %vm1246_vm10, %v3754_v57, 8  ;;  %vm3790_vm0 = vcmp.ge.f32.partialorder %v3734_v39, %v4679_v55  ;;  %v1255_v63 = vsel %vm1247_vm11, %v3754_v57, 8 }
 0x305   :  { %v1256_v1 = vsel %vm3766_vm12, %v3754_v57, 8  ;;  %vm3801_vm1 = vcmp.ge.f32.partialorder %v3736_v40, %v4678_v58  ;;  %v1257_v5 = vsel %vm3773_vm13, %v3754_v57, 8  ;;  %v1261_v8 = vrot.slane %v1254_v61, 7 }
 0x306   :  { %v1263_v9 = vrot.slane %v1255_v63, 6  ;;  %v1253_v10 = vsel %vm1245_vm14, %v3754_v57, 8  ;;  %v1258_v11 = vsel %vm3782_vm15, %v3754_v57, 8  ;;  %v1259_v16 = vsel %vm3790_vm0, %v3754_v57, 8 }
 0x307   :  { %v1262_v18 = vsel %vm1135_vm3, %v1261_v8, %v1253_v10  ;;  %v1265_v19 = vrot.slane %v1256_v1, 5  ;;  %v1260_v27 = vsel %vm3801_vm1, %v3754_v57, 8  ;;  %v1267_v31 = vrot.slane %v1257_v5, 4 }
 0x308   :  { %v1264_v29 = vsel %vm1137_vm4, %v1263_v9, %v1262_v18  ;;  %v1269_v34 = vrot.slane %v1258_v11, 3  ;;  %v1271_v41 = vrot.slane %v1259_v16, 2  ;;  %v1273_v43 = vrot.slane %v1260_v27, 1 }
 0x309   :  { %v1266_v32 = vsel %vm1139_vm5, %v1265_v19, %v1264_v29  ;;  %v3838_v27 = vsub.s32 4, %v3523_v23  ;;  %v3841_v29 = vsub.s32 2, %v3523_v23  ;;  %vm1554_vm15 = vcmp.eq.s32.totalorder %v3754_v57, 1 }
 0x30a   :  { %v1268_v35 = vsel %vm1141_vm6, %v1267_v31, %v1266_v32  ;;  %vm1320_vm0 = vcmp.eq.s32.totalorder %v3754_v57, 0 }
 0x30b   :  { %v1270_v42 = vsel %vm1143_vm7, %v1269_v34, %v1268_v35  ;;  %v3848_v34 = vsub.s32 6, %v3523_v23  ;;  %v3851_v35 = vsub.s32 3, %v3523_v23 }
 0x30c   :  { %v1272_v44 = vsel %vm1145_vm8, %v1271_v41, %v1270_v42 }
 0x30d   :  { %v1274_v59 = vsel %vm1147_vm9, %v1273_v43, %v1272_v44  ;;  %v3858_v43 = vsub.s32 5, %v3523_v23 }
 0x30e   :  { %v1275_v22 = vsel %vm1019_vm2, %v1274_v59, 2147483647  ;;  %v3863_v59 = vsub.s32 7, %v3523_v23 }
 0x30f   :  { %v1277_v60 = vshra.s32 %v1275_v22, 16  ;;  %v1276_v62 = vand.u32 65535, %v1275_v22 }
 0x311   :  { %v1279_v61 = vcvt.s32.f32 %v1277_v60  ;;  %v1278_v1 = vcvt.s32.f32 %v1276_v62 }
 0x313   :  { %1280 = vmin.xlane.f32.xlu0 %v1279_v61 }
 0x3a0   :  { %v1281_v63 = vpop.xlane.xlu0 %1280 }
 0x3a1   :  { %vm1282_vm10 = vcmp.eq.f32.partialorder %v1279_v61, %v1281_v63  ;;  %v1287_v5 = vcvt.f32.s32 %v1281_v63 }
 0x3a2   :  { %v1283_v3 = vsel %vm1282_vm10, %v1278_v1, inf }
 0x3a3   :  { %1284 = vmin.xlane.f32.xlu0 %v1283_v3  ;;  %v1288_v9 = vshll.u32 %v1287_v5, 16 }
 0x430   :  { %v1285_v8 = vpop.xlane.xlu0 %1284 }
 0x431   :  { %v1286_v10 = vcvt.f32.s32 %v1285_v8 }
 0x433   :  { %v3826_v11 = vadd.s32 %v1288_v9, %v1286_v10 }
 0x435   :  { %vm1290_vm11 = vcmp.eq.s32.totalorder %v3754_v57, %v3826_v11 }
 0x436   :  { %v3831_v16 = vsel %vm1290_vm11, 1.0, %v4685_v15 }
 0x437   :  { %4731 = vst [vmem:[#allocation7_spill] sm:$0xff] %v3831_v16  ;;  %v1337_v18 = vrot.slane %v3831_v16, %v3529_v25  ;;  %v1330_v19 = vrot.slane %v3831_v16, %v3526_v24  ;;  %v1358_v31 = vrot.slane %v3831_v16, %v3838_v27  ;;  %v1344_v32 = vrot.slane %v3831_v16, %v3841_v29 }
 0x438   :  { %v1372_v41 = vrot.slane %v3831_v16, %v3848_v34  ;;  %v1351_v42 = vrot.slane %v3831_v16, %v3851_v35  ;;  %v1365_v44 = vrot.slane %v3831_v16, %v3858_v43  ;;  %v1379_v22 = vrot.slane %v3831_v16, %v3863_v59 }
 0x439   :  { %1339 = vbcast.lane.b32.xlu0 %v1337_v18, 256  ;;  %1332 = vbcast.lane.b32.xlu1 %v1330_v19, 256 }
 0x43d   :  { %1360 = vbcast.lane.b32.xlu0 %v1358_v31, 256  ;;  %1346 = vbcast.lane.b32.xlu1 %v1344_v32, 256 }
 0x441   :  { %1374 = vbcast.lane.b32.xlu0 %v1372_v41, 256  ;;  %1353 = vbcast.lane.b32.xlu1 %v1351_v42, 256 }
 0x445   :  { %1367 = vbcast.lane.b32.xlu1 %v1365_v44, 256 }
 0x449   :  { %1381 = vbcast.lane.b32.xlu1 %v1379_v22, 256 }
 0x4ab   :  { %v1340_v60 = vpop.permute.xlu0 %1339  ;;  %v1333_v61 = vpop.permute.xlu1 %1332 }
 0x4ac   :  { %v1384_v62 = vmul.f32 %v1340_v60, %v3657_v36  ;;  %v1383_v63 = vmul.f32 %v1333_v61, %v3661_v38 }
 0x4ae   :  { %v1398_v1 = vsel %vm1019_vm2, %v1384_v62, 0.0  ;;  %v1391_v3 = vsel %vm1019_vm2, %v1383_v63, 0.0 }
 0x4af   :  { %v1399_v5 = vrot.slane %v1398_v1, 4  ;;  %v1392_v8 = vrot.slane %v1391_v3, 4  ;;  %v1361_v9 = vpop.permute.xlu0 %1360  ;;  %v1347_v23 = vpop.permute.xlu1 %1346 }
 0x4b0   :  { %v1387_v10 = vmul.f32 %v1361_v9, %v3677_v6  ;;  %v1385_v18 = vmul.f32 %v1347_v23, %v3669_v51 }
 0x4b1   :  { %v1400_v19 = vadd.f32 %v1399_v5, %v1398_v1  ;;  %v1393_v31 = vadd.f32 %v1392_v8, %v1391_v3 }
 0x4b2   :  { %v1419_v32 = vsel %vm1019_vm2, %v1387_v10, 0.0  ;;  %v1405_v41 = vsel %vm1019_vm2, %v1385_v18, 0.0 }
 0x4b3   :  { %v1401_v42 = vrot.slane %v1400_v19, 2  ;;  %v1394_v44 = vrot.slane %v1393_v31, 2  ;;  %v1420_v22 = vrot.slane %v1419_v32, 4  ;;  %v1406_v60 = vrot.slane %v1405_v41, 4  ;;  %v1375_v61 = vpop.permute.xlu0 %1374  ;;  %v1354_v62 = vpop.permute.xlu1 %1353 }
 0x4b4   :  { %v1389_v63 = vmul.f32 %v1375_v61, %v3691_v33  ;;  %v1386_v58 = vmul.f32 %v1354_v62, %v3665_v48 }
 0x4b5   :  { %v1402_v55 = vadd.f32 %v1401_v42, %v1400_v19  ;;  %v1395_v9 = vadd.f32 %v1394_v44, %v1393_v31  ;;  %v1421_v53 = vadd.f32 %v1420_v22, %v1419_v32  ;;  %v1407_v23 = vadd.f32 %v1406_v60, %v1405_v41 }
 0x4b6   :  { %v1433_v1 = vsel %vm1019_vm2, %v1389_v63, 0.0  ;;  %v1412_v3 = vsel %vm1019_vm2, %v1386_v58, 0.0 }
 0x4b7   :  { %v1403_v5 = vrot.slane %v1402_v55, 1  ;;  %v1396_v8 = vrot.slane %v1395_v9, 1  ;;  %v1422_v10 = vrot.slane %v1421_v53, 2  ;;  %v1408_v18 = vrot.slane %v1407_v23, 2  ;;  %v1368_v52 = vpop.permute.xlu1 %1367 }
 0x4b8   :  { %v1434_v50 = vrot.slane %v1433_v1, 4  ;;  %v1413_v49 = vrot.slane %v1412_v3, 4  ;;  %v1388_v47 = vmul.f32 %v1368_v52, %v3673_v2 }
 0x4b9   :  { %v1404_v61 = vadd.f32 %v1403_v5, %v1402_v55  ;;  %v1397_v15 = vadd.f32 %v1396_v8, %v1395_v9  ;;  %v1423_v62 = vadd.f32 %v1422_v10, %v1421_v53  ;;  %v1409_v19 = vadd.f32 %v1408_v18, %v1407_v23 }
 0x4ba   :  { %v1435_v31 = vadd.f32 %v1434_v50, %v1433_v1  ;;  %v1414_v32 = vadd.f32 %v1413_v49, %v1412_v3  ;;  %v1426_v41 = vsel %vm1019_vm2, %v1388_v47, 0.0 }
 0x4bb   :  { %v1469_v42 = vadd.f32 %v1404_v61, %v3681_v17  ;;  %v1468_v58 = vadd.f32 %v1397_v15, %v3683_v20  ;;  %v1424_v44 = vrot.slane %v1423_v62, 1  ;;  %v1410_v22 = vrot.slane %v1409_v19, 1  ;;  %v1382_v60 = vpop.permute.xlu1 %1381 }
 0x4bc   :  { %v1436_v63 = vrot.slane %v1435_v31, 2  ;;  %v1415_v0 = vrot.slane %v1414_v32, 2  ;;  %v1427_v40 = vrot.slane %v1426_v41, 4  ;;  %v1390_v52 = vmul.f32 %v1382_v60, %v3687_v30 }
 0x4bd   :  { %v1477_v55 = vmul.f32 0.17677669, %v1469_v42  ;;  %v1476_v9 = vmul.f32 0.17677669, %v1468_v58  ;;  %v1425_v53 = vadd.f32 %v1424_v44, %v1423_v62  ;;  %v1411_v23 = vadd.f32 %v1410_v22, %v1409_v19 }
 0x4be   :  { %v1437_v50 = vadd.f32 %v1436_v63, %v1435_v31  ;;  %v1416_v49 = vadd.f32 %v1415_v0, %v1414_v32  ;;  %v1428_v1 = vadd.f32 %v1427_v40, %v1426_v41  ;;  %v1440_v47 = vsel %vm1019_vm2, %v1390_v52, 0.0 }
 0x4bf   :  { %3236 = vtanh.f32 %v1477_v55  ;;  %v1472_v15 = vadd.f32 %v1425_v53, %v3700_v54  ;;  %v1470_v3 = vadd.f32 %v1411_v23, %v3685_v26  ;;  %v1441_v5 = vrot.slane %v1440_v47, 4 }
 0x4c0   :  { %3238 = vtanh.f32 %v1476_v9  ;;  %v1438_v8 = vrot.slane %v1437_v50, 1  ;;  %v1417_v10 = vrot.slane %v1416_v49, 1  ;;  %v1429_v18 = vrot.slane %v1428_v1, 2 }
 0x4c1   :  { %v1478_v61 = vmul.f32 0.17677669, %v1470_v3  ;;  %v1442_v42 = vadd.f32 %v1441_v5, %v1440_v47  ;;  %v1480_v31 = vmul.f32 0.17677669, %v1472_v15 }
 0x4c2   :  { %v1439_v58 = vadd.f32 %v1438_v8, %v1437_v50  ;;  %v1418_v62 = vadd.f32 %v1417_v10, %v1416_v49  ;;  %v1430_v19 = vadd.f32 %v1429_v18, %v1428_v1 }
 0x4c3   :  { %v1443_v0 = vrot.slane %v1442_v42, 2  ;;  %3240 = vtanh.f32 %v1478_v61 }
 0x4c4   :  { %v1474_v40 = vadd.f32 %v1439_v58, %v3709_v7  ;;  %v1471_v32 = vadd.f32 %v1418_v62, %v3698_v46  ;;  %v1431_v41 = vrot.slane %v1430_v19, 1  ;;  %3242 = vtanh.f32 %v1480_v31 }
 0x4c5   :  { %v1444_v44 = vadd.f32 %v1443_v0, %v1442_v42 }
 0x4c6   :  { %v1479_v22 = vmul.f32 0.17677669, %v1471_v32  ;;  %v1432_v60 = vadd.f32 %v1431_v41, %v1430_v19  ;;  %v1482_v63 = vmul.f32 0.17677669, %v1474_v40  ;;  %v4690_v32 = vmax.f32 %v3831_v16, 0.0 }
 0x4c7   :  { %v1445_v52 = vrot.slane %v1444_v44, 1 }
 0x4c8   :  { %v1473_v55 = vadd.f32 %v1432_v60, %v3702_v56  ;;  %3244 = vtanh.f32 %v1479_v22  ;;  %vm1500_vm12 = vcmp.gt.f32.partialorder %v4690_v32, 0.5 }
 0x4c9   :  { %v3237_v9 = vpop.eup %3236  ;;  %v1446_v53 = vadd.f32 %v1445_v52, %v1444_v44  ;;  %3246 = vtanh.f32 %v1482_v63 }
 0x4ca   :  { %v3239_v23 = vpop.eup %3238  ;;  %v1493_v50 = vmul.f32 10.0, %v3237_v9  ;;  %v1481_v49 = vmul.f32 0.17677669, %v1473_v55 }
 0x4cb   :  { %v1492_v1 = vmul.f32 10.0, %v3239_v23  ;;  %v1475_v47 = vadd.f32 %v1446_v53, %v3707_v4 }
 0x4cc   :  { %3248 = vtanh.f32 %v1481_v49 }
 0x4cd   :  { %v1483_v15 = vmul.f32 0.17677669, %v1475_v47  ;;  %v1509_v3 = vsel %vm1135_vm3, %v1493_v50, %v1492_v1  ;;  %v3241_v5 = vpop.eup %3240 }
 0x4ce   :  { %v1494_v8 = vmul.f32 10.0, %v3241_v5  ;;  %v3243_v18 = vpop.eup %3242 }
 0x4cf   :  { %3250 = vtanh.f32 %v1483_v15  ;;  %v1496_v62 = vmul.f32 10.0, %v3243_v18 }
 0x4d0   :  { %v1510_v10 = vsel %vm1137_vm4, %v1494_v8, %v1509_v3 }
 0x4d2   :  { %v3245_v61 = vpop.eup %3244 }
 0x4d3   :  { %v1495_v42 = vmul.f32 10.0, %v3245_v61  ;;  %v3247_v58 = vpop.eup %3246 }
 0x4d4   :  { %v1498_v41 = vmul.f32 10.0, %v3247_v58  ;;  %v4734_v58 = vmov 0  }
 0x4d5   :  { %v1511_v31 = vsel %vm1139_vm5, %v1495_v42, %v1510_v10 }
 0x4d6   :  { %v3249_v19 = vpop.eup %3248  ;;  %v1512_v40 = vsel %vm1141_vm6, %v1496_v62, %v1511_v31  ;;  %v1555_v62 = vsel %vm1554_vm15, 1, %v4734_v58  ;;  %v4735_v31 = vmov 0.0  }
 0x4d7   :  { %v1497_v0 = vmul.f32 10.0, %v3249_v19  ;;  %v1321_v19 = vsel %vm1320_vm0, 1, %v4734_v58 }
 0x4d9   :  { %v3251_v44 = vpop.eup %3250  ;;  %v1513_v22 = vsel %vm1143_vm7, %v1497_v0, %v1512_v40 }
 0x4da   :  { %v1499_v60 = vmul.f32 10.0, %v3251_v44  ;;  %v1514_v63 = vsel %vm1145_vm8, %v1498_v41, %v1513_v22  ;;  %v1322_v22 = vmul.u32 %v1321_v19, %v3826_v11 }
 0x4dc   :  { %v1515_v52 = vsel %vm1147_vm9, %v1499_v60, %v1514_v63 }
 0x4dd   :  { %v3901_v55 = vsel %vm1500_vm12, -1e+09, %v1515_v52 }
 0x4de   :  { %4732 = vst [vmem:[#allocation8_spill] sm:$0xff] %v3901_v55  ;;  %v1518_v9 = vsel %vm1019_vm2, %v3901_v55, -inf }
 0x4df   :  { %1519 = vmax.xlane.f32.xlu0 %v1518_v9 }
 0x56c   :  { %v3905_v53 = vpop.xlane.xlu0 %1519 }
 0x56d   :  { %4733 = vst [vmem:[#allocation9_spill] sm:$0xff] %v3905_v53  ;;  %vm1530_vm13 = vcmp.ge.f32.partialorder %v3901_v55, %v3905_v53 }
 0x56e   :  { %v1531_v23 = vsel %vm1530_vm13, %v3754_v57, 8  ;;  %vm1789_vm13 = vcmp.eq.s32.totalorder %v3754_v57, 2 }
 0x56f   :  { %v1532_v50 = vsel %vm1019_vm2, %v1531_v23, 2147483647 }
 0x570   :  { %v1534_v49 = vshra.s32 %v1532_v50, 16  ;;  %v1533_v47 = vand.u32 65535, %v1532_v50 }
 0x572   :  { %v1536_v1 = vcvt.s32.f32 %v1534_v49  ;;  %v1535_v3 = vcvt.s32.f32 %v1533_v47 }
 0x574   :  { %1537 = vmin.xlane.f32.xlu1 %v1536_v1 }
 0x601   :  { %v1538_v15 = vpop.xlane.xlu1 %1537 }
 0x602   :  { %vm1539_vm14 = vcmp.eq.f32.partialorder %v1536_v1, %v1538_v15  ;;  %v1544_v8 = vcvt.f32.s32 %v1538_v15 }
 0x603   :  { %v1540_v5 = vsel %vm1539_vm14, %v1535_v3, inf }
 0x604   :  { %1541 = vmin.xlane.f32.xlu0 %v1540_v5  ;;  %v1545_v18 = vshll.u32 %v1544_v8, 16 }
 0x691   :  { %v1542_v10 = vpop.xlane.xlu0 %1541 }
 0x692   :  { %v1543_v61 = vcvt.f32.s32 %v1542_v10 }
 0x694   :  { %v1546_v42 = vadd.s32 %v1545_v18, %v1543_v61 }
 0x696   :  { %vm1547_vm1 = vcmp.eq.s32.totalorder %v3754_v57, %v1546_v42  ;;  %v1556_v40 = vmul.u32 %v1555_v62, %v1546_v42 }
 0x697   :  { %v3921_v0 = vsel %vm1547_vm1, 1.0, %v4735_v31 }
 0x698   :  { %4736 = vst [vmem:[#allocation10_spill] sm:$0xff] %v3921_v0  ;;  %v1572_v41 = vrot.slane %v3921_v0, %v3529_v25  ;;  %v1565_v44 = vrot.slane %v3921_v0, %v3526_v24  ;;  %v3928_v60 = vadd.s32 %v1556_v40, %v1322_v22  ;;  %v1579_v63 = vrot.slane %v3921_v0, %v3841_v29 }
 0x699   :  { %v1586_v52 = vrot.slane %v3921_v0, %v3851_v35  ;;  %v1593_v9 = vrot.slane %v3921_v0, %v3838_v27  ;;  %v1600_v23 = vrot.slane %v3921_v0, %v3858_v43  ;;  %v1607_v11 = vrot.slane %v3921_v0, %v3848_v34 }
 0x69a   :  { %1574 = vbcast.lane.b32.xlu1 %v1572_v41, 256  ;;  %1567 = vbcast.lane.b32.xlu0 %v1565_v44, 256  ;;  %v1614_v50 = vrot.slane %v3921_v0, %v3863_v59 }
 0x69e   :  { %1581 = vbcast.lane.b32.xlu1 %v1579_v63, 256  ;;  %1588 = vbcast.lane.b32.xlu0 %v1586_v52, 256 }
 0x6a2   :  { %1595 = vbcast.lane.b32.xlu1 %v1593_v9, 256  ;;  %1602 = vbcast.lane.b32.xlu0 %v1600_v23, 256 }
 0x6a6   :  { %1609 = vbcast.lane.b32.xlu1 %v1607_v11, 256  ;;  %1616 = vbcast.lane.b32.xlu0 %v1614_v50, 256 }
 0x70c   :  { %v1575_v49 = vpop.permute.xlu1 %1574  ;;  %v1568_v1 = vpop.permute.xlu0 %1567 }
 0x70d   :  { %v1619_v47 = vmul.f32 %v1575_v49, %v3657_v36  ;;  %v1618_v15 = vmul.f32 %v1568_v1, %v3661_v38 }
 0x70f   :  { %v1633_v3 = vsel %vm1019_vm2, %v1619_v47, 0.0  ;;  %v1626_v5 = vsel %vm1019_vm2, %v1618_v15, 0.0 }
 0x710   :  { %v1634_v8 = vrot.slane %v1633_v3, 4  ;;  %v1627_v10 = vrot.slane %v1626_v5, 4  ;;  %v1582_v18 = vpop.permute.xlu1 %1581  ;;  %v1589_v61 = vpop.permute.xlu0 %1588 }
 0x711   :  { %v1620_v42 = vmul.f32 %v1582_v18, %v3669_v51  ;;  %v1621_v62 = vmul.f32 %v1589_v61, %v3665_v48 }
 0x712   :  { %v1635_v19 = vadd.f32 %v1634_v8, %v1633_v3  ;;  %v1628_v40 = vadd.f32 %v1627_v10, %v1626_v5 }
 0x713   :  { %v1640_v41 = vsel %vm1019_vm2, %v1620_v42, 0.0  ;;  %v1647_v44 = vsel %vm1019_vm2, %v1621_v62, 0.0 }
 0x714   :  { %v1636_v22 = vrot.slane %v1635_v19, 2  ;;  %v1629_v63 = vrot.slane %v1628_v40, 2  ;;  %v1641_v52 = vrot.slane %v1640_v41, 4  ;;  %v1648_v9 = vrot.slane %v1647_v44, 4  ;;  %v1596_v23 = vpop.permute.xlu1 %1595  ;;  %v1603_v11 = vpop.permute.xlu0 %1602 }
 0x715   :  { %v1622_v50 = vmul.f32 %v1596_v23, %v3677_v6  ;;  %v1623_v49 = vmul.f32 %v1603_v11, %v3673_v2 }
 0x716   :  { %v1637_v1 = vadd.f32 %v1636_v22, %v1635_v19  ;;  %v1630_v47 = vadd.f32 %v1629_v63, %v1628_v40  ;;  %v1642_v15 = vadd.f32 %v1641_v52, %v1640_v41  ;;  %v1649_v18 = vadd.f32 %v1648_v9, %v1647_v44 }
 0x717   :  { %v1654_v3 = vsel %vm1019_vm2, %v1622_v50, 0.0  ;;  %v1661_v5 = vsel %vm1019_vm2, %v1623_v49, 0.0 }
 0x718   :  { %v1638_v8 = vrot.slane %v1637_v1, 1  ;;  %v1631_v10 = vrot.slane %v1630_v47, 1  ;;  %v1643_v61 = vrot.slane %v1642_v15, 2  ;;  %v1650_v42 = vrot.slane %v1649_v18, 2  ;;  %v1610_v62 = vpop.permute.xlu1 %1609  ;;  %v1617_v32 = vpop.permute.xlu0 %1616 }
 0x719   :  { %v1655_v55 = vrot.slane %v1654_v3, 4  ;;  %v1662_v53 = vrot.slane %v1661_v5, 4  ;;  %v1624_v23 = vmul.f32 %v1610_v62, %v3691_v33  ;;  %v1625_v11 = vmul.f32 %v1617_v32, %v3687_v30 }
 0x71a   :  { %v1639_v19 = vadd.f32 %v1638_v8, %v1637_v1  ;;  %v1632_v40 = vadd.f32 %v1631_v10, %v1630_v47  ;;  %v1644_v41 = vadd.f32 %v1643_v61, %v1642_v15  ;;  %v1651_v44 = vadd.f32 %v1650_v42, %v1649_v18 }
 0x71b   :  { %v1656_v22 = vadd.f32 %v1655_v55, %v1654_v3  ;;  %v1663_v63 = vadd.f32 %v1662_v53, %v1661_v5  ;;  %v1668_v52 = vsel %vm1019_vm2, %v1624_v23, 0.0  ;;  %v1675_v9 = vsel %vm1019_vm2, %v1625_v11, 0.0 }
 0x71c   :  { %v1704_v50 = vadd.f32 %v1639_v19, %v3681_v17  ;;  %v1703_v49 = vadd.f32 %v1632_v40, %v3683_v20  ;;  %v1645_v39 = vrot.slane %v1644_v41, 1  ;;  %v1652_v37 = vrot.slane %v1651_v44, 1 }
 0x71d   :  { %v1657_v21 = vrot.slane %v1656_v22, 2  ;;  %v1664_v62 = vrot.slane %v1663_v63, 2  ;;  %v1669_v28 = vrot.slane %v1668_v52, 4  ;;  %v1676_v32 = vrot.slane %v1675_v9, 4 }
 0x71e   :  { %v1712_v1 = vmul.f32 0.17677669, %v1704_v50  ;;  %v1711_v47 = vmul.f32 0.17677669, %v1703_v49  ;;  %v1646_v15 = vadd.f32 %v1645_v39, %v1644_v41  ;;  %v1653_v18 = vadd.f32 %v1652_v37, %v1651_v44 }
 0x71f   :  { %v1658_v55 = vadd.f32 %v1657_v21, %v1656_v22  ;;  %v1665_v53 = vadd.f32 %v1664_v62, %v1663_v63  ;;  %v1670_v3 = vadd.f32 %v1669_v28, %v1668_v52  ;;  %v1677_v5 = vadd.f32 %v1676_v32, %v1675_v9 }
 0x720   :  { %3252 = vtanh.f32 %v1712_v1  ;;  %v1705_v8 = vadd.f32 %v1646_v15, %v3685_v26  ;;  %v1706_v10 = vadd.f32 %v1653_v18, %v3698_v46 }
 0x721   :  { %3254 = vtanh.f32 %v1711_v47  ;;  %v1659_v61 = vrot.slane %v1658_v55, 1  ;;  %v1666_v42 = vrot.slane %v1665_v53, 1  ;;  %v1671_v23 = vrot.slane %v1670_v3, 2 }
 0x722   :  { %v1713_v11 = vmul.f32 0.17677669, %v1705_v8  ;;  %v1714_v19 = vmul.f32 0.17677669, %v1706_v10  ;;  %v1678_v40 = vrot.slane %v1677_v5, 2 }
 0x723   :  { %v1660_v50 = vadd.f32 %v1659_v61, %v1658_v55  ;;  %v1667_v49 = vadd.f32 %v1666_v42, %v1665_v53  ;;  %v1672_v39 = vadd.f32 %v1671_v23, %v1670_v3 }
 0x724   :  { %3256 = vtanh.f32 %v1713_v11  ;;  %v1679_v21 = vadd.f32 %v1678_v40, %v1677_v5 }
 0x725   :  { %3258 = vtanh.f32 %v1714_v19  ;;  %v1707_v28 = vadd.f32 %v1660_v50, %v3700_v54  ;;  %v1708_v37 = vadd.f32 %v1667_v49, %v3702_v56  ;;  %v1673_v41 = vrot.slane %v1672_v39, 1 }
 0x726   :  { %v1680_v44 = vrot.slane %v1679_v21, 1 }
 0x727   :  { %v1715_v22 = vmul.f32 0.17677669, %v1707_v28  ;;  %v1716_v63 = vmul.f32 0.17677669, %v1708_v37  ;;  %v1674_v52 = vadd.f32 %v1673_v41, %v1672_v39 }
 0x728   :  { %v1681_v9 = vadd.f32 %v1680_v44, %v1679_v21  ;;  %v4737_v21 = vmax.f32 %v3831_v16, 0.0 }
 0x729   :  { %3260 = vtanh.f32 %v1715_v22  ;;  %v1709_v62 = vadd.f32 %v1674_v52, %v3709_v7 }
 0x72a   :  { %v3253_v32 = vpop.eup %3252  ;;  %3262 = vtanh.f32 %v1716_v63  ;;  %v1710_v1 = vadd.f32 %v1681_v9, %v3707_v4  ;;  %v3973_v28 = vmax.f32 %v4737_v21, %v3921_v0 }
 0x72b   :  { %v3255_v47 = vpop.eup %3254  ;;  %v1728_v15 = vmul.f32 10.0, %v3253_v32  ;;  %v1717_v18 = vmul.f32 0.17677669, %v1709_v62 }
 0x72c   :  { %v1727_v55 = vmul.f32 10.0, %v3255_v47  ;;  %v1718_v53 = vmul.f32 0.17677669, %v1710_v1  ;;  %vm1735_vm10 = vcmp.gt.f32.partialorder %v3973_v28, 0.5 }
 0x72d   :  { %3264 = vtanh.f32 %v1717_v18 }
 0x72e   :  { %v3257_v3 = vpop.eup %3256  ;;  %3266 = vtanh.f32 %v1718_v53  ;;  %v1744_v5 = vsel %vm1135_vm3, %v1728_v15, %v1727_v55 }
 0x72f   :  { %v3259_v8 = vpop.eup %3258  ;;  %v1729_v10 = vmul.f32 10.0, %v3257_v3 }
 0x730   :  { %v1730_v61 = vmul.f32 10.0, %v3259_v8 }
 0x731   :  { %v1745_v42 = vsel %vm1137_vm4, %v1729_v10, %v1744_v5 }
 0x732   :  { %v1746_v23 = vsel %vm1139_vm5, %v1730_v61, %v1745_v42 }
 0x733   :  { %v3261_v11 = vpop.eup %3260 }
 0x734   :  { %v3263_v19 = vpop.eup %3262  ;;  %v1731_v40 = vmul.f32 10.0, %v3261_v11  ;;  %v1790_v11 = vsel %vm1789_vm13, 1, %v4734_v58 }
 0x735   :  { %v1732_v50 = vmul.f32 10.0, %v3263_v19 }
 0x736   :  { %v1747_v49 = vsel %vm1141_vm6, %v1731_v40, %v1746_v23 }
 0x737   :  { %v3265_v39 = vpop.eup %3264  ;;  %v1748_v37 = vsel %vm1143_vm7, %v1732_v50, %v1747_v49 }
 0x738   :  { %v3267_v41 = vpop.eup %3266  ;;  %v1733_v44 = vmul.f32 10.0, %v3265_v39 }
 0x739   :  { %v1734_v22 = vmul.f32 10.0, %v3267_v41 }
 0x73a   :  { %v1749_v63 = vsel %vm1145_vm8, %v1733_v44, %v1748_v37 }
 0x73b   :  { %v1750_v52 = vsel %vm1147_vm9, %v1734_v22, %v1749_v63 }
 0x73c   :  { %v3979_v9 = vsel %vm1735_vm10, -1e+09, %v1750_v52 }
 0x73d   :  { %4738 = vst [vmem:[#allocation11_spill] sm:$0xff] %v3979_v9  ;;  %v1753_v62 = vsel %vm1019_vm2, %v3979_v9, -inf }
 0x73e   :  { %1754 = vmax.xlane.f32.xlu1 %v1753_v62 }
 0x7cb   :  { %v3983_v32 = vpop.xlane.xlu1 %1754 }
 0x7cc   :  { %4739 = vst [vmem:[#allocation12_spill] sm:$0xff] %v3983_v32  ;;  %vm1765_vm11 = vcmp.ge.f32.partialorder %v3979_v9, %v3983_v32 }
 0x7cd   :  { %v1766_v1 = vsel %vm1765_vm11, %v3754_v57, 8 }
 0x7ce   :  { %v1767_v47 = vsel %vm1019_vm2, %v1766_v1, 2147483647 }
 0x7cf   :  { %v1769_v15 = vshra.s32 %v1767_v47, 16  ;;  %v1768_v55 = vand.u32 65535, %v1767_v47 }
 0x7d1   :  { %v1771_v18 = vcvt.s32.f32 %v1769_v15  ;;  %v1770_v3 = vcvt.s32.f32 %v1768_v55 }
 0x7d3   :  { %1772 = vmin.xlane.f32.xlu0 %v1771_v18 }
 0x860   :  { %v1773_v53 = vpop.xlane.xlu0 %1772 }
 0x861   :  { %vm1774_vm12 = vcmp.eq.f32.partialorder %v1771_v18, %v1773_v53  ;;  %v1779_v8 = vcvt.f32.s32 %v1773_v53 }
 0x862   :  { %v1775_v5 = vsel %vm1774_vm12, %v1770_v3, inf  ;;  %vm2024_vm12 = vcmp.eq.s32.totalorder %v3754_v57, 3 }
 0x863   :  { %1776 = vmin.xlane.f32.xlu0 %v1775_v5  ;;  %v1780_v61 = vshll.u32 %v1779_v8, 16 }
 0x8f0   :  { %v1777_v10 = vpop.xlane.xlu0 %1776 }
 0x8f1   :  { %v1778_v42 = vcvt.f32.s32 %v1777_v10 }
 0x8f3   :  { %v1781_v23 = vadd.s32 %v1780_v61, %v1778_v42 }
 0x8f5   :  { %vm1782_vm14 = vcmp.eq.s32.totalorder %v3754_v57, %v1781_v23  ;;  %v1791_v40 = vmul.u32 %v1790_v11, %v1781_v23 }
 0x8f6   :  { %v3995_v19 = vsel %vm1782_vm14, 1.0, %v4735_v31 }
 0x8f7   :  { %4740 = vst [vmem:[#allocation13_spill] sm:$0xff] %v3995_v19  ;;  %v1807_v50 = vrot.slane %v3995_v19, %v3529_v25  ;;  %v1800_v49 = vrot.slane %v3995_v19, %v3526_v24  ;;  %v4002_v39 = vadd.s32 %v1791_v40, %v3928_v60  ;;  %v1828_v21 = vrot.slane %v3995_v19, %v3838_v27 }
 0x8f8   :  { %v1814_v37 = vrot.slane %v3995_v19, %v3841_v29  ;;  %v1842_v41 = vrot.slane %v3995_v19, %v3848_v34  ;;  %v1821_v44 = vrot.slane %v3995_v19, %v3851_v35  ;;  %v1835_v60 = vrot.slane %v3995_v19, %v3858_v43 }
 0x8f9   :  { %1809 = vbcast.lane.b32.xlu0 %v1807_v50, 256  ;;  %1802 = vbcast.lane.b32.xlu1 %v1800_v49, 256  ;;  %v1849_v22 = vrot.slane %v3995_v19, %v3863_v59 }
 0x8fd   :  { %1830 = vbcast.lane.b32.xlu0 %v1828_v21, 256  ;;  %1816 = vbcast.lane.b32.xlu1 %v1814_v37, 256 }
 0x901   :  { %1844 = vbcast.lane.b32.xlu0 %v1842_v41, 256  ;;  %1823 = vbcast.lane.b32.xlu1 %v1821_v44, 256 }
 0x905   :  { %1837 = vbcast.lane.b32.xlu1 %v1835_v60, 256 }
 0x909   :  { %1851 = vbcast.lane.b32.xlu1 %v1849_v22, 256 }
 0x96b   :  { %v1810_v63 = vpop.permute.xlu0 %1809  ;;  %v1803_v52 = vpop.permute.xlu1 %1802 }
 0x96c   :  { %v1854_v62 = vmul.f32 %v1810_v63, %v3657_v36  ;;  %v1853_v1 = vmul.f32 %v1803_v52, %v3661_v38 }
 0x96e   :  { %v1868_v47 = vsel %vm1019_vm2, %v1854_v62, 0.0  ;;  %v1861_v15 = vsel %vm1019_vm2, %v1853_v1, 0.0 }
 0x96f   :  { %v1869_v18 = vrot.slane %v1868_v47, 4  ;;  %v1862_v55 = vrot.slane %v1861_v15, 4  ;;  %v1831_v53 = vpop.permute.xlu0 %1830  ;;  %v1817_v3 = vpop.permute.xlu1 %1816 }
 0x970   :  { %v1857_v5 = vmul.f32 %v1831_v53, %v3677_v6  ;;  %v1855_v8 = vmul.f32 %v1817_v3, %v3669_v51 }
 0x971   :  { %v1870_v10 = vadd.f32 %v1869_v18, %v1868_v47  ;;  %v1863_v61 = vadd.f32 %v1862_v55, %v1861_v15 }
 0x972   :  { %v1889_v42 = vsel %vm1019_vm2, %v1857_v5, 0.0  ;;  %v1875_v23 = vsel %vm1019_vm2, %v1855_v8, 0.0 }
 0x973   :  { %v1871_v11 = vrot.slane %v1870_v10, 2  ;;  %v1864_v40 = vrot.slane %v1863_v61, 2  ;;  %v1890_v50 = vrot.slane %v1889_v42, 4  ;;  %v1876_v49 = vrot.slane %v1875_v23, 4  ;;  %v1845_v21 = vpop.permute.xlu0 %1844  ;;  %v1824_v37 = vpop.permute.xlu1 %1823 }
 0x974   :  { %v1859_v41 = vmul.f32 %v1845_v21, %v3691_v33  ;;  %v1856_v44 = vmul.f32 %v1824_v37, %v3665_v48 }
 0x975   :  { %v1872_v60 = vadd.f32 %v1871_v11, %v1870_v10  ;;  %v1865_v22 = vadd.f32 %v1864_v40, %v1863_v61  ;;  %v1891_v63 = vadd.f32 %v1890_v50, %v1889_v42  ;;  %v1877_v52 = vadd.f32 %v1876_v49, %v1875_v23 }
 0x976   :  { %v1903_v62 = vsel %vm1019_vm2, %v1859_v41, 0.0  ;;  %v1882_v1 = vsel %vm1019_vm2, %v1856_v44, 0.0 }
 0x977   :  { %v1873_v47 = vrot.slane %v1872_v60, 1  ;;  %v1866_v15 = vrot.slane %v1865_v22, 1  ;;  %v1892_v18 = vrot.slane %v1891_v63, 2  ;;  %v1878_v55 = vrot.slane %v1877_v52, 2  ;;  %v1838_v53 = vpop.permute.xlu1 %1837 }
 0x978   :  { %v1904_v3 = vrot.slane %v1903_v62, 4  ;;  %v1883_v5 = vrot.slane %v1882_v1, 4  ;;  %v1858_v8 = vmul.f32 %v1838_v53, %v3673_v2 }
 0x979   :  { %v1874_v21 = vadd.f32 %v1873_v47, %v1872_v60  ;;  %v1867_v9 = vadd.f32 %v1866_v15, %v1865_v22  ;;  %v1893_v37 = vadd.f32 %v1892_v18, %v1891_v63  ;;  %v1879_v10 = vadd.f32 %v1878_v55, %v1877_v52 }
 0x97a   :  { %v1905_v61 = vadd.f32 %v1904_v3, %v1903_v62  ;;  %v1884_v42 = vadd.f32 %v1883_v5, %v1882_v1  ;;  %v1896_v23 = vsel %vm1019_vm2, %v1858_v8, 0.0 }
 0x97b   :  { %v1939_v11 = vadd.f32 %v1874_v21, %v3681_v17  ;;  %v1938_v40 = vadd.f32 %v1867_v9, %v3683_v20  ;;  %v1894_v50 = vrot.slane %v1893_v37, 1  ;;  %v1880_v49 = vrot.slane %v1879_v10, 1  ;;  %v1852_v41 = vpop.permute.xlu1 %1851 }
 0x97c   :  { %v1906_v44 = vrot.slane %v1905_v61, 2  ;;  %v1885_v32 = vrot.slane %v1884_v42, 2  ;;  %v1897_v0 = vrot.slane %v1896_v23, 4  ;;  %v1860_v53 = vmul.f32 %v1852_v41, %v3687_v30 }
 0x97d   :  { %v1947_v60 = vmul.f32 0.17677669, %v1939_v11  ;;  %v1946_v22 = vmul.f32 0.17677669, %v1938_v40  ;;  %v1895_v63 = vadd.f32 %v1894_v50, %v1893_v37  ;;  %v1881_v52 = vadd.f32 %v1880_v49, %v1879_v10 }
 0x97e   :  { %v1907_v62 = vadd.f32 %v1906_v44, %v1905_v61  ;;  %v1886_v1 = vadd.f32 %v1885_v32, %v1884_v42  ;;  %v1898_v47 = vadd.f32 %v1897_v0, %v1896_v23  ;;  %v1910_v15 = vsel %vm1019_vm2, %v1860_v53, 0.0 }
 0x97f   :  { %3268 = vtanh.f32 %v1947_v60  ;;  %v1942_v9 = vadd.f32 %v1895_v63, %v3700_v54  ;;  %v1940_v18 = vadd.f32 %v1881_v52, %v3685_v26  ;;  %v1911_v55 = vrot.slane %v1910_v15, 4 }
 0x980   :  { %3270 = vtanh.f32 %v1946_v22  ;;  %v1908_v3 = vrot.slane %v1907_v62, 1  ;;  %v1887_v5 = vrot.slane %v1886_v1, 1  ;;  %v1899_v8 = vrot.slane %v1898_v47, 2 }
 0x981   :  { %v1948_v21 = vmul.f32 0.17677669, %v1940_v18  ;;  %v1912_v11 = vadd.f32 %v1911_v55, %v1910_v15  ;;  %v1950_v61 = vmul.f32 0.17677669, %v1942_v9 }
 0x982   :  { %v1909_v40 = vadd.f32 %v1908_v3, %v1907_v62  ;;  %v1888_v37 = vadd.f32 %v1887_v5, %v1886_v1  ;;  %v1900_v10 = vadd.f32 %v1899_v8, %v1898_v47 }
 0x983   :  { %v1913_v32 = vrot.slane %v1912_v11, 2  ;;  %3272 = vtanh.f32 %v1948_v21 }
 0x984   :  { %v1944_v0 = vadd.f32 %v1909_v40, %v3709_v7  ;;  %v1941_v42 = vadd.f32 %v1888_v37, %v3698_v46  ;;  %v1901_v23 = vrot.slane %v1900_v10, 1  ;;  %3274 = vtanh.f32 %v1950_v61 }
 0x985   :  { %v1914_v50 = vadd.f32 %v1913_v32, %v1912_v11 }
 0x986   :  { %v1949_v49 = vmul.f32 0.17677669, %v1941_v42  ;;  %v1902_v41 = vadd.f32 %v1901_v23, %v1900_v10  ;;  %v1952_v44 = vmul.f32 0.17677669, %v1944_v0  ;;  %v4046_v42 = vmax.f32 %v3973_v28, %v3995_v19 }
 0x987   :  { %v1915_v53 = vrot.slane %v1914_v50, 1 }
 0x988   :  { %v1943_v60 = vadd.f32 %v1902_v41, %v3702_v56  ;;  %3276 = vtanh.f32 %v1949_v49  ;;  %vm1970_vm1 = vcmp.gt.f32.partialorder %v4046_v42, 0.5 }
 0x989   :  { %v3269_v22 = vpop.eup %3268  ;;  %v1916_v63 = vadd.f32 %v1915_v53, %v1914_v50  ;;  %3278 = vtanh.f32 %v1952_v44 }
 0x98a   :  { %v3271_v52 = vpop.eup %3270  ;;  %v1963_v62 = vmul.f32 10.0, %v3269_v22  ;;  %v1951_v1 = vmul.f32 0.17677669, %v1943_v60 }
 0x98b   :  { %v1962_v47 = vmul.f32 10.0, %v3271_v52  ;;  %v1945_v15 = vadd.f32 %v1916_v63, %v3707_v4 }
 0x98c   :  { %3280 = vtanh.f32 %v1951_v1 }
 0x98d   :  { %v1953_v9 = vmul.f32 0.17677669, %v1945_v15  ;;  %v1979_v18 = vsel %vm1135_vm3, %v1963_v62, %v1962_v47  ;;  %v3273_v55 = vpop.eup %3272 }
 0x98e   :  { %v1964_v3 = vmul.f32 10.0, %v3273_v55  ;;  %v3275_v8 = vpop.eup %3274 }
 0x98f   :  { %3282 = vtanh.f32 %v1953_v9  ;;  %v1966_v37 = vmul.f32 10.0, %v3275_v8 }
 0x990   :  { %v1980_v5 = vsel %vm1137_vm4, %v1964_v3, %v1979_v18 }
 0x992   :  { %v3277_v21 = vpop.eup %3276 }
 0x993   :  { %v1965_v11 = vmul.f32 10.0, %v3277_v21  ;;  %v3279_v40 = vpop.eup %3278 }
 0x994   :  { %v1968_v23 = vmul.f32 10.0, %v3279_v40 }
 0x995   :  { %v1981_v61 = vsel %vm1139_vm5, %v1965_v11, %v1980_v5  ;;  %v2025_v11 = vsel %vm2024_vm12, 1, %v4734_v58 }
 0x996   :  { %v3281_v10 = vpop.eup %3280  ;;  %v1982_v0 = vsel %vm1141_vm6, %v1966_v37, %v1981_v61 }
 0x997   :  { %v1967_v32 = vmul.f32 10.0, %v3281_v10 }
 0x999   :  { %v3283_v50 = vpop.eup %3282  ;;  %v1983_v49 = vsel %vm1143_vm7, %v1967_v32, %v1982_v0 }
 0x99a   :  { %v1969_v41 = vmul.f32 10.0, %v3283_v50  ;;  %v1984_v44 = vsel %vm1145_vm8, %v1968_v23, %v1983_v49 }
 0x99c   :  { %v1985_v53 = vsel %vm1147_vm9, %v1969_v41, %v1984_v44 }
 0x99d   :  { %v4052_v60 = vsel %vm1970_vm1, -1e+09, %v1985_v53 }
 0x99e   :  { %4741 = vst [vmem:[#allocation14_spill] sm:$0xff] %v4052_v60  ;;  %v1988_v22 = vsel %vm1019_vm2, %v4052_v60, -inf }
 0x99f   :  { %1989 = vmax.xlane.f32.xlu0 %v1988_v22 }
 0xa2c   :  { %v4056_v63 = vpop.xlane.xlu0 %1989 }
 0xa2d   :  { %4742 = vst [vmem:[#allocation15_spill] sm:$0xff] %v4056_v63  ;;  %vm2000_vm10 = vcmp.ge.f32.partialorder %v4052_v60, %v4056_v63 }
 0xa2e   :  { %v2001_v28 = vsel %vm2000_vm10, %v3754_v57, 8 }
 0xa2f   :  { %v2002_v52 = vsel %vm1019_vm2, %v2001_v28, 2147483647 }
 0xa30   :  { %v2004_v62 = vshra.s32 %v2002_v52, 16  ;;  %v2003_v47 = vand.u32 65535, %v2002_v52 }
 0xa32   :  { %v2006_v1 = vcvt.s32.f32 %v2004_v62  ;;  %v2005_v9 = vcvt.s32.f32 %v2003_v47 }
 0xa34   :  { %2007 = vmin.xlane.f32.xlu1 %v2006_v1 }
 0xac1   :  { %v2008_v15 = vpop.xlane.xlu1 %2007 }
 0xac2   :  { %vm2009_vm11 = vcmp.eq.f32.partialorder %v2006_v1, %v2008_v15  ;;  %v2014_v55 = vcvt.f32.s32 %v2008_v15 }
 0xac3   :  { %v2010_v18 = vsel %vm2009_vm11, %v2005_v9, inf }
 0xac4   :  { %2011 = vmin.xlane.f32.xlu0 %v2010_v18  ;;  %v2015_v5 = vshll.u32 %v2014_v55, 16 }
 0xb51   :  { %v2012_v3 = vpop.xlane.xlu0 %2011 }
 0xb52   :  { %v2013_v8 = vcvt.f32.s32 %v2012_v3 }
 0xb54   :  { %v2016_v21 = vadd.s32 %v2015_v5, %v2013_v8 }
 0xb56   :  { %vm2017_vm14 = vcmp.eq.s32.totalorder %v3754_v57, %v2016_v21  ;;  %v2026_v37 = vmul.u32 %v2025_v11, %v2016_v21 }
 0xb57   :  { %v4068_v40 = vsel %vm2017_vm14, 1.0, %v4735_v31  ;;  %vm2259_vm14 = vcmp.eq.s32.totalorder %v3754_v57, 4 }
 0xb58   :  { %4743 = vst [vmem:[#allocation16_spill] sm:$0xff] %v4068_v40  ;;  %v2042_v10 = vrot.slane %v4068_v40, %v3529_v25  ;;  %v2035_v61 = vrot.slane %v4068_v40, %v3526_v24  ;;  %v4075_v32 = vadd.s32 %v2026_v37, %v4002_v39  ;;  %v2049_v0 = vrot.slane %v4068_v40, %v3841_v29 }
 0xb59   :  { %v2056_v23 = vrot.slane %v4068_v40, %v3851_v35  ;;  %v2063_v50 = vrot.slane %v4068_v40, %v3838_v27  ;;  %v2070_v49 = vrot.slane %v4068_v40, %v3858_v43  ;;  %v2077_v39 = vrot.slane %v4068_v40, %v3848_v34 }
 0xb5a   :  { %2044 = vbcast.lane.b32.xlu1 %v2042_v10, 256  ;;  %2037 = vbcast.lane.b32.xlu0 %v2035_v61, 256  ;;  %v2084_v41 = vrot.slane %v4068_v40, %v3863_v59 }
 0xb5e   :  { %2051 = vbcast.lane.b32.xlu1 %v2049_v0, 256  ;;  %2058 = vbcast.lane.b32.xlu0 %v2056_v23, 256 }
 0xb62   :  { %2065 = vbcast.lane.b32.xlu1 %v2063_v50, 256  ;;  %2072 = vbcast.lane.b32.xlu0 %v2070_v49, 256 }
 0xb66   :  { %2079 = vbcast.lane.b32.xlu1 %v2077_v39, 256  ;;  %2086 = vbcast.lane.b32.xlu0 %v2084_v41, 256 }
 0xbcc   :  { %v2045_v44 = vpop.permute.xlu1 %2044  ;;  %v2038_v53 = vpop.permute.xlu0 %2037 }
 0xbcd   :  { %v2089_v22 = vmul.f32 %v2045_v44, %v3657_v36  ;;  %v2088_v28 = vmul.f32 %v2038_v53, %v3661_v38 }
 0xbcf   :  { %v2103_v52 = vsel %vm1019_vm2, %v2089_v22, 0.0  ;;  %v2096_v62 = vsel %vm1019_vm2, %v2088_v28, 0.0 }
 0xbd0   :  { %v2104_v1 = vrot.slane %v2103_v52, 4  ;;  %v2097_v47 = vrot.slane %v2096_v62, 4  ;;  %v2052_v15 = vpop.permute.xlu1 %2051  ;;  %v2059_v9 = vpop.permute.xlu0 %2058 }
 0xbd1   :  { %v2090_v18 = vmul.f32 %v2052_v15, %v3669_v51  ;;  %v2091_v55 = vmul.f32 %v2059_v9, %v3665_v48 }
 0xbd2   :  { %v2105_v3 = vadd.f32 %v2104_v1, %v2103_v52  ;;  %v2098_v5 = vadd.f32 %v2097_v47, %v2096_v62 }
 0xbd3   :  { %v2110_v8 = vsel %vm1019_vm2, %v2090_v18, 0.0  ;;  %v2117_v21 = vsel %vm1019_vm2, %v2091_v55, 0.0 }
 0xbd4   :  { %v2106_v11 = vrot.slane %v2105_v3, 2  ;;  %v2099_v37 = vrot.slane %v2098_v5, 2  ;;  %v2111_v10 = vrot.slane %v2110_v8, 4  ;;  %v2118_v61 = vrot.slane %v2117_v21, 4  ;;  %v2066_v0 = vpop.permute.xlu1 %2065  ;;  %v2073_v23 = vpop.permute.xlu0 %2072 }
 0xbd5   :  { %v2092_v50 = vmul.f32 %v2066_v0, %v3677_v6  ;;  %v2093_v49 = vmul.f32 %v2073_v23, %v3673_v2 }
 0xbd6   :  { %v2107_v39 = vadd.f32 %v2106_v11, %v2105_v3  ;;  %v2100_v41 = vadd.f32 %v2099_v37, %v2098_v5  ;;  %v2112_v44 = vadd.f32 %v2111_v10, %v2110_v8  ;;  %v2119_v53 = vadd.f32 %v2118_v61, %v2117_v21 }
 0xbd7   :  { %v2124_v22 = vsel %vm1019_vm2, %v2092_v50, 0.0  ;;  %v2131_v28 = vsel %vm1019_vm2, %v2093_v49, 0.0 }
 0xbd8   :  { %v2108_v52 = vrot.slane %v2107_v39, 1  ;;  %v2101_v62 = vrot.slane %v2100_v41, 1  ;;  %v2113_v1 = vrot.slane %v2112_v44, 2  ;;  %v2120_v47 = vrot.slane %v2119_v53, 2  ;;  %v2080_v15 = vpop.permute.xlu1 %2079  ;;  %v2087_v9 = vpop.permute.xlu0 %2086 }
 0xbd9   :  { %v2125_v18 = vrot.slane %v2124_v22, 4  ;;  %v2132_v55 = vrot.slane %v2131_v28, 4  ;;  %v2094_v0 = vmul.f32 %v2080_v15, %v3691_v33  ;;  %v2095_v23 = vmul.f32 %v2087_v9, %v3687_v30 }
 0xbda   :  { %v2109_v3 = vadd.f32 %v2108_v52, %v2107_v39  ;;  %v2102_v5 = vadd.f32 %v2101_v62, %v2100_v41  ;;  %v2114_v8 = vadd.f32 %v2113_v1, %v2112_v44  ;;  %v2121_v21 = vadd.f32 %v2120_v47, %v2119_v53 }
 0xbdb   :  { %v2126_v11 = vadd.f32 %v2125_v18, %v2124_v22  ;;  %v2133_v37 = vadd.f32 %v2132_v55, %v2131_v28  ;;  %v2138_v10 = vsel %vm1019_vm2, %v2094_v0, 0.0  ;;  %v2145_v61 = vsel %vm1019_vm2, %v2095_v23, 0.0 }
 0xbdc   :  { %v2174_v50 = vadd.f32 %v2109_v3, %v3681_v17  ;;  %v2173_v49 = vadd.f32 %v2102_v5, %v3683_v20  ;;  %v2115_v19 = vrot.slane %v2114_v8, 1  ;;  %v2122_v16 = vrot.slane %v2121_v21, 1 }
 0xbdd   :  { %v2127_v60 = vrot.slane %v2126_v11, 2  ;;  %v2134_v15 = vrot.slane %v2133_v37, 2  ;;  %v2139_v63 = vrot.slane %v2138_v10, 4  ;;  %v2146_v9 = vrot.slane %v2145_v61, 4 }
 0xbde   :  { %v2182_v39 = vmul.f32 0.17677669, %v2174_v50  ;;  %v2181_v41 = vmul.f32 0.17677669, %v2173_v49  ;;  %v2116_v44 = vadd.f32 %v2115_v19, %v2114_v8  ;;  %v2123_v53 = vadd.f32 %v2122_v16, %v2121_v21 }
 0xbdf   :  { %v2128_v22 = vadd.f32 %v2127_v60, %v2126_v11  ;;  %v2135_v28 = vadd.f32 %v2134_v15, %v2133_v37  ;;  %v2140_v52 = vadd.f32 %v2139_v63, %v2138_v10  ;;  %v2147_v62 = vadd.f32 %v2146_v9, %v2145_v61 }
 0xbe0   :  { %3284 = vtanh.f32 %v2182_v39  ;;  %v2175_v1 = vadd.f32 %v2116_v44, %v3685_v26  ;;  %v2176_v47 = vadd.f32 %v2123_v53, %v3698_v46 }
 0xbe1   :  { %3286 = vtanh.f32 %v2181_v41  ;;  %v2129_v18 = vrot.slane %v2128_v22, 1  ;;  %v2136_v55 = vrot.slane %v2135_v28, 1  ;;  %v2141_v0 = vrot.slane %v2140_v52, 2 }
 0xbe2   :  { %v2183_v23 = vmul.f32 0.17677669, %v2175_v1  ;;  %v2184_v3 = vmul.f32 0.17677669, %v2176_v47  ;;  %v2148_v5 = vrot.slane %v2147_v62, 2 }
 0xbe3   :  { %v2130_v50 = vadd.f32 %v2129_v18, %v2128_v22  ;;  %v2137_v49 = vadd.f32 %v2136_v55, %v2135_v28  ;;  %v2142_v19 = vadd.f32 %v2141_v0, %v2140_v52 }
 0xbe4   :  { %3288 = vtanh.f32 %v2183_v23  ;;  %v2149_v16 = vadd.f32 %v2148_v5, %v2147_v62 }
 0xbe5   :  { %3290 = vtanh.f32 %v2184_v3  ;;  %v2177_v60 = vadd.f32 %v2130_v50, %v3700_v54  ;;  %v2178_v63 = vadd.f32 %v2137_v49, %v3702_v56  ;;  %v2143_v8 = vrot.slane %v2142_v19, 1 }
 0xbe6   :  { %v2150_v21 = vrot.slane %v2149_v16, 1 }
 0xbe7   :  { %v2185_v11 = vmul.f32 0.17677669, %v2177_v60  ;;  %v2186_v37 = vmul.f32 0.17677669, %v2178_v63  ;;  %v2144_v10 = vadd.f32 %v2143_v8, %v2142_v19 }
 0xbe8   :  { %v2151_v61 = vadd.f32 %v2150_v21, %v2149_v16  ;;  %v4119_v16 = vmax.f32 %v4046_v42, %v4068_v40 }
 0xbe9   :  { %3292 = vtanh.f32 %v2185_v11  ;;  %v2179_v15 = vadd.f32 %v2144_v10, %v3709_v7 }
 0xbea   :  { %v3285_v9 = vpop.eup %3284  ;;  %3294 = vtanh.f32 %v2186_v37  ;;  %v2180_v39 = vadd.f32 %v2151_v61, %v3707_v4  ;;  %vm2205_vm1 = vcmp.gt.f32.partialorder %v4119_v16, 0.5 }
 0xbeb   :  { %v3287_v41 = vpop.eup %3286  ;;  %v2198_v44 = vmul.f32 10.0, %v3285_v9  ;;  %v2187_v53 = vmul.f32 0.17677669, %v2179_v15 }
 0xbec   :  { %v2197_v22 = vmul.f32 10.0, %v3287_v41  ;;  %v2188_v28 = vmul.f32 0.17677669, %v2180_v39 }
 0xbed   :  { %3296 = vtanh.f32 %v2187_v53 }
 0xbee   :  { %v3289_v52 = vpop.eup %3288  ;;  %3298 = vtanh.f32 %v2188_v28  ;;  %v2214_v62 = vsel %vm1135_vm3, %v2198_v44, %v2197_v22 }
 0xbef   :  { %v3291_v1 = vpop.eup %3290  ;;  %v2199_v47 = vmul.f32 10.0, %v3289_v52 }
 0xbf0   :  { %v2200_v18 = vmul.f32 10.0, %v3291_v1 }
 0xbf1   :  { %v2215_v55 = vsel %vm1137_vm4, %v2199_v47, %v2214_v62 }
 0xbf2   :  { %v2216_v0 = vsel %vm1139_vm5, %v2200_v18, %v2215_v55  ;;  %v2260_v55 = vsel %vm2259_vm14, 1, %v4734_v58 }
 0xbf3   :  { %v3293_v23 = vpop.eup %3292 }
 0xbf4   :  { %v3295_v3 = vpop.eup %3294  ;;  %v2201_v5 = vmul.f32 10.0, %v3293_v23 }
 0xbf5   :  { %v2202_v50 = vmul.f32 10.0, %v3295_v3 }
 0xbf6   :  { %v2217_v49 = vsel %vm1141_vm6, %v2201_v5, %v2216_v0 }
 0xbf7   :  { %v3297_v19 = vpop.eup %3296  ;;  %v2218_v60 = vsel %vm1143_vm7, %v2202_v50, %v2217_v49 }
 0xbf8   :  { %v3299_v63 = vpop.eup %3298  ;;  %v2203_v8 = vmul.f32 10.0, %v3297_v19 }
 0xbf9   :  { %v2204_v21 = vmul.f32 10.0, %v3299_v63 }
 0xbfa   :  { %v2219_v11 = vsel %vm1145_vm8, %v2203_v8, %v2218_v60 }
 0xbfb   :  { %v2220_v37 = vsel %vm1147_vm9, %v2204_v21, %v2219_v11 }
 0xbfc   :  { %v4125_v10 = vsel %vm2205_vm1, -1e+09, %v2220_v37 }
 0xbfd   :  { %4744 = vst [vmem:[#allocation17_spill] sm:$0xff] %v4125_v10  ;;  %v2223_v61 = vsel %vm1019_vm2, %v4125_v10, -inf }
 0xbfe   :  { %2224 = vmax.xlane.f32.xlu1 %v2223_v61 }
 0xc8b   :  { %v4129_v15 = vpop.xlane.xlu1 %2224 }
 0xc8c   :  { %4745 = vst [vmem:[#allocation18_spill] sm:$0xff] %v4129_v15  ;;  %vm2235_vm10 = vcmp.ge.f32.partialorder %v4125_v10, %v4129_v15 }
 0xc8d   :  { %v2236_v42 = vsel %vm2235_vm10, %v3754_v57, 8 }
 0xc8e   :  { %v2237_v9 = vsel %vm1019_vm2, %v2236_v42, 2147483647 }
 0xc8f   :  { %v2239_v39 = vshra.s32 %v2237_v9, 16  ;;  %v2238_v44 = vand.u32 65535, %v2237_v9 }
 0xc91   :  { %v2241_v41 = vcvt.s32.f32 %v2239_v39  ;;  %v2240_v22 = vcvt.s32.f32 %v2238_v44 }
 0xc93   :  { %2242 = vmin.xlane.f32.xlu0 %v2241_v41 }
 0xd20   :  { %v2243_v53 = vpop.xlane.xlu0 %2242 }
 0xd21   :  { %vm2244_vm11 = vcmp.eq.f32.partialorder %v2241_v41, %v2243_v53  ;;  %v2249_v52 = vcvt.f32.s32 %v2243_v53 }
 0xd22   :  { %v2245_v28 = vsel %vm2244_vm11, %v2240_v22, inf }
 0xd23   :  { %2246 = vmin.xlane.f32.xlu0 %v2245_v28  ;;  %v2250_v1 = vshll.u32 %v2249_v52, 16 }
 0xdb0   :  { %v2247_v62 = vpop.xlane.xlu0 %2246 }
 0xdb1   :  { %v2248_v47 = vcvt.f32.s32 %v2247_v62 }
 0xdb3   :  { %v2251_v18 = vadd.s32 %v2250_v1, %v2248_v47 }
 0xdb5   :  { %vm2252_vm1 = vcmp.eq.s32.totalorder %v3754_v57, %v2251_v18  ;;  %v2261_v23 = vmul.u32 %v2260_v55, %v2251_v18 }
 0xdb6   :  { %v4141_v0 = vsel %vm2252_vm1, 1.0, %v4735_v31 }
 0xdb7   :  { %4746 = vst [vmem:[#allocation19_spill] sm:$0xff] %v4141_v0  ;;  %v2277_v3 = vrot.slane %v4141_v0, %v3529_v25  ;;  %v2270_v5 = vrot.slane %v4141_v0, %v3526_v24  ;;  %v4148_v50 = vadd.s32 %v2261_v23, %v4075_v32  ;;  %v2298_v49 = vrot.slane %v4141_v0, %v3838_v27 }
 0xdb8   :  { %v2284_v19 = vrot.slane %v4141_v0, %v3841_v29  ;;  %v2312_v60 = vrot.slane %v4141_v0, %v3848_v34  ;;  %v2291_v63 = vrot.slane %v4141_v0, %v3851_v35  ;;  %v2305_v32 = vrot.slane %v4141_v0, %v3858_v43 }
 0xdb9   :  { %2279 = vbcast.lane.b32.xlu0 %v2277_v3, 256  ;;  %2272 = vbcast.lane.b32.xlu1 %v2270_v5, 256  ;;  %v2319_v8 = vrot.slane %v4141_v0, %v3863_v59 }
 0xdbd   :  { %2300 = vbcast.lane.b32.xlu0 %v2298_v49, 256  ;;  %2286 = vbcast.lane.b32.xlu1 %v2284_v19, 256 }
 0xdc1   :  { %2314 = vbcast.lane.b32.xlu0 %v2312_v60, 256  ;;  %2293 = vbcast.lane.b32.xlu1 %v2291_v63, 256 }
 0xdc5   :  { %2307 = vbcast.lane.b32.xlu1 %v2305_v32, 256 }
 0xdc9   :  { %2321 = vbcast.lane.b32.xlu1 %v2319_v8, 256 }
 0xe2b   :  { %v2280_v21 = vpop.permute.xlu0 %2279  ;;  %v2273_v11 = vpop.permute.xlu1 %2272 }
 0xe2c   :  { %v2324_v37 = vmul.f32 %v2280_v21, %v3657_v36  ;;  %v2323_v61 = vmul.f32 %v2273_v11, %v3661_v38 }
 0xe2e   :  { %v2338_v42 = vsel %vm1019_vm2, %v2324_v37, 0.0  ;;  %v2331_v9 = vsel %vm1019_vm2, %v2323_v61, 0.0 }
 0xe2f   :  { %v2339_v39 = vrot.slane %v2338_v42, 4  ;;  %v2332_v41 = vrot.slane %v2331_v9, 4  ;;  %v2301_v44 = vpop.permute.xlu0 %2300  ;;  %v2287_v53 = vpop.permute.xlu1 %2286 }
 0xe30   :  { %v2327_v22 = vmul.f32 %v2301_v44, %v3677_v6  ;;  %v2325_v28 = vmul.f32 %v2287_v53, %v3669_v51 }
 0xe31   :  { %v2340_v52 = vadd.f32 %v2339_v39, %v2338_v42  ;;  %v2333_v62 = vadd.f32 %v2332_v41, %v2331_v9 }
 0xe32   :  { %v2359_v1 = vsel %vm1019_vm2, %v2327_v22, 0.0  ;;  %v2345_v47 = vsel %vm1019_vm2, %v2325_v28, 0.0 }
 0xe33   :  { %v2341_v18 = vrot.slane %v2340_v52, 2  ;;  %v2334_v55 = vrot.slane %v2333_v62, 2  ;;  %v2360_v23 = vrot.slane %v2359_v1, 4  ;;  %v2346_v3 = vrot.slane %v2345_v47, 4  ;;  %v2315_v5 = vpop.permute.xlu0 %2314  ;;  %v2294_v49 = vpop.permute.xlu1 %2293 }
 0xe34   :  { %v2329_v19 = vmul.f32 %v2315_v5, %v3691_v33  ;;  %v2326_v60 = vmul.f32 %v2294_v49, %v3665_v48 }
 0xe35   :  { %v2342_v63 = vadd.f32 %v2341_v18, %v2340_v52  ;;  %v2335_v32 = vadd.f32 %v2334_v55, %v2333_v62  ;;  %v2361_v8 = vadd.f32 %v2360_v23, %v2359_v1  ;;  %v2347_v21 = vadd.f32 %v2346_v3, %v2345_v47 }
 0xe36   :  { %v2373_v11 = vsel %vm1019_vm2, %v2329_v19, 0.0  ;;  %v2352_v37 = vsel %vm1019_vm2, %v2326_v60, 0.0 }
 0xe37   :  { %v2343_v61 = vrot.slane %v2342_v63, 1  ;;  %v2336_v42 = vrot.slane %v2335_v32, 1  ;;  %v2362_v9 = vrot.slane %v2361_v8, 2  ;;  %v2348_v39 = vrot.slane %v2347_v21, 2  ;;  %v2308_v41 = vpop.permute.xlu1 %2307 }
 0xe38   :  { %v2374_v44 = vrot.slane %v2373_v11, 4  ;;  %v2353_v53 = vrot.slane %v2352_v37, 4  ;;  %v2328_v22 = vmul.f32 %v2308_v41, %v3673_v2 }
 0xe39   :  { %v2344_v28 = vadd.f32 %v2343_v61, %v2342_v63  ;;  %v2337_v5 = vadd.f32 %v2336_v42, %v2335_v32  ;;  %v2363_v49 = vadd.f32 %v2362_v9, %v2361_v8  ;;  %v2349_v52 = vadd.f32 %v2348_v39, %v2347_v21 }
 0xe3a   :  { %v2375_v62 = vadd.f32 %v2374_v44, %v2373_v11  ;;  %v2354_v1 = vadd.f32 %v2353_v53, %v2352_v37  ;;  %v2366_v47 = vsel %vm1019_vm2, %v2328_v22, 0.0 }
 0xe3b   :  { %v2409_v18 = vadd.f32 %v2344_v28, %v3681_v17  ;;  %v2408_v55 = vadd.f32 %v2337_v5, %v3683_v20  ;;  %v2364_v23 = vrot.slane %v2363_v49, 1  ;;  %v2350_v3 = vrot.slane %v2349_v52, 1  ;;  %v2322_v19 = vpop.permute.xlu1 %2321 }
 0xe3c   :  { %v2376_v60 = vrot.slane %v2375_v62, 2  ;;  %v2355_v10 = vrot.slane %v2354_v1, 2  ;;  %v2367_v15 = vrot.slane %v2366_v47, 4  ;;  %v2330_v41 = vmul.f32 %v2322_v19, %v3687_v30 }
 0xe3d   :  { %v2417_v63 = vmul.f32 0.17677669, %v2409_v18  ;;  %v2416_v32 = vmul.f32 0.17677669, %v2408_v55  ;;  %v2365_v8 = vadd.f32 %v2364_v23, %v2363_v49  ;;  %v2351_v21 = vadd.f32 %v2350_v3, %v2349_v52 }
 0xe3e   :  { %v2377_v11 = vadd.f32 %v2376_v60, %v2375_v62  ;;  %v2356_v37 = vadd.f32 %v2355_v10, %v2354_v1  ;;  %v2368_v61 = vadd.f32 %v2367_v15, %v2366_v47  ;;  %v2380_v42 = vsel %vm1019_vm2, %v2330_v41, 0.0 }
 0xe3f   :  { %3300 = vtanh.f32 %v2417_v63  ;;  %v2412_v9 = vadd.f32 %v2365_v8, %v3700_v54  ;;  %v2410_v39 = vadd.f32 %v2351_v21, %v3685_v26  ;;  %v2381_v44 = vrot.slane %v2380_v42, 4 }
 0xe40   :  { %3302 = vtanh.f32 %v2416_v32  ;;  %v2378_v53 = vrot.slane %v2377_v11, 1  ;;  %v2357_v22 = vrot.slane %v2356_v37, 1  ;;  %v2369_v28 = vrot.slane %v2368_v61, 2 }
 0xe41   :  { %v2418_v5 = vmul.f32 0.17677669, %v2410_v39  ;;  %v2382_v18 = vadd.f32 %v2381_v44, %v2380_v42  ;;  %v2420_v62 = vmul.f32 0.17677669, %v2412_v9 }
 0xe42   :  { %v2379_v55 = vadd.f32 %v2378_v53, %v2377_v11  ;;  %v2358_v49 = vadd.f32 %v2357_v22, %v2356_v37  ;;  %v2370_v52 = vadd.f32 %v2369_v28, %v2368_v61 }
 0xe43   :  { %v2383_v10 = vrot.slane %v2382_v18, 2  ;;  %3304 = vtanh.f32 %v2418_v5 }
 0xe44   :  { %v2414_v15 = vadd.f32 %v2379_v55, %v3709_v7  ;;  %v2411_v1 = vadd.f32 %v2358_v49, %v3698_v46  ;;  %v2371_v47 = vrot.slane %v2370_v52, 1  ;;  %3306 = vtanh.f32 %v2420_v62 }
 0xe45   :  { %v2384_v23 = vadd.f32 %v2383_v10, %v2382_v18 }
 0xe46   :  { %v2419_v3 = vmul.f32 0.17677669, %v2411_v1  ;;  %v2372_v19 = vadd.f32 %v2371_v47, %v2370_v52  ;;  %v2422_v60 = vmul.f32 0.17677669, %v2414_v15  ;;  %v4192_v1 = vmax.f32 %v4119_v16, %v4141_v0 }
 0xe47   :  { %v2385_v41 = vrot.slane %v2384_v23, 1 }
 0xe48   :  { %v2413_v63 = vadd.f32 %v2372_v19, %v3702_v56  ;;  %3308 = vtanh.f32 %v2419_v3  ;;  %vm2440_vm10 = vcmp.gt.f32.partialorder %v4192_v1, 0.5 }
 0xe49   :  { %v3301_v32 = vpop.eup %3300  ;;  %v2386_v8 = vadd.f32 %v2385_v41, %v2384_v23  ;;  %3310 = vtanh.f32 %v2422_v60 }
 0xe4a   :  { %v3303_v21 = vpop.eup %3302  ;;  %v2433_v11 = vmul.f32 10.0, %v3301_v32  ;;  %v2421_v37 = vmul.f32 0.17677669, %v2413_v63 }
 0xe4b   :  { %v2432_v61 = vmul.f32 10.0, %v3303_v21  ;;  %v2415_v42 = vadd.f32 %v2386_v8, %v3707_v4 }
 0xe4c   :  { %3312 = vtanh.f32 %v2421_v37 }
 0xe4d   :  { %v2423_v9 = vmul.f32 0.17677669, %v2415_v42  ;;  %v2449_v39 = vsel %vm1135_vm3, %v2433_v11, %v2432_v61  ;;  %v3305_v44 = vpop.eup %3304 }
 0xe4e   :  { %v2434_v53 = vmul.f32 10.0, %v3305_v44  ;;  %v3307_v28 = vpop.eup %3306 }
 0xe4f   :  { %3314 = vtanh.f32 %v2423_v9  ;;  %v2436_v49 = vmul.f32 10.0, %v3307_v28 }
 0xe50   :  { %v2450_v22 = vsel %vm1137_vm4, %v2434_v53, %v2449_v39 }
 0xe52   :  { %v3309_v5 = vpop.eup %3308 }
 0xe53   :  { %v2435_v18 = vmul.f32 10.0, %v3309_v5  ;;  %v3311_v55 = vpop.eup %3310 }
 0xe54   :  { %v2438_v47 = vmul.f32 10.0, %v3311_v55 }
 0xe55   :  { %v2451_v62 = vsel %vm1139_vm5, %v2435_v18, %v2450_v22 }
 0xe56   :  { %v3313_v52 = vpop.eup %3312  ;;  %v2452_v15 = vsel %vm1141_vm6, %v2436_v49, %v2451_v62 }
 0xe57   :  { %v2437_v10 = vmul.f32 10.0, %v3313_v52 }
 0xe59   :  { %v3315_v23 = vpop.eup %3314  ;;  %v2453_v3 = vsel %vm1143_vm7, %v2437_v10, %v2452_v15 }
 0xe5a   :  { %v2439_v19 = vmul.f32 10.0, %v3315_v23  ;;  %v2454_v60 = vsel %vm1145_vm8, %v2438_v47, %v2453_v3 }
 0xe5c   :  { %v2455_v41 = vsel %vm1147_vm9, %v2439_v19, %v2454_v60 }
 0xe5d   :  { %v4198_v63 = vsel %vm2440_vm10, -1e+09, %v2455_v41  ;;  %vm4715_vm10 = vcmp.eq.s32.totalorder %v3754_v57, 5 }
 0xe5e   :  { %4747 = vst [vmem:[#allocation20_spill] sm:$0xff] %v4198_v63  ;;  %v2458_v32 = vsel %vm1019_vm2, %v4198_v63, -inf  ;;  %v2495_v18 = vsel %vm4715_vm10, 1, %v4734_v58  ;;  %vm2729_vm10 = vcmp.eq.s32.totalorder %v3754_v57, 6 }
 0xe5f   :  { %2459 = vmax.xlane.f32.xlu0 %v2458_v32 }
 0xeec   :  { %v4202_v8 = vpop.xlane.xlu0 %2459 }
 0xeed   :  { %4748 = vst [vmem:[#allocation21_spill] sm:$0xff] %v4202_v8  ;;  %vm2470_vm11 = vcmp.ge.f32.partialorder %v4198_v63, %v4202_v8 }
 0xeee   :  { %v2471_v16 = vsel %vm2470_vm11, %v3754_v57, 8 }
 0xeef   :  { %v2472_v21 = vsel %vm1019_vm2, %v2471_v16, 2147483647 }
 0xef0   :  { %v2474_v11 = vshra.s32 %v2472_v21, 16  ;;  %v2473_v61 = vand.u32 65535, %v2472_v21 }
 0xef2   :  { %v2476_v37 = vcvt.s32.f32 %v2474_v11  ;;  %v2475_v9 = vcvt.s32.f32 %v2473_v61 }
 0xef4   :  { %2477 = vmin.xlane.f32.xlu1 %v2476_v37 }
 0xf81   :  { %v2478_v42 = vpop.xlane.xlu1 %2477 }
 0xf82   :  { %vm2479_vm1 = vcmp.eq.f32.partialorder %v2476_v37, %v2478_v42  ;;  %v2484_v44 = vcvt.f32.s32 %v2478_v42 }
 0xf83   :  { %v2480_v39 = vsel %vm2479_vm1, %v2475_v9, inf }
 0xf84   :  { %2481 = vmin.xlane.f32.xlu0 %v2480_v39  ;;  %v2485_v22 = vshll.u32 %v2484_v44, 16 }
0x1011   :  { %v2482_v53 = vpop.xlane.xlu0 %2481 }
0x1012   :  { %v2483_v28 = vcvt.f32.s32 %v2482_v53 }
0x1014   :  { %v2486_v5 = vadd.s32 %v2485_v22, %v2483_v28 }
0x1016   :  { %vm2487_vm11 = vcmp.eq.s32.totalorder %v3754_v57, %v2486_v5  ;;  %v2496_v49 = vmul.u32 %v2495_v18, %v2486_v5 }
0x1017   :  { %v4214_v55 = vsel %vm2487_vm11, 1.0, %v4735_v31 }
0x1018   :  { %v2512_v52 = vrot.slane %v4214_v55, %v3529_v25  ;;  %v2505_v62 = vrot.slane %v4214_v55, %v3526_v24  ;;  %v4221_v10 = vadd.s32 %v2496_v49, %v4148_v50  ;;  %v2519_v15 = vrot.slane %v4214_v55, %v3841_v29 }
0x1019   :  { %v2526_v47 = vrot.slane %v4214_v55, %v3851_v35  ;;  %v2533_v23 = vrot.slane %v4214_v55, %v3838_v27  ;;  %v2540_v3 = vrot.slane %v4214_v55, %v3858_v43  ;;  %v2547_v50 = vrot.slane %v4214_v55, %v3848_v34 }
0x101a   :  { %2514 = vbcast.lane.b32.xlu1 %v2512_v52, 256  ;;  %2507 = vbcast.lane.b32.xlu0 %v2505_v62, 256  ;;  %v2554_v19 = vrot.slane %v4214_v55, %v3863_v59 }
0x101e   :  { %2521 = vbcast.lane.b32.xlu1 %v2519_v15, 256  ;;  %2528 = vbcast.lane.b32.xlu0 %v2526_v47, 256 }
0x1022   :  { %2535 = vbcast.lane.b32.xlu1 %v2533_v23, 256  ;;  %2542 = vbcast.lane.b32.xlu0 %v2540_v3, 256 }
0x1026   :  { %2549 = vbcast.lane.b32.xlu1 %v2547_v50, 256  ;;  %2556 = vbcast.lane.b32.xlu0 %v2554_v19, 256 }
0x108c   :  { %v2515_v60 = vpop.permute.xlu1 %2514  ;;  %v2508_v41 = vpop.permute.xlu0 %2507 }
0x108d   :  { %v2559_v32 = vmul.f32 %v2515_v60, %v3657_v36  ;;  %v2558_v16 = vmul.f32 %v2508_v41, %v3661_v38 }
0x108f   :  { %v2573_v21 = vsel %vm1019_vm2, %v2559_v32, 0.0  ;;  %v2566_v11 = vsel %vm1019_vm2, %v2558_v16, 0.0 }
0x1090   :  { %v2574_v37 = vrot.slane %v2573_v21, 4  ;;  %v2567_v61 = vrot.slane %v2566_v11, 4  ;;  %v2522_v42 = vpop.permute.xlu1 %2521  ;;  %v2529_v9 = vpop.permute.xlu0 %2528 }
0x1091   :  { %v2560_v39 = vmul.f32 %v2522_v42, %v3669_v51  ;;  %v2561_v44 = vmul.f32 %v2529_v9, %v3665_v48 }
0x1092   :  { %v2575_v53 = vadd.f32 %v2574_v37, %v2573_v21  ;;  %v2568_v22 = vadd.f32 %v2567_v61, %v2566_v11 }
0x1093   :  { %v2580_v28 = vsel %vm1019_vm2, %v2560_v39, 0.0  ;;  %v2587_v5 = vsel %vm1019_vm2, %v2561_v44, 0.0 }
0x1094   :  { %v2576_v18 = vrot.slane %v2575_v53, 2  ;;  %v2569_v49 = vrot.slane %v2568_v22, 2  ;;  %v2581_v52 = vrot.slane %v2580_v28, 4  ;;  %v2588_v62 = vrot.slane %v2587_v5, 4  ;;  %v2536_v15 = vpop.permute.xlu1 %2535  ;;  %v2543_v47 = vpop.permute.xlu0 %2542 }
0x1095   :  { %v2562_v23 = vmul.f32 %v2536_v15, %v3677_v6  ;;  %v2563_v3 = vmul.f32 %v2543_v47, %v3673_v2 }
0x1096   :  { %v2577_v50 = vadd.f32 %v2576_v18, %v2575_v53  ;;  %v2570_v19 = vadd.f32 %v2569_v49, %v2568_v22  ;;  %v2582_v60 = vadd.f32 %v2581_v52, %v2580_v28  ;;  %v2589_v41 = vadd.f32 %v2588_v62, %v2587_v5 }
0x1097   :  { %v2594_v32 = vsel %vm1019_vm2, %v2562_v23, 0.0  ;;  %v2601_v16 = vsel %vm1019_vm2, %v2563_v3, 0.0 }
0x1098   :  { %v2578_v21 = vrot.slane %v2577_v50, 1  ;;  %v2571_v11 = vrot.slane %v2570_v19, 1  ;;  %v2583_v37 = vrot.slane %v2582_v60, 2  ;;  %v2590_v61 = vrot.slane %v2589_v41, 2  ;;  %v2550_v42 = vpop.permute.xlu1 %2549  ;;  %v2557_v9 = vpop.permute.xlu0 %2556 }
0x1099   :  { %v2595_v39 = vrot.slane %v2594_v32, 4  ;;  %v2602_v44 = vrot.slane %v2601_v16, 4  ;;  %v2564_v15 = vmul.f32 %v2550_v42, %v3691_v33  ;;  %v2565_v47 = vmul.f32 %v2557_v9, %v3687_v30 }
0x109a   :  { %v2579_v53 = vadd.f32 %v2578_v21, %v2577_v50  ;;  %v2572_v22 = vadd.f32 %v2571_v11, %v2570_v19  ;;  %v2584_v28 = vadd.f32 %v2583_v37, %v2582_v60  ;;  %v2591_v5 = vadd.f32 %v2590_v61, %v2589_v41 }
0x109b   :  { %v2596_v18 = vadd.f32 %v2595_v39, %v2594_v32  ;;  %v2603_v49 = vadd.f32 %v2602_v44, %v2601_v16  ;;  %v2608_v52 = vsel %vm1019_vm2, %v2564_v15, 0.0  ;;  %v2615_v62 = vsel %vm1019_vm2, %v2565_v47, 0.0 }
0x109c   :  { %v2644_v23 = vadd.f32 %v2579_v53, %v3681_v17  ;;  %v2643_v3 = vadd.f32 %v2572_v22, %v3683_v20  ;;  %v2585_v0 = vrot.slane %v2584_v28, 1  ;;  %v2592_v40 = vrot.slane %v2591_v5, 1 }
0x109d   :  { %v2597_v63 = vrot.slane %v2596_v18, 2  ;;  %v2604_v42 = vrot.slane %v2603_v49, 2  ;;  %v2609_v8 = vrot.slane %v2608_v52, 4  ;;  %v2616_v9 = vrot.slane %v2615_v62, 4 }
0x109e   :  { %v2652_v50 = vmul.f32 0.17677669, %v2644_v23  ;;  %v2651_v19 = vmul.f32 0.17677669, %v2643_v3  ;;  %v2586_v60 = vadd.f32 %v2585_v0, %v2584_v28  ;;  %v2593_v41 = vadd.f32 %v2592_v40, %v2591_v5 }
0x109f   :  { %v2598_v32 = vadd.f32 %v2597_v63, %v2596_v18  ;;  %v2605_v16 = vadd.f32 %v2604_v42, %v2603_v49  ;;  %v2610_v21 = vadd.f32 %v2609_v8, %v2608_v52  ;;  %v2617_v11 = vadd.f32 %v2616_v9, %v2615_v62 }
0x10a0   :  { %3316 = vtanh.f32 %v2652_v50  ;;  %v2645_v37 = vadd.f32 %v2586_v60, %v3685_v26  ;;  %v2646_v61 = vadd.f32 %v2593_v41, %v3698_v46 }
0x10a1   :  { %3318 = vtanh.f32 %v2651_v19  ;;  %v2599_v39 = vrot.slane %v2598_v32, 1  ;;  %v2606_v44 = vrot.slane %v2605_v16, 1  ;;  %v2611_v15 = vrot.slane %v2610_v21, 2 }
0x10a2   :  { %v2653_v47 = vmul.f32 0.17677669, %v2645_v37  ;;  %v2654_v53 = vmul.f32 0.17677669, %v2646_v61  ;;  %v2618_v22 = vrot.slane %v2617_v11, 2 }
0x10a3   :  { %v2600_v23 = vadd.f32 %v2599_v39, %v2598_v32  ;;  %v2607_v3 = vadd.f32 %v2606_v44, %v2605_v16  ;;  %v2612_v0 = vadd.f32 %v2611_v15, %v2610_v21 }
0x10a4   :  { %3320 = vtanh.f32 %v2653_v47  ;;  %v2619_v40 = vadd.f32 %v2618_v22, %v2617_v11 }
0x10a5   :  { %3322 = vtanh.f32 %v2654_v53  ;;  %v2647_v63 = vadd.f32 %v2600_v23, %v3700_v54  ;;  %v2648_v8 = vadd.f32 %v2607_v3, %v3702_v56  ;;  %v2613_v28 = vrot.slane %v2612_v0, 1 }
0x10a6   :  { %v2620_v5 = vrot.slane %v2619_v40, 1 }
0x10a7   :  { %v2655_v18 = vmul.f32 0.17677669, %v2647_v63  ;;  %v2656_v49 = vmul.f32 0.17677669, %v2648_v8  ;;  %v2614_v52 = vadd.f32 %v2613_v28, %v2612_v0 }
0x10a8   :  { %v2621_v62 = vadd.f32 %v2620_v5, %v2619_v40  ;;  %v4265_v40 = vmax.f32 %v4192_v1, %v4214_v55 }
0x10a9   :  { %3324 = vtanh.f32 %v2655_v18  ;;  %v2649_v42 = vadd.f32 %v2614_v52, %v3709_v7 }
0x10aa   :  { %v3317_v9 = vpop.eup %3316  ;;  %3326 = vtanh.f32 %v2656_v49  ;;  %v2650_v50 = vadd.f32 %v2621_v62, %v3707_v4  ;;  %vm2675_vm1 = vcmp.gt.f32.partialorder %v4265_v40, 0.5 }
0x10ab   :  { %v3319_v19 = vpop.eup %3318  ;;  %v2668_v60 = vmul.f32 10.0, %v3317_v9  ;;  %v2657_v41 = vmul.f32 0.17677669, %v2649_v42 }
0x10ac   :  { %v2667_v32 = vmul.f32 10.0, %v3319_v19  ;;  %v2658_v16 = vmul.f32 0.17677669, %v2650_v50 }
0x10ad   :  { %3328 = vtanh.f32 %v2657_v41 }
0x10ae   :  { %v3321_v21 = vpop.eup %3320  ;;  %3330 = vtanh.f32 %v2658_v16  ;;  %v2684_v11 = vsel %vm1135_vm3, %v2668_v60, %v2667_v32 }
0x10af   :  { %v3323_v37 = vpop.eup %3322  ;;  %v2669_v61 = vmul.f32 10.0, %v3321_v21 }
0x10b0   :  { %v2670_v39 = vmul.f32 10.0, %v3323_v37 }
0x10b1   :  { %v2685_v44 = vsel %vm1137_vm4, %v2669_v61, %v2684_v11 }
0x10b2   :  { %v2686_v15 = vsel %vm1139_vm5, %v2670_v39, %v2685_v44  ;;  %v2730_v44 = vsel %vm2729_vm10, 1, %v4734_v58 }
0x10b3   :  { %v3325_v47 = vpop.eup %3324 }
0x10b4   :  { %v3327_v53 = vpop.eup %3326  ;;  %v2671_v22 = vmul.f32 10.0, %v3325_v47 }
0x10b5   :  { %v2672_v23 = vmul.f32 10.0, %v3327_v53 }
0x10b6   :  { %v2687_v3 = vsel %vm1141_vm6, %v2671_v22, %v2686_v15 }
0x10b7   :  { %v3329_v0 = vpop.eup %3328  ;;  %v2688_v63 = vsel %vm1143_vm7, %v2672_v23, %v2687_v3 }
0x10b8   :  { %v3331_v8 = vpop.eup %3330  ;;  %v2673_v28 = vmul.f32 10.0, %v3329_v0 }
0x10b9   :  { %v2674_v5 = vmul.f32 10.0, %v3331_v8 }
0x10ba   :  { %v2689_v18 = vsel %vm1145_vm8, %v2673_v28, %v2688_v63 }
0x10bb   :  { %v2690_v49 = vsel %vm1147_vm9, %v2674_v5, %v2689_v18 }
0x10bc   :  { %v4271_v52 = vsel %vm2675_vm1, -1e+09, %v2690_v49 }
0x10bd   :  { %v2693_v62 = vsel %vm1019_vm2, %v4271_v52, -inf }
0x10be   :  { %2694 = vmax.xlane.f32.xlu1 %v2693_v62 }
0x114b   :  { %v4275_v42 = vpop.xlane.xlu1 %2694 }
0x114c   :  { %vm2705_vm11 = vcmp.ge.f32.partialorder %v4271_v52, %v4275_v42 }
0x114d   :  { %v2706_v1 = vsel %vm2705_vm11, %v3754_v57, 8 }
0x114e   :  { %v2707_v9 = vsel %vm1019_vm2, %v2706_v1, 2147483647 }
0x114f   :  { %v2709_v50 = vshra.s32 %v2707_v9, 16  ;;  %v2708_v60 = vand.u32 65535, %v2707_v9 }
0x1151   :  { %v2711_v19 = vcvt.s32.f32 %v2709_v50  ;;  %v2710_v32 = vcvt.s32.f32 %v2708_v60 }
0x1153   :  { %2712 = vmin.xlane.f32.xlu0 %v2711_v19 }
0x11e0   :  { %v2713_v41 = vpop.xlane.xlu0 %2712 }
0x11e1   :  { %vm2714_vm1 = vcmp.eq.f32.partialorder %v2711_v19, %v2713_v41  ;;  %v2719_v21 = vcvt.f32.s32 %v2713_v41  ;;  %v4750_v41 = vrot.slane %v3745_v45, 2 }
0x11e2   :  { %v2715_v16 = vsel %vm2714_vm1, %v2710_v32, inf  ;;  %v4752_v32 = vld [vmem:[#allocation3_spill] sm:$0xff] }
0x11e3   :  { %2716 = vmin.xlane.f32.xlu0 %v2715_v16  ;;  %v2720_v37 = vshll.u32 %v2719_v21, 16 }
0x1270   :  { %v2717_v11 = vpop.xlane.xlu0 %2716 }
0x1271   :  { %v2718_v61 = vcvt.f32.s32 %v2717_v11 }
0x1273   :  { %v2721_v39 = vadd.s32 %v2720_v37, %v2718_v61 }
0x1275   :  { %vm2722_vm11 = vcmp.eq.s32.totalorder %v3754_v57, %v2721_v39  ;;  %v2731_v47 = vmul.u32 %v2730_v44, %v2721_v39 }
0x1276   :  { %v4287_v15 = vsel %vm2722_vm11, 1.0, %v4735_v31 }
0x1277   :  { %v2747_v53 = vrot.slane %v4287_v15, %v3529_v25  ;;  %v2740_v22 = vrot.slane %v4287_v15, %v3526_v24  ;;  %v4294_v23 = vadd.s32 %v2731_v47, %v4221_v10  ;;  %v2768_v3 = vrot.slane %v4287_v15, %v3838_v27 }
0x1278   :  { %v2754_v0 = vrot.slane %v4287_v15, %v3841_v29  ;;  %v2782_v63 = vrot.slane %v4287_v15, %v3848_v34  ;;  %v2761_v25 = vrot.slane %v4287_v15, %v3851_v35  ;;  %v2775_v24 = vrot.slane %v4287_v15, %v3858_v43 }
0x1279   :  { %2749 = vbcast.lane.b32.xlu0 %v2747_v53, 256  ;;  %2742 = vbcast.lane.b32.xlu1 %v2740_v22, 256  ;;  %v2789_v27 = vrot.slane %v4287_v15, %v3863_v59  ;;  %v4312_v34 = vsub.f32 %v3713_v12, %v3745_v45  ;;  %v4753_v53 = vrot.slane %v3745_v45, 4  ;;  %v4754_v22 = vld [vmem:[#allocation2_spill] sm:$0xff] }
0x127b   :  { %v4324_v12 = vmul.f32 1.442695, %v4312_v34 }
0x127d   :  { %2770 = vbcast.lane.b32.xlu0 %v2768_v3, 256  ;;  %2756 = vbcast.lane.b32.xlu1 %v2754_v0, 256 }
0x1281   :  { %2784 = vbcast.lane.b32.xlu0 %v2782_v63, 256  ;;  %2763 = vbcast.lane.b32.xlu1 %v2761_v25, 256 }
0x1285   :  { %2777 = vbcast.lane.b32.xlu1 %v2775_v24, 256 }
0x1289   :  { %2791 = vbcast.lane.b32.xlu1 %v2789_v27, 256 }
0x12eb   :  { %v2750_v10 = vpop.permute.xlu0 %2749  ;;  %v2743_v29 = vpop.permute.xlu1 %2742 }
0x12ec   :  { %v2794_v8 = vmul.f32 %v2750_v10, %v3657_v36  ;;  %v2793_v28 = vmul.f32 %v2743_v29, %v3661_v38  ;;  %v4749_v36 = vrot.slane %v3745_v45, 1 }
0x12ee   :  { %v2808_v35 = vsel %vm1019_vm2, %v2794_v8, 0.0  ;;  %v2801_v5 = vsel %vm1019_vm2, %v2793_v28, 0.0  ;;  %v4321_v38 = vsub.f32 %v3715_v13, %v4749_v36 }
0x12ef   :  { %v2809_v43 = vrot.slane %v2808_v35, 4  ;;  %v2802_v18 = vrot.slane %v2801_v5, 4  ;;  %v2771_v49 = vpop.permute.xlu0 %2770  ;;  %v2757_v62 = vpop.permute.xlu1 %2756 }
0x12f0   :  { %v2797_v59 = vmul.f32 %v2771_v49, %v3677_v6  ;;  %v2795_v1 = vmul.f32 %v2757_v62, %v3669_v51  ;;  %v4331_v6 = vsub.f32 %v3717_v14, %v4750_v41  ;;  %v4751_v51 = vrot.slane %v3745_v45, 3 }
0x12f1   :  { %v2810_v9 = vadd.f32 %v2809_v43, %v2808_v35  ;;  %v2803_v50 = vadd.f32 %v2802_v18, %v2801_v5  ;;  %v4343_v14 = vsub.f32 %v4754_v22, %v4753_v53  ;;  %v1179_v3 = vmul.f32 1.442695, %v4321_v38 }
0x12f2   :  { %v2829_v19 = vsel %vm1019_vm2, %v2797_v59, 0.0  ;;  %v2815_v60 = vsel %vm1019_vm2, %v2795_v1, 0.0  ;;  %v4336_v16 = vsub.f32 %v4752_v32, %v4751_v51  ;;  %v1181_v29 = vmul.f32 1.442695, %v4331_v6 }
0x12f3   :  { %v2811_v13 = vrot.slane %v2810_v9, 2  ;;  %v2804_v21 = vrot.slane %v2803_v50, 2  ;;  %v2830_v11 = vrot.slane %v2829_v19, 4  ;;  %v2816_v37 = vrot.slane %v2815_v60, 4  ;;  %v2785_v61 = vpop.permute.xlu0 %2784  ;;  %v2764_v39 = vpop.permute.xlu1 %2763 }
0x12f4   :  { %v2799_v44 = vmul.f32 %v2785_v61, %v3691_v33  ;;  %v2796_v47 = vmul.f32 %v2764_v39, %v3665_v48  ;;  %v1183_v33 = vmul.f32 1.442695, %v4336_v16  ;;  %3332 = vpow2.f32 %v1179_v3 }
0x12f5   :  { %v2812_v0 = vadd.f32 %v2811_v13, %v2810_v9  ;;  %v2805_v63 = vadd.f32 %v2804_v21, %v2803_v50  ;;  %v2831_v25 = vadd.f32 %v2830_v11, %v2829_v19  ;;  %v2817_v24 = vadd.f32 %v2816_v37, %v2815_v60 }
0x12f6   :  { %v2843_v27 = vsel %vm1019_vm2, %v2799_v44, 0.0  ;;  %v2822_v10 = vsel %vm1019_vm2, %v2796_v47, 0.0  ;;  %3334 = vpow2.f32 %v1181_v29 }
0x12f7   :  { %v2813_v48 = vrot.slane %v2812_v0, 1  ;;  %v2806_v8 = vrot.slane %v2805_v63, 1  ;;  %v2832_v28 = vrot.slane %v2831_v25, 2  ;;  %v2818_v35 = vrot.slane %v2817_v24, 2  ;;  %v2778_v5 = vpop.permute.xlu1 %2777 }
0x12f8   :  { %v2844_v43 = vrot.slane %v2843_v27, 4  ;;  %v2823_v18 = vrot.slane %v2822_v10, 4  ;;  %v2798_v49 = vmul.f32 %v2778_v5, %v3673_v2  ;;  %v4756_v5 = vld [vmem:[#allocation4_spill] sm:$0xff] }
0x12f9   :  { %v2814_v62 = vadd.f32 %v2813_v48, %v2812_v0  ;;  %v2807_v59 = vadd.f32 %v2806_v8, %v2805_v63  ;;  %v2833_v1 = vadd.f32 %v2832_v28, %v2831_v25  ;;  %v2819_v36 = vadd.f32 %v2818_v35, %v2817_v24 }
0x12fa   :  { %v2845_v9 = vadd.f32 %v2844_v43, %v2843_v27  ;;  %v2824_v50 = vadd.f32 %v2823_v18, %v2822_v10  ;;  %v2836_v19 = vsel %vm1019_vm2, %v2798_v49, 0.0  ;;  %v4755_v35 = vrot.slane %v3745_v45, 5 }
0x12fb   :  { %v2879_v60 = vadd.f32 %v2814_v62, %v3681_v17  ;;  %v2878_v41 = vadd.f32 %v2807_v59, %v3683_v20  ;;  %v2834_v51 = vrot.slane %v2833_v1, 1  ;;  %v2820_v32 = vrot.slane %v2819_v36, 1  ;;  %v2792_v13 = vpop.permute.xlu1 %2791 }
0x12fc   :  { %v2846_v21 = vrot.slane %v2845_v9, 2  ;;  %v2825_v11 = vrot.slane %v2824_v50, 2  ;;  %v2837_v2 = vrot.slane %v2836_v19, 4  ;;  %v2800_v37 = vmul.f32 %v2792_v13, %v3687_v30 }
0x12fd   :  { %v2887_v61 = vmul.f32 0.17677669, %v2879_v60  ;;  %v2886_v39 = vmul.f32 0.17677669, %v2878_v41  ;;  %v2835_v44 = vadd.f32 %v2834_v51, %v2833_v1  ;;  %v2821_v47 = vadd.f32 %v2820_v32, %v2819_v36 }
0x12fe   :  { %v2847_v53 = vadd.f32 %v2846_v21, %v2845_v9  ;;  %v2826_v22 = vadd.f32 %v2825_v11, %v2824_v50  ;;  %v2838_v3 = vadd.f32 %v2837_v2, %v2836_v19  ;;  %v2850_v0 = vsel %vm1019_vm2, %v2800_v37, 0.0  ;;  %v3333_v29 = vpop.eup %3332  ;;  %v4758_v9 = vld [vmem:[#allocation5_spill] sm:$0xff] }
0x12ff   :  { %3336 = vtanh.f32 %v2887_v61  ;;  %v2882_v17 = vadd.f32 %v2835_v44, %v3700_v54  ;;  %v2880_v20 = vadd.f32 %v2821_v47, %v3685_v26  ;;  %v2851_v63 = vrot.slane %v2850_v0, 4 }
0x1300   :  { %3338 = vtanh.f32 %v2886_v39  ;;  %v2848_v25 = vrot.slane %v2847_v53, 1  ;;  %v2827_v24 = vrot.slane %v2826_v22, 1  ;;  %v2839_v27 = vrot.slane %v2838_v3, 2  ;;  %v3335_v49 = vpop.eup %3334 }
0x1301   :  { %3340 = vpow2.f32 %v4324_v12  ;;  %v2888_v30 = vmul.f32 0.17677669, %v2880_v20  ;;  %v2852_v10 = vadd.f32 %v2851_v63, %v2850_v0  ;;  %v4362_v43 = vsub.f32 %v4756_v5, %v4755_v35 }
0x1302   :  { %v2849_v48 = vadd.f32 %v2848_v25, %v2847_v53  ;;  %v2828_v8 = vadd.f32 %v2827_v24, %v2826_v22  ;;  %v2840_v28 = vadd.f32 %v2839_v27, %v2838_v3  ;;  %v2890_v54 = vmul.f32 0.17677669, %v2882_v17 }
0x1303   :  { %v2853_v26 = vrot.slane %v2852_v10, 2  ;;  %3342 = vpow2.f32 %v1183_v33  ;;  %v1185_v18 = vmul.f32 1.442695, %v4343_v14  ;;  %v4757_v36 = vrot.slane %v3745_v45, 6 }
0x1304   :  { %3344 = vtanh.f32 %v2888_v30  ;;  %v2884_v12 = vadd.f32 %v2849_v48, %v3709_v7  ;;  %v2881_v62 = vadd.f32 %v2828_v8, %v3698_v46  ;;  %v2841_v59 = vrot.slane %v2840_v28, 1  ;;  %v4760_v46 = vld [vmem:[#allocation6_spill] sm:$0xff] }
0x1305   :  { %v2854_v1 = vadd.f32 %v2853_v26, %v2852_v10  ;;  %v4370_v50 = vsub.f32 %v4758_v9, %v4757_v36  ;;  %v1187_v41 = vmul.f32 1.442695, %v4362_v43  ;;  %3346 = vpow2.f32 %v1185_v18 }
0x1306   :  { %v2889_v19 = vmul.f32 0.17677669, %v2881_v62  ;;  %v2842_v60 = vadd.f32 %v2841_v59, %v2840_v28  ;;  %v2892_v33 = vmul.f32 0.17677669, %v2884_v12  ;;  %3348 = vtanh.f32 %v2890_v54 }
0x1307   :  { %v2855_v51 = vrot.slane %v2854_v1, 1  ;;  %v4759_v7 = vrot.slane %v3745_v45, 7  ;;  %v1189_v2 = vmul.f32 1.442695, %v4370_v50  ;;  %v1201_v37 = vrot.slane %v3333_v29, 7 }
0x1308   :  { %v2883_v32 = vadd.f32 %v2842_v60, %v3702_v56  ;;  %3350 = vtanh.f32 %v2889_v19  ;;  %v1203_v22 = vrot.slane %v3335_v49, 6  ;;  %v2736_v36 = vmax.f32 %v4265_v40, %v4287_v15 }
0x1309   :  { %v4377_v13 = vsub.f32 %v4760_v46, %v4759_v7  ;;  %v3337_v21 = vpop.eup %3336  ;;  %v2856_v11 = vadd.f32 %v2855_v51, %v2854_v1  ;;  %3352 = vpow2.f32 %v1187_v41 }
0x130a   :  { %v3339_v61 = vpop.eup %3338  ;;  %v2903_v39 = vmul.f32 10.0, %v3337_v21  ;;  %v2891_v44 = vmul.f32 0.17677669, %v2883_v32  ;;  %3354 = vtanh.f32 %v2892_v33  ;;  %vm2910_vm1 = vcmp.gt.f32.partialorder %v2736_v36, 0.5 }
0x130b   :  { %v3341_v47 = vpop.eup %3340  ;;  %v2902_v53 = vmul.f32 10.0, %v3339_v61  ;;  %v2885_v56 = vadd.f32 %v2856_v11, %v3707_v4  ;;  %v1191_v45 = vmul.f32 1.442695, %v4377_v13 }
0x130c   :  { %3356 = vtanh.f32 %v2891_v44  ;;  %v1202_v20 = vsel %vm1135_vm3, %v1201_v37, %v3341_v47  ;;  %v4762_v44 = vld [vmem:[#allocation8_spill] sm:$0xff] }
0x130d   :  { %v3343_v3 = vpop.eup %3342  ;;  %v2893_v0 = vmul.f32 0.17677669, %v2885_v56  ;;  %v2919_v17 = vsel %vm1135_vm3, %v2903_v39, %v2902_v53  ;;  %3358 = vpow2.f32 %v1189_v2  ;;  %v1204_v24 = vsel %vm1137_vm4, %v1203_v22, %v1202_v20  ;;  %v4761_v39 = vld [vmem:[#allocation9_spill] sm:$0xff]  ;;  %v4763_v56 = vld [vmem:[#allocation15_spill] sm:$0xff] }
0x130e   :  { %v3345_v63 = vpop.eup %3344  ;;  %v1205_v30 = vrot.slane %v3343_v3, 5  ;;  %v4402_v47 = vsub.f32 %v4762_v44, %v4761_v39  ;;  %v4773_v39 = vld [vmem:[#allocation11_spill] sm:$0xff] }
0x130f   :  { %v2904_v25 = vmul.f32 10.0, %v3345_v63  ;;  %3360 = vtanh.f32 %v2893_v0  ;;  %v3347_v27 = vpop.eup %3346  ;;  %v4765_v0 = vld [vmem:[#allocation21_spill] sm:$0xff] }
0x1310   :  { %3362 = vpow2.f32 %v1191_v45  ;;  %v3349_v10 = vpop.eup %3348  ;;  %v1206_v48 = vsel %vm1139_vm5, %v1205_v30, %v1204_v24  ;;  %v1207_v35 = vrot.slane %v3347_v27, 4  ;;  %v1522_v53 = vmul.f32 1.442695, %v4402_v47  ;;  %v4764_v45 = vld [vmem:[#allocation14_spill] sm:$0xff] }
0x1311   :  { %v2920_v4 = vsel %vm1137_vm4, %v2904_v25, %v2919_v17  ;;  %v2906_v54 = vmul.f32 10.0, %v3349_v10  ;;  %v4407_v22 = vsub.f32 %v4764_v45, %v4763_v56  ;;  %v4766_v17 = vld [vmem:[#allocation20_spill] sm:$0xff]  ;;  %v4774_v56 = vld [vmem:[#allocation18_spill] sm:$0xff]  ;;  %v4775_v45 = vld [vmem:[#allocation17_spill] sm:$0xff] }
0x1312   :  { %v3351_v29 = vpop.eup %3350  ;;  %v1208_v49 = vsel %vm1141_vm6, %v1207_v35, %v1206_v48  ;;  %3364 = vpow2.f32 %v1522_v53  ;;  %v4412_v20 = vsub.f32 %v4766_v17, %v4765_v0  ;;  %v4462_v17 = vsub.f32 %v4271_v52, %v4275_v42 }
0x1313   :  { %v3353_v8 = vpop.eup %3352  ;;  %v2905_v28 = vmul.f32 10.0, %v3351_v29  ;;  %v1992_v3 = vmul.f32 1.442695, %v4407_v22 }
0x1314   :  { %v3355_v5 = vpop.eup %3354  ;;  %v1209_v1 = vrot.slane %v3353_v8, 3  ;;  %v2462_v25 = vmul.f32 1.442695, %v4412_v20 }
0x1315   :  { %v2921_v18 = vsel %vm1139_vm5, %v2905_v28, %v2920_v4  ;;  %v2908_v9 = vmul.f32 10.0, %v3355_v5  ;;  %3366 = vpow2.f32 %v1992_v3  ;;  %v4457_v3 = vsub.f32 %v4775_v45, %v4774_v56 }
0x1316   :  { %v3357_v26 = vpop.eup %3356  ;;  %v2922_v59 = vsel %vm1141_vm6, %v2906_v54, %v2921_v18  ;;  %v1210_v41 = vsel %vm1143_vm7, %v1209_v1, %v1208_v49  ;;  %3368 = vpow2.f32 %v2462_v25  ;;  %v4426_v18 = vld [vmem:[%s4673_s2] sm:$0xff]  ;;  %v2697_v25 = vmul.f32 1.442695, %v4462_v17 }
0x1317   :  { %v3359_v12 = vpop.eup %3358  ;;  %v2907_v62 = vmul.f32 10.0, %v3357_v26  ;;  %v4768_v1 = vld [vmem:[#allocation10_spill] sm:$0xff]  ;;  %v2227_v0 = vmul.f32 1.442695, %v4457_v3 }
0x1318   :  { %v1211_v7 = vrot.slane %v3359_v12, 2  ;;  %v4767_v12 = vld [vmem:[#allocation7_spill] sm:$0xff]  ;;  %v1686_v36 = vmul.f32 %v4768_v1, %v4426_v18 }
0x1319   :  { %v3361_v19 = vpop.eup %3360  ;;  %v2923_v60 = vsel %vm1143_vm7, %v2907_v62, %v2922_v59  ;;  %v1451_v62 = vmul.f32 %v4767_v12, %v4426_v18 }
0x131a   :  { %v3363_v33 = vpop.eup %3362  ;;  %v2909_v51 = vmul.f32 10.0, %v3361_v19  ;;  %v2924_v32 = vsel %vm1145_vm8, %v2908_v9, %v2923_v60  ;;  %v1212_v21 = vsel %vm1145_vm8, %v1211_v7, %v1210_v41  ;;  %v1687_v9 = vsel %vm1019_vm2, %v1686_v36, 0.0  ;;  %v4769_v19 = vld [vmem:[#allocation13_spill] sm:$0xff]  ;;  %v4771_v7 = vld [vmem:[#allocation19_spill] sm:$0xff] }
0x131b   :  { %v1213_v2 = vrot.slane %v3363_v33, 1  ;;  %v1452_v59 = vsel %vm1019_vm2, %v1451_v62, 0.0  ;;  %v1921_v60 = vmul.f32 %v4769_v19, %v4426_v18  ;;  %v4770_v33 = vld [vmem:[#allocation16_spill] sm:$0xff] }
0x131c   :  { %v2925_v46 = vsel %vm1147_vm9, %v2909_v51, %v2924_v32  ;;  %v3365_v48 = vpop.eup %3364  ;;  %v2156_v51 = vmul.f32 %v4770_v33, %v4426_v18 }
0x131d   :  { %v2927_v11 = vsel %vm2910_vm1, -1e+09, %v2925_v46  ;;  %v1214_v37 = vsel %vm1147_vm9, %v1213_v2, %v1212_v21  ;;  %v1524_v8 = vsel %vm1019_vm2, %v3365_v48, 0.0  ;;  %v1922_v41 = vsel %vm1019_vm2, %v1921_v60, 0.0 }
0x131e   :  { %v2928_v40 = vsel %vm1019_vm2, %v2927_v11, -inf  ;;  %v1216_v61 = vsel %vm1019_vm2, %v1214_v37, 0.0  ;;  %v2157_v32 = vsel %vm1019_vm2, %v2156_v51, 0.0  ;;  %v2391_v46 = vmul.f32 %v4771_v7, %v4426_v18 }
0x131f   :  { %2929 = vmax.xlane.f32.xlu0 %v2928_v40  ;;  %v3367_v28 = vpop.eup %3366  ;;  %v2861_v40 = vmul.f32 %v4287_v15, %v4426_v18 }
0x1320   :  { %v1994_v35 = vsel %vm1019_vm2, %v3367_v28, 0.0  ;;  %v3369_v5 = vpop.eup %3368  ;;  %v2392_v21 = vsel %vm1019_vm2, %v2391_v46, 0.0 }
0x1321   :  { %v2464_v54 = vsel %vm1019_vm2, %v3369_v5, 0.0  ;;  %v2862_v37 = vsel %vm1019_vm2, %v2861_v40, 0.0 }
0x1323   :  { %1217 = vadd.xlane.f32.xlu0 %v1216_v61  ;;  %v4772_v61 = vld [vmem:[#allocation12_spill] sm:$0xff] }
0x1324   :  { %v4452_v44 = vsub.f32 %v4773_v39, %v4772_v61 }
0x1326   :  { %v1757_v53 = vmul.f32 1.442695, %v4452_v44 }
0x13ac   :  { %v2930_v63 = vpop.xlane.xlu0 %2929 }
0x13ad   :  { %vm2940_vm11 = vcmp.ge.f32.partialorder %v2927_v11, %v2930_v63  ;;  %v4415_v24 = vsub.f32 %v2927_v11, %v2930_v63  ;;  %v2626_v11 = vmul.f32 %v4214_v55, %v4426_v18 }
0x13ae   :  { %v2941_v27 = vsel %vm2940_vm11, %v3754_v57, 8 }
0x13af   :  { %v2942_v4 = vsel %vm1019_vm2, %v2941_v27, 2147483647  ;;  %v2932_v10 = vmul.f32 1.442695, %v4415_v24  ;;  %v2627_v2 = vsel %vm1019_vm2, %v2626_v11, 0.0 }
0x13b0   :  { %v2944_v30 = vshra.s32 %v2942_v4, 16  ;;  %v2943_v63 = vand.u32 65535, %v2942_v4  ;;  %v4473_v4 = vld [vmem:[%s4674_s1] sm:$0xff] }
0x13b1   :  { %3370 = vpow2.f32 %v2932_v10 }
0x13b2   :  { %v2946_v29 = vcvt.s32.f32 %v2944_v30  ;;  %3372 = vpow2.f32 %v1757_v53  ;;  %v2945_v30 = vcvt.s32.f32 %v2943_v63 }
0x13b3   :  { %3374 = vpow2.f32 %v2227_v0 }
0x13b4   :  { %2947 = vmin.xlane.f32.xlu1 %v2946_v29  ;;  %3376 = vpow2.f32 %v2697_v25 }
0x13b8   :  { %1525 = vadd.xlane.f32.xlu1 %v1524_v8 }
0x13bb   :  { %v3371_v26 = vpop.eup %3370 }
0x13bc   :  { %1995 = vadd.xlane.f32.xlu1 %v1994_v35  ;;  %v2934_v49 = vsel %vm1019_vm2, %v3371_v26, 0.0  ;;  %v3373_v48 = vpop.eup %3372 }
0x13bd   :  { %v1759_v8 = vsel %vm1019_vm2, %v3373_v48, 0.0  ;;  %v3375_v28 = vpop.eup %3374 }
0x13be   :  { %v2229_v52 = vsel %vm1019_vm2, %v3375_v28, 0.0  ;;  %v3377_v42 = vpop.eup %3376 }
0x13bf   :  { %v2699_v35 = vsel %vm1019_vm2, %v3377_v42, 0.0 }
0x13c0   :  { %2465 = vadd.xlane.f32.xlu1 %v2464_v54  ;;  %v1682_v54 = vmul.f32 %v4768_v1, %v4473_v4 }
0x13c2   :  { %v1683_v26 = vsel %vm1019_vm2, %v1682_v54, 0.0 }
0x13c4   :  { %2935 = vadd.xlane.f32.xlu1 %v2934_v49  ;;  %v1917_v49 = vmul.f32 %v4769_v19, %v4473_v4 }
0x13c6   :  { %v1918_v62 = vsel %vm1019_vm2, %v1917_v49, 0.0 }
0x13c8   :  { %1453 = vadd.xlane.f32.xlu1 %v1452_v59  ;;  %v2152_v59 = vmul.f32 %v4770_v33, %v4473_v4 }
0x13ca   :  { %v2153_v36 = vsel %vm1019_vm2, %v2152_v59, 0.0 }
0x13cc   :  { %1688 = vadd.xlane.f32.xlu1 %v1687_v9  ;;  %v2387_v9 = vmul.f32 %v4771_v7, %v4473_v4 }
0x13ce   :  { %v2388_v60 = vsel %vm1019_vm2, %v2387_v9, 0.0 }
0x13d0   :  { %1923 = vadd.xlane.f32.xlu1 %v1922_v41  ;;  %v2622_v41 = vmul.f32 %v4214_v55, %v4473_v4 }
0x13d2   :  { %v2623_v51 = vsel %vm1019_vm2, %v2622_v41, 0.0 }
0x13d4   :  { %2158 = vadd.xlane.f32.xlu1 %v2157_v32  ;;  %v2857_v32 = vmul.f32 %v4287_v15, %v4473_v4 }
0x13d6   :  { %v2858_v46 = vsel %vm1019_vm2, %v2857_v32, 0.0 }
0x13d8   :  { %2393 = vadd.xlane.f32.xlu1 %v2392_v21  ;;  %v1218_v21 = vpop.xlane.xlu0 %1217 }
0x13d9   :  { %3378 = vlog2.f32 %v1218_v21 }
0x13dc   :  { %2628 = vadd.xlane.f32.xlu1 %v2627_v2 }
0x13e0   :  { %2863 = vadd.xlane.f32.xlu1 %v2862_v37 }
0x13e3   :  { %v3379_v11 = vpop.eup %3378 }
0x13e4   :  { %v1220_v2 = vmul.f32 0.6931472, %v3379_v11 }
0x13e6   :  { %v1222_v40 = vrot.slane %v1220_v2, 1  ;;  %v1223_v37 = vrot.slane %v1220_v2, 2  ;;  %v1224_v56 = vrot.slane %v1220_v2, 3  ;;  %v1237_v0 = vsub.f32 %v4312_v34, %v1220_v2 }
0x13e7   :  { %v1225_v63 = vrot.slane %v1220_v2, 4 }
0x13e8   :  { %v1238_v61 = vsub.f32 %v4321_v38, %v1222_v40  ;;  %v1239_v53 = vsub.f32 %v4331_v6, %v1223_v37  ;;  %v1227_v6 = vrot.slane %v1220_v2, 6 }
0x13e9   :  { %v1241_v28 = vsub.f32 %v4343_v14, %v1225_v63 }
0x13ea   :  { %v1301_v45 = vrot.slane %v1238_v61, 7  ;;  %v1303_v25 = vrot.slane %v1239_v53, 6 }
0x13ec   :  { %v1302_v48 = vsel %vm1135_vm3, %v1301_v45, %v1237_v0  ;;  %vm2964_vm3 = vcmp.eq.s32.totalorder %v3754_v57, 7 }
0x13ed   :  { %v1304_v38 = vsel %vm1137_vm4, %v1303_v25, %v1302_v48 }
0x1441   :  { %v4465_v27 = vpop.xlane.xlu1 %2947 }
0x1442   :  { %vm2949_vm1 = vcmp.eq.f32.partialorder %v2946_v29, %v4465_v27  ;;  %v1447_v29 = vmul.f32 %v4767_v12, %v4473_v4  ;;  %v2954_v14 = vcvt.f32.s32 %v4465_v27  ;;  %v2965_v27 = vsel %vm2964_vm3, 1, %v4734_v58 }
0x1443   :  { %v2950_v10 = vsel %vm2949_vm1, %v2945_v30, inf }
0x1444   :  { %2951 = vmin.xlane.f32.xlu0 %v2950_v10  ;;  %v1448_v5 = vsel %vm1019_vm2, %v1447_v29, 0.0  ;;  %v1240_v10 = vsub.f32 %v4336_v16, %v1224_v56  ;;  %v1307_v29 = vrot.slane %v1241_v28, 4  ;;  %v1243_v16 = vsub.f32 %v4370_v50, %v1227_v6 }
0x1445   :  { %v1526_v39 = vpop.xlane.xlu1 %1525 }
0x1446   :  { %3380 = vlog2.f32 %v1526_v39 }
0x1448   :  { %1760 = vadd.xlane.f32.xlu0 %v1759_v8  ;;  %v1226_v8 = vrot.slane %v1220_v2, 5 }
0x1449   :  { %v1996_v30 = vpop.xlane.xlu1 %1995 }
0x144a   :  { %3382 = vlog2.f32 %v1996_v30 }
0x144c   :  { %2230 = vadd.xlane.f32.xlu0 %v2229_v52  ;;  %v1305_v52 = vrot.slane %v1240_v10, 5 }
0x144d   :  { %v2466_v42 = vpop.xlane.xlu1 %2465 }
0x144e   :  { %v1306_v34 = vsel %vm1139_vm5, %v1305_v52, %v1304_v38  ;;  %3384 = vlog2.f32 %v2466_v42 }
0x144f   :  { %v1308_v54 = vsel %vm1141_vm6, %v1307_v29, %v1306_v34 }
0x1450   :  { %2700 = vadd.xlane.f32.xlu0 %v2699_v35  ;;  %v1242_v35 = vsub.f32 %v4362_v43, %v1226_v8 }
0x1452   :  { %v1309_v49 = vrot.slane %v1242_v35, 3 }
0x1454   :  { %1449 = vadd.xlane.f32.xlu0 %v1448_v5  ;;  %v1228_v5 = vrot.slane %v1220_v2, 7 }
0x1456   :  { %v1244_v59 = vsub.f32 %v4377_v13, %v1228_v5 }
0x1458   :  { %1684 = vadd.xlane.f32.xlu0 %v1683_v26  ;;  %v3381_v26 = vpop.eup %3380  ;;  %v1313_v21 = vrot.slane %v1244_v59, 1 }
0x1459   :  { %v1528_v43 = vmul.f32 0.6931472, %v3381_v26  ;;  %v3383_v41 = vpop.eup %3382 }
0x145a   :  { %v1998_v11 = vmul.f32 0.6931472, %v3383_v41  ;;  %v3385_v61 = vpop.eup %3384 }
0x145b   :  { %v1529_v13 = vsub.f32 %v4402_v47, %v1528_v43  ;;  %v2468_v25 = vmul.f32 0.6931472, %v3385_v61 }
0x145c   :  { %1919 = vadd.xlane.f32.xlu0 %v1918_v62  ;;  %v2936_v62 = vpop.xlane.xlu1 %2935  ;;  %v1999_v45 = vsub.f32 %v4407_v22, %v1998_v11 }
0x145d   :  { %3386 = vlog2.f32 %v2936_v62  ;;  %v1550_v0 = vmul.f32 %v4768_v1, %v1529_v13  ;;  %v2469_v1 = vsub.f32 %v4412_v20, %v2468_v25 }
0x145e   :  { %v2020_v8 = vmul.f32 %v4770_v33, %v1999_v45 }
0x145f   :  { %v2490_v42 = vmul.f32 %v4214_v55, %v2469_v1 }
0x1460   :  { %2154 = vadd.xlane.f32.xlu0 %v2153_v36  ;;  %v1310_v36 = vsel %vm1143_vm7, %v1309_v49, %v1308_v54  ;;  %v2021_v6 = vsel %vm1019_vm2, %v2020_v8, 0.0 }
0x1461   :  { %v2491_v33 = vsel %vm1019_vm2, %v2490_v42, 0.0 }
0x1464   :  { %2389 = vadd.xlane.f32.xlu0 %v2388_v60  ;;  %v1311_v60 = vrot.slane %v1243_v16, 2 }
0x1466   :  { %v1312_v50 = vsel %vm1145_vm8, %v1311_v60, %v1310_v36  ;;  %v1454_v36 = vpop.xlane.xlu1 %1453 }
0x1467   :  { %v1314_v40 = vsel %vm1147_vm9, %v1313_v21, %v1312_v50 }
0x1468   :  { %2624 = vadd.xlane.f32.xlu0 %v2623_v51  ;;  %v2955_v51 = vshll.u32 %v2954_v14, 16  ;;  %v1316_v63 = vmul.f32 %v4767_v12, %v1314_v40  ;;  %v1551_v12 = vsel %vm1019_vm2, %v1550_v0, 0.0 }
0x146a   :  { %v1317_v48 = vsel %vm1019_vm2, %v1316_v63, 0.0 }
0x146c   :  { %2859 = vadd.xlane.f32.xlu0 %v2858_v46 }
0x14d1   :  { %v2952_v9 = vpop.xlane.xlu0 %2951 }
0x14d2   :  { %v2953_v32 = vcvt.f32.s32 %v2952_v9  ;;  %v1689_v9 = vpop.xlane.xlu1 %1688 }
0x14d4   :  { %v2956_v46 = vadd.s32 %v2955_v51, %v2953_v32 }
0x14d5   :  { %v1761_v2 = vpop.xlane.xlu0 %1760 }
0x14d6   :  { %vm2957_vm4 = vcmp.eq.s32.totalorder %v3754_v57, %v2956_v46  ;;  %3388 = vlog2.f32 %v1761_v2  ;;  %v2966_v37 = vmul.u32 %v2965_v27, %v2956_v46  ;;  %v1924_v41 = vpop.xlane.xlu1 %1923  ;;  %v1457_v46 = vsub.f32 %v1454_v36, %v4426_v18 }
0x14d7   :  { %v3073_v39 = vsel %vm2957_vm4, 1.0, %v4735_v31  ;;  %v1927_v40 = vsub.f32 %v1924_v41, %v1689_v9 }
0x14d8   :  { %v2975_v53 = vmul.f32 %v3073_v39, %v4426_v18  ;;  %v2971_v56 = vmul.f32 %v3073_v39, %v4473_v4  ;;  %v2967_v58 = vadd.s32 %v2966_v37, %v4294_v23  ;;  %v3387_v23 = vpop.eup %3386 }
0x14d9   :  { %v2231_v47 = vpop.xlane.xlu0 %2230  ;;  %v2938_v38 = vmul.f32 0.6931472, %v3387_v23  ;;  %v1928_v25 = vmul.f32 %v1927_v40, %v1927_v40 }
0x14da   :  { %3390 = vlog2.f32 %v2231_v47  ;;  %v2976_v30 = vsel %vm1019_vm2, %v2975_v53, 0.0  ;;  %v2972_v10 = vsel %vm1019_vm2, %v2971_v56, 0.0  ;;  %3008 = vst.msk [vmem:[%s4675_s7] sm:$0xff] %vm1019_vm2, %v2967_v58  ;;  %v2159_v51 = vpop.xlane.xlu1 %2158 }
0x14db   :  { %2977 = vadd.xlane.f32.xlu1 %v2976_v30  ;;  %2973 = vadd.xlane.f32.xlu0 %v2972_v10  ;;  %v2939_v20 = vsub.f32 %v4415_v24, %v2938_v38  ;;  %v2162_v53 = vsub.f32 %v2159_v51, %v1924_v41 }
0x14dd   :  { %v2701_v22 = vpop.xlane.xlu0 %2700  ;;  %v2960_v16 = vmul.f32 %v3073_v39, %v2939_v20  ;;  %v1458_v39 = vmul.f32 %v1457_v46, %v1457_v46 }
0x14de   :  { %3392 = vlog2.f32 %v2701_v22  ;;  %v2394_v50 = vpop.xlane.xlu1 %2393  ;;  %v2163_v22 = vmul.f32 %v2162_v53, %v2162_v53 }
0x14df   :  { %1552 = vadd.xlane.f32.xlu1 %v1551_v12  ;;  %1318 = vadd.xlane.f32.xlu0 %v1317_v48  ;;  %v2961_v49 = vsel %vm1019_vm2, %v2960_v16, 0.0  ;;  %v2397_v47 = vsub.f32 %v2394_v50, %v2159_v51 }
0x14e0   :  { %v3389_v28 = vpop.eup %3388 }
0x14e1   :  { %v1763_v52 = vmul.f32 0.6931472, %v3389_v28  ;;  %v1450_v59 = vpop.xlane.xlu0 %1449  ;;  %v2398_v38 = vmul.f32 %v2397_v47, %v2397_v47 }
0x14e2   :  { %v2629_v11 = vpop.xlane.xlu1 %2628 }
0x14e3   :  { %v1764_v35 = vsub.f32 %v4452_v44, %v1763_v52  ;;  %2022 = vadd.xlane.f32.xlu1 %v2021_v6  ;;  %v2632_v1 = vsub.f32 %v2629_v11, %v2394_v50 }
0x14e4   :  { %v3391_v34 = vpop.eup %3390 }
0x14e5   :  { %v2233_v29 = vmul.f32 0.6931472, %v3391_v34  ;;  %v1785_v5 = vmul.f32 %v4769_v19, %v1764_v35  ;;  %v1685_v43 = vpop.xlane.xlu0 %1684  ;;  %v2633_v35 = vmul.f32 %v2632_v1, %v2632_v1 }
0x14e6   :  { %v1690_v27 = vsub.f32 %v1685_v43, %v1450_v59  ;;  %v2864_v48 = vpop.xlane.xlu1 %2863 }
0x14e7   :  { %v2234_v54 = vsub.f32 %v4457_v3, %v2233_v29  ;;  %2492 = vadd.xlane.f32.xlu1 %v2491_v33  ;;  %v1786_v26 = vsel %vm1019_vm2, %v1785_v5, 0.0  ;;  %v2867_v52 = vsub.f32 %v2864_v48, %v2629_v11 }
0x14e8   :  { %v3393_v14 = vpop.eup %3392  ;;  %1787 = vadd.xlane.f32.xlu0 %v1786_v26  ;;  %v1691_v37 = vmul.f32 %v1690_v27, %v1690_v27 }
0x14e9   :  { %v2703_v55 = vmul.f32 0.6931472, %v3393_v14  ;;  %v2255_v44 = vmul.f32 %v4771_v7, %v2234_v54  ;;  %v1920_v60 = vpop.xlane.xlu0 %1919  ;;  %v2868_v29 = vmul.f32 %v2867_v52, %v2867_v52 }
0x14ea   :  { %v1925_v13 = vsub.f32 %v1920_v60, %v1685_v43 }
0x14eb   :  { %v2704_v24 = vsub.f32 %v4462_v17, %v2703_v55  ;;  %2962 = vadd.xlane.f32.xlu1 %v2961_v49  ;;  %v2256_v19 = vsel %vm1019_vm2, %v2255_v44, 0.0  ;;  %v1455_v17 = vsub.f32 %v1450_v59, %v4473_v4 }
0x14ec   :  { %2257 = vadd.xlane.f32.xlu0 %v2256_v19  ;;  %v1926_v58 = vmul.f32 %v1925_v13, %v1925_v13  ;;  %v3060_v13 = vsel %vm1320_vm0, 1.0, %v4735_v31 }
0x14ed   :  { %v2725_v62 = vmul.f32 %v4287_v15, %v2704_v24  ;;  %v2155_v7 = vpop.xlane.xlu0 %2154  ;;  %v1692_v15 = vsub.f32 %v1689_v9, %v1454_v36  ;;  %v1456_v2 = vmul.f32 %v1455_v17, %v1455_v17 }
0x14ee   :  { %v2160_v61 = vsub.f32 %v2155_v7, %v1920_v60  ;;  %v4556_v12 = vadd.f32 %v1928_v25, %v1926_v58 }
0x14ef   :  { %v2726_v3 = vsel %vm1019_vm2, %v2725_v62, 0.0  ;;  %v1693_v56 = vmul.f32 %v1692_v15, %v1692_v15  ;;  %v4552_v0 = vadd.f32 %v1458_v39, %v1456_v2  ;;  %v3062_v15 = vsel %vm1554_vm15, 1.0, %v4735_v31 }
0x14f0   :  { %2727 = vadd.xlane.f32.xlu0 %v2726_v3  ;;  %v2161_v10 = vmul.f32 %v2160_v61, %v2160_v61  ;;  %vm1932_vm9 = vcmp.eq.f32.partialorder %v4556_v12, inf  ;;  %vm1934_vm11 = vcmp.eq.f32.partialorder %v4556_v12, 0.0  ;;  %v1935_v51 = vand.u32 2147483648, %v4556_v12 }
0x14f1   :  { %v2390_v32 = vpop.xlane.xlu0 %2389  ;;  %v4554_v30 = vadd.f32 %v1693_v56, %v1691_v37  ;;  %3394 = vrsqrt.f32 %v4552_v0  ;;  %vm1462_vm5 = vcmp.eq.f32.partialorder %v4552_v0, inf  ;;  %vm1464_vm6 = vcmp.eq.f32.partialorder %v4552_v0, 0.0 }
0x14f2   :  { %v2395_v45 = vsub.f32 %v2390_v32, %v2155_v7  ;;  %v4560_v6 = vadd.f32 %v2163_v22, %v2161_v10  ;;  %v1465_v49 = vand.u32 2147483648, %v4552_v0 }
0x14f3   :  { %3396 = vrsqrt.f32 %v4554_v30  ;;  %vm1697_vm7 = vcmp.eq.f32.partialorder %v4554_v30, inf  ;;  %vm1699_vm8 = vcmp.eq.f32.partialorder %v4554_v30, 0.0  ;;  %v1700_v24 = vand.u32 2147483648, %v4554_v30 }
0x14f4   :  { %v2396_v8 = vmul.f32 %v2395_v45, %v2395_v45  ;;  %3398 = vrsqrt.f32 %v4556_v12  ;;  %vm2167_vm1 = vcmp.eq.f32.partialorder %v4560_v6, inf  ;;  %vm2169_vm15 = vcmp.eq.f32.partialorder %v4560_v6, 0.0 }
0x14f5   :  { %v2625_v21 = vpop.xlane.xlu0 %2624  ;;  %3400 = vrsqrt.f32 %v4560_v6  ;;  %v2170_v45 = vand.u32 2147483648, %v4560_v6 }
0x14f6   :  { %v2630_v23 = vsub.f32 %v2625_v21, %v2390_v32  ;;  %v4563_v34 = vadd.f32 %v2398_v38, %v2396_v8  ;;  %v3064_v38 = vsel %vm1789_vm13, 1.0, %v4735_v31  ;;  %vm4776_vm13 = vcmp.eq.s32.totalorder %v3754_v57, 5 }
0x14f8   :  { %v2631_v42 = vmul.f32 %v2630_v23, %v2630_v23  ;;  %3402 = vrsqrt.f32 %v4563_v34  ;;  %vm2402_vm0 = vcmp.eq.f32.partialorder %v4563_v34, inf  ;;  %vm2404_vm4 = vcmp.eq.f32.partialorder %v4563_v34, 0.0 }
0x14f9   :  { %v2860_v63 = vpop.xlane.xlu0 %2859  ;;  %v2405_v10 = vand.u32 2147483648, %v4563_v34 }
0x14fa   :  { %v2865_v28 = vsub.f32 %v2860_v63, %v2625_v21  ;;  %v4566_v5 = vadd.f32 %v2633_v35, %v2631_v42 }
0x14fb   :  { %v3395_v16 = vpop.eup %3394 }
0x14fc   :  { %v2866_v20 = vmul.f32 %v2865_v28, %v2865_v28  ;;  %3404 = vrsqrt.f32 %v4566_v5  ;;  %v1461_v14 = vmul.f32 %v3395_v16, %v4552_v0  ;;  %v2640_v8 = vand.u32 2147483648, %v4566_v5 }
0x14fd   :  { %v3397_v54 = vpop.eup %3396 }
0x14fe   :  { %v4569_v33 = vadd.f32 %v2868_v29, %v2866_v20  ;;  %v3399_v26 = vpop.eup %3398  ;;  %v1696_v55 = vmul.f32 %v3397_v54, %v4554_v30  ;;  %v1463_v41 = vsel %vm1462_vm5, %v4552_v0, %v1461_v14  ;;  %vm2637_vm5 = vcmp.eq.f32.partialorder %v4566_v5, inf }
0x14ff   :  { %v3401_v44 = vpop.eup %3400  ;;  %v1931_v19 = vmul.f32 %v3399_v26, %v4556_v12  ;;  %v1466_v39 = vsel %vm1464_vm6, %v1465_v49, %v1463_v41 }
0x1500   :  { %3406 = vrsqrt.f32 %v4569_v33  ;;  %v1698_v7 = vsel %vm1697_vm7, %v4554_v30, %v1696_v55  ;;  %v2166_v32 = vmul.f32 %v3401_v44, %v4560_v6  ;;  %vm2872_vm6 = vcmp.eq.f32.partialorder %v4569_v33, inf }
0x1501   :  { %v1701_v2 = vsel %vm1699_vm8, %v1700_v24, %v1698_v7  ;;  %vm2639_vm7 = vcmp.eq.f32.partialorder %v4566_v5, 0.0  ;;  %v2875_v35 = vand.u32 2147483648, %v4569_v33  ;;  %vm2874_vm8 = vcmp.eq.f32.partialorder %v4569_v33, 0.0 }
0x1502   :  { %v3403_v59 = vpop.eup %3402  ;;  %v2168_v53 = vsel %vm2167_vm1, %v4560_v6, %v2166_v32  ;;  %v3070_v24 = vsel %vm4776_vm13, 1.0, %v4735_v31  ;;  %vm3006_vm1 = vcmask 7168  }
0x1503   :  { %v2171_v30 = vsel %vm2169_vm15, %v2170_v45, %v2168_v53 }
0x1506   :  { %v3405_v50 = vpop.eup %3404 }
0x1507   :  { %v2636_v56 = vmul.f32 %v3405_v50, %v4566_v5 }
0x1509   :  { %v2638_v22 = vsel %vm2637_vm5, %v4566_v5, %v2636_v56  ;;  %v3068_v5 = vsel %vm2259_vm14, 1.0, %v4735_v31 }
0x150a   :  { %v3407_v11 = vpop.eup %3406  ;;  %v2641_v42 = vsel %vm2639_vm7, %v2640_v8, %v2638_v22 }
0x150b   :  { %v2871_v25 = vmul.f32 %v3407_v11, %v4569_v33 }
0x150d   :  { %v2873_v6 = vsel %vm2872_vm6, %v4569_v33, %v2871_v25 }
0x150e   :  { %v2876_v26 = vsel %vm2874_vm8, %v2875_v35, %v2873_v6 }
0x1568   :  { %v2978_v62 = vpop.xlane.xlu1 %2977  ;;  %v2974_v3 = vpop.xlane.xlu0 %2973 }
0x1569   :  { %v2981_v36 = vsub.f32 %v2978_v62, %v2864_v48  ;;  %v2994_v43 = vsub.f32 %v2978_v62, %v4426_v18  ;;  %v2979_v9 = vsub.f32 %v2974_v3, %v2860_v63  ;;  %v2992_v60 = vsub.f32 %v2974_v3, %v4473_v4 }
0x156a   :  { %v1933_v18 = vsel %vm1932_vm9, %v4556_v12, %v1931_v19  ;;  %v2401_v4 = vmul.f32 %v3403_v59, %v4563_v34  ;;  %v1702_v63 = vadd.f32 %v1701_v2, %v1466_v39 }
0x156b   :  { %v2982_v17 = vmul.f32 %v2981_v36, %v2981_v36  ;;  %v2995_v27 = vmul.f32 %v2994_v43, %v2994_v43  ;;  %v2980_v46 = vmul.f32 %v2979_v9, %v2979_v9  ;;  %v2993_v21 = vmul.f32 %v2992_v60, %v2992_v60 }
0x156c   :  { %v1553_v61 = vpop.xlane.xlu1 %1552  ;;  %v1936_v58 = vsel %vm1934_vm11, %v1935_v51, %v1933_v18  ;;  %v1319_v47 = vpop.xlane.xlu0 %1318  ;;  %v2403_v0 = vsel %vm2402_vm0, %v4563_v34, %v2401_v4  ;;  %v3066_v34 = vsel %vm2024_vm12, 1.0, %v4735_v31  ;;  %v3074_v4 = vsel %vm2964_vm3, 1.0, %v4735_v31 }
0x156d   :  { %v4605_v40 = vadd.f32 %v2982_v17, %v2980_v46  ;;  %v4607_v37 = vadd.f32 %v2995_v27, %v2993_v21  ;;  %v1937_v23 = vadd.f32 %v1936_v58, %v1702_v63  ;;  %v1559_v48 = vmul.f32 %v3062_v15, %v1553_v61 }
0x156e   :  { %v1324_v1 = vmul.f32 %v3060_v13, %v1319_v47  ;;  %v2406_v12 = vsel %vm2404_vm4, %v2405_v10, %v2403_v0  ;;  %v3072_v27 = vsel %vm2729_vm10, 1.0, %v4735_v31 }
0x156f   :  { %3408 = vrsqrt.f32 %v4605_v40  ;;  %v2172_v52 = vadd.f32 %v2171_v30, %v1937_v23  ;;  %vm2986_vm12 = vcmp.eq.f32.partialorder %v4605_v40, inf  ;;  %vm2988_vm14 = vcmp.eq.f32.partialorder %v4605_v40, 0.0 }
0x1570   :  { %3410 = vrsqrt.f32 %v4607_v37  ;;  %v2023_v28 = vpop.xlane.xlu1 %2022  ;;  %v1560_v16 = vadd.f32 %v1559_v48, %v1324_v1  ;;  %v2989_v9 = vand.u32 2147483648, %v4605_v40  ;;  %vm2999_vm9 = vcmp.eq.f32.partialorder %v4607_v37, inf }
0x1571   :  { %v2407_v29 = vadd.f32 %v2406_v12, %v2172_v52  ;;  %v2029_v55 = vmul.f32 %v3066_v34, %v2023_v28  ;;  %v3002_v17 = vand.u32 2147483648, %v4607_v37  ;;  %vm3001_vm11 = vcmp.eq.f32.partialorder %v4607_v37, 0.0 }
0x1573   :  { %v2642_v14 = vadd.f32 %v2641_v42, %v2407_v29 }
0x1574   :  { %v2493_v19 = vpop.xlane.xlu1 %2492 }
0x1575   :  { %v1788_v20 = vpop.xlane.xlu0 %1787  ;;  %v2877_v59 = vadd.f32 %v2876_v26, %v2642_v14  ;;  %v2499_v7 = vmul.f32 %v3070_v24, %v2493_v19 }
0x1576   :  { %v1794_v54 = vmul.f32 %v3064_v38, %v1788_v20 }
0x1578   :  { %v1795_v44 = vadd.f32 %v1794_v54, %v1560_v16  ;;  %v2963_v15 = vpop.xlane.xlu1 %2962 }
0x1579   :  { %v3409_v49 = vpop.eup %3408  ;;  %v2258_v62 = vpop.xlane.xlu0 %2257  ;;  %v2969_v61 = vmul.f32 %v3074_v4, %v2963_v15 }
0x157a   :  { %v3411_v3 = vpop.eup %3410  ;;  %v2985_v33 = vmul.f32 %v3409_v49, %v4605_v40  ;;  %v2030_v36 = vadd.f32 %v2029_v55, %v1795_v44  ;;  %v2264_v43 = vmul.f32 %v3068_v5, %v2258_v62 }
0x157b   :  { %v2998_v60 = vmul.f32 %v3411_v3, %v4607_v37 }
0x157c   :  { %v2987_v41 = vsel %vm2986_vm12, %v4605_v40, %v2985_v33  ;;  %v2265_v51 = vadd.f32 %v2264_v43, %v2030_v36 }
0x157d   :  { %v2990_v32 = vsel %vm2988_vm14, %v2989_v9, %v2987_v41  ;;  %v3000_v50 = vsel %vm2999_vm9, %v4607_v37, %v2998_v60  ;;  %v2728_v13 = vpop.xlane.xlu0 %2727 }
0x157e   :  { %v2991_v46 = vadd.f32 %v2990_v32, %v2877_v59  ;;  %v2500_v21 = vadd.f32 %v2499_v7, %v2265_v51  ;;  %v3003_v18 = vsel %vm3001_vm11, %v3002_v17, %v3000_v50  ;;  %v2734_v2 = vmul.f32 %v3072_v27, %v2728_v13 }
0x1580   :  { %v3004_v11 = vadd.f32 %v3003_v18, %v2991_v46  ;;  %v2735_v39 = vadd.f32 %v2734_v2, %v2500_v21 }
0x1582   :  { %v3005_v40 = vsub.f32 0.0, %v3004_v11  ;;  %v2970_v53 = vadd.f32 %v2969_v61, %v2735_v39 }
0x1584   :  { %3007 = vst.msk [vmem:[%s4676_s9] sm:$0xff] %vm3006_vm1, %v3005_v40 }
0x1585   :  { %3009 = vst.msk [vmem:[%s4677_s8] sm:$0xff] %vm1019_vm2, %v2970_v53 }

</bundles_post_ra>
